<compile_context>
chip_gen: v6e
topology: v6e:2x2x1
jax: 0.10.0
libtpu: 0.0.40
codegen_flags: <defaults>
</compile_context>

<pallas_src>
import jax
import jax.numpy as jnp
import numpy as np
from jax.experimental import pallas as pl
from jax.experimental.pallas import tpu as pltpu

# ----------------------------- config (small demo sizes) --------------------
LATENT = 96          # stands in for 512
NUM_HEADS = 12
HEAD_SIZE = LATENT // NUM_HEADS   # 8
SEQ = 16
BATCH = 2


# ----------------------------- fused Pallas kernel ---------------------------
def _mha_kernel(xk_ref, xq_ref, xv_ref, wk_ref, wq_ref, wv_ref, wp_ref, b_ref,
                o_ref):
    """One batch element: head-batched K/Q/V projections + attention for all
    heads + a single fused output projection, written as one lane-dense
    (S, LP) tile."""
    S, LP = xk_ref.shape[1], xk_ref.shape[2]
    NH, _, Hd = wk_ref.shape

    # Broadcast the (S, LP) activations across heads so the projections are a
    # single head-batched MXU sequence each (no in-kernel relayout needed).
    xk = jnp.broadcast_to(xk_ref[0][None], (NH, S, LP))    # bf16
    xq = jnp.broadcast_to(xq_ref[0][None], (NH, S, LP))
    xv = jnp.broadcast_to(xv_ref[0][None], (NH, S, LP))

    # Head-batched projections: bf16 operands, f32 accumulation.
    # Wq was pre-scaled by 1/sqrt(Hd) in the wrapper.
    k = jnp.einsum("hsl,hld->hsd", xk, wk_ref[...],
                   preferred_element_type=jnp.float32)      # (NH, S, Hd)
    q = jnp.einsum("hsl,hld->hsd", xq, wq_ref[...],
                   preferred_element_type=jnp.float32)      # (NH, S, Hd)
    v = jnp.einsum("hsl,hld->hsd", xv, wv_ref[...],
                   preferred_element_type=jnp.float32)      # (NH, S, Hd)

    # Scores for ALL heads in one batched dot_general: (NH, S, S), f32.
    s = jnp.einsum("hqd,hkd->hqk",
                   q.astype(jnp.bfloat16), k.astype(jnp.bfloat16),
                   preferred_element_type=jnp.float32)

    # Numerically stable softmax over the key axis (f32; reciprocal on EUP).
    s = s - jnp.max(s, axis=-1, keepdims=True)
    e = jnp.exp(s)
    p = e * pl.reciprocal(jnp.sum(e, axis=-1, keepdims=True), approx=True)

    # attention dropout skipped (eval mode)

    # Context for all heads: (NH, S, Hd), f32 accumulation.
    ctx = jnp.einsum("hqk,hkd->hqd",
                     p.astype(jnp.bfloat16), v.astype(jnp.bfloat16),
                     preferred_element_type=jnp.float32)

    # Head-concat along lanes (static slices), then ONE wide K=NH*Hd output
    # projection matmul instead of 12 K=Hd matmuls.
    ctx_full = jnp.concatenate([ctx[h] for h in range(NH)], axis=-1)  # (S, C)
    out = jnp.dot(ctx_full.astype(jnp.bfloat16), wp_ref[...],
                  preferred_element_type=jnp.float32)                 # (S, LP)

    # final dropout skipped (eval mode)
    o_ref[0] = out + b_ref[...]


# ----------------------------- wrapper ---------------------------------------
@jax.jit
def multi_head_attention(xk, xq, xv, wk, wq, wv, w_proj, b_proj):
    """
    xk, xq, xv : (B, S, L) float32
    wk, wq, wv : (NH, L, Hd)  per-head projection weights (pre-transposed,
                  i.e. k_h = xk @ wk[h], matching nn.Linear weight.T)
    w_proj     : (NH*Hd, L)   output projection weight (pre-transposed)
    b_proj     : (L,)         output projection bias
    returns    : (B, S, L) float32
    """
    B, S, L = xk.shape
    NH, _, Hd = wk.shape
    C = NH * Hd
    LP = ((L + 127) // 128) * 128        # lane-pad L to a multiple of 128
    pad = LP - L

    scale = float(Hd) ** -0.5

    def pad_x(x):                        # (B,S,L) -> (B,S,LP) bf16
        return jnp.pad(x, ((0, 0), (0, 0), (0, pad))).astype(jnp.bfloat16)

    def pad_w(w):                        # (NH,L,Hd) -> (NH,LP,Hd) bf16
        return jnp.pad(w, ((0, 0), (0, pad), (0, 0))).astype(jnp.bfloat16)

    xk_p, xq_p, xv_p = pad_x(xk), pad_x(xq), pad_x(xv)
    wk_p = pad_w(wk)
    wq_p = pad_w(wq * scale)             # fold 1/sqrt(Hd) into Wq
    wv_p = pad_w(wv)
    wp_p = jnp.pad(w_proj, ((0, 0), (0, pad))).astype(jnp.bfloat16)  # (C, LP)
    b_p = jnp.pad(b_proj, (0, pad)).reshape(1, LP)                    # f32

    out = pl.pallas_call(
        _mha_kernel,
        out_shape=jax.ShapeDtypeStruct((B, S, LP), jnp.float32),
        grid_spec=pltpu.PrefetchScalarGridSpec(
            num_scalar_prefetch=0,
            grid=(B,),
            in_specs=[
                pl.BlockSpec((1, S, LP), lambda b: (b, 0, 0)),     # xk
                pl.BlockSpec((1, S, LP), lambda b: (b, 0, 0)),     # xq
                pl.BlockSpec((1, S, LP), lambda b: (b, 0, 0)),     # xv
                pl.BlockSpec((NH, LP, Hd), lambda b: (0, 0, 0)),   # wk
                pl.BlockSpec((NH, LP, Hd), lambda b: (0, 0, 0)),   # wq (scaled)
                pl.BlockSpec((NH, LP, Hd), lambda b: (0, 0, 0)),   # wv
                pl.BlockSpec((C, LP), lambda b: (0, 0)),           # w_proj
                pl.BlockSpec((1, LP), lambda b: (0, 0)),           # bias
            ],
            out_specs=pl.BlockSpec((1, S, LP), lambda b: (b, 0, 0)),
        ),
        compiler_params=pltpu.CompilerParams(
            dimension_semantics=("parallel",)),
    )(xk_p, xq_p, xv_p, wk_p, wq_p, wv_p, wp_p, b_p)

    return out[:, :, :L]                 # drop the lane padding


# ----------------------------- pure-JAX reference -----------------------------
def reference(xk, xq, xv, wk, wq, wv, w_proj, b_proj):
    k = jnp.einsum("bsl,hld->hbsd", xk, wk)
    q = jnp.einsum("bsl,hld->hbsd", xq, wq)
    v = jnp.einsum("bsl,hld->hbsd", xv, wv)
    wei = jnp.einsum("hbqd,hbkd->hbqk", q, k) * (k.shape[-1] ** -0.5)
    wei = jax.nn.softmax(wei, axis=-1)
    o = jnp.einsum("hbqk,hbkd->hbqd", wei, v)
    B, S = xk.shape[0], xk.shape[1]
    cat = jnp.transpose(o, (1, 2, 0, 3)).reshape(B, S, -1)
    return cat @ w_proj + b_proj


# ----------------------------- main -------------------------------------------
if __name__ == "__main__":
    key = jax.random.PRNGKey(0)
    ks = jax.random.split(key, 8)

    xk = jax.random.normal(ks[0], (BATCH, SEQ, LATENT), jnp.float32)
    xq = jax.random.normal(ks[1], (BATCH, SEQ, LATENT), jnp.float32)
    xv = jax.random.normal(ks[2], (BATCH, SEQ, LATENT), jnp.float32)

    # deterministic parameter init (nn.Linear-ish scale)
    winit = 1.0 / np.sqrt(LATENT)
    wk = jax.random.uniform(ks[3], (NUM_HEADS, LATENT, HEAD_SIZE), jnp.float32,
                            -winit, winit)
    wq = jax.random.uniform(ks[4], (NUM_HEADS, LATENT, HEAD_SIZE), jnp.float32,
                            -winit, winit)
    wv = jax.random.uniform(ks[5], (NUM_HEADS, LATENT, HEAD_SIZE), jnp.float32,
                            -winit, winit)
    pinit = 1.0 / np.sqrt(NUM_HEADS * HEAD_SIZE)
    w_proj = jax.random.uniform(ks[6], (NUM_HEADS * HEAD_SIZE, LATENT),
                                jnp.float32, -pinit, pinit)
    b_proj = jax.random.uniform(ks[7], (LATENT,), jnp.float32, -pinit, pinit)

    out = multi_head_attention(xk, xq, xv, wk, wq, wv, w_proj, b_proj)
    out = jax.block_until_ready(out)

    ref = reference(xk, xq, xv, wk, wq, wv, w_proj, b_proj)
    # bf16 MXU operands + approx reciprocal -> loosened tolerance (per review).
    np.testing.assert_allclose(np.asarray(out), np.asarray(ref),
                               rtol=2e-2, atol=2e-2)
    print("KERNEL_OK")
</pallas_src>

<mosaic_0001>
module attributes {stable_mosaic.version = 11 : i64} {
  func.func @_mha_kernel(%arg0: i32, %arg1: memref<1x16x128xbf16, #tpu.memory_space<vmem>>, %arg2: memref<1x16x128xbf16, #tpu.memory_space<vmem>>, %arg3: memref<1x16x128xbf16, #tpu.memory_space<vmem>>, %arg4: memref<12x128x8xbf16, #tpu.memory_space<vmem>>, %arg5: memref<12x128x8xbf16, #tpu.memory_space<vmem>>, %arg6: memref<12x128x8xbf16, #tpu.memory_space<vmem>>, %arg7: memref<96x128xbf16, #tpu.memory_space<vmem>>, %arg8: memref<1x128xf32, #tpu.memory_space<vmem>>, %arg9: memref<1x16x128xf32, #tpu.memory_space<vmem>>) attributes {dimension_semantics = [#tpu.dimension_semantics<parallel>], iteration_bounds = array<i64: 2>, scalar_prefetch = 0 : i64, scratch_operands = 0 : i64, tpu.core_type = #tpu.core_type<tc>, window_params = [{transform_indices = @transform_0, window_bounds = array<i64: 1, 16, 128>}, {transform_indices = @transform_1, window_bounds = array<i64: 1, 16, 128>}, {transform_indices = @transform_2, window_bounds = array<i64: 1, 16, 128>}, {pipeline_mode = #tpu.pipeline_mode<synchronous>, transform_indices = @transform_3, window_bounds = array<i64: 12, 128, 8>}, {pipeline_mode = #tpu.pipeline_mode<synchronous>, transform_indices = @transform_4, window_bounds = array<i64: 12, 128, 8>}, {pipeline_mode = #tpu.pipeline_mode<synchronous>, transform_indices = @transform_5, window_bounds = array<i64: 12, 128, 8>}, {pipeline_mode = #tpu.pipeline_mode<synchronous>, transform_indices = @transform_6, window_bounds = array<i64: 96, 128>}, {pipeline_mode = #tpu.pipeline_mode<synchronous>, transform_indices = @transform_7, window_bounds = array<i64: 1, 128>}, {transform_indices = @transform_8, window_bounds = array<i64: 1, 16, 128>}]} {
    %c0 = arith.constant 0 : index
    %c0_0 = arith.constant 0 : index
    %c0_1 = arith.constant 0 : index
    %0 = vector.load %arg1[%c0, %c0_0, %c0_1] : memref<1x16x128xbf16, #tpu.memory_space<vmem>>, vector<1x16x128xbf16>
    %1 = vector.shape_cast %0 : vector<1x16x128xbf16> to vector<16x128xbf16>
    %2 = vector.shape_cast %1 : vector<16x128xbf16> to vector<1x16x128xbf16>
    %3 = vector.shape_cast %2 : vector<1x16x128xbf16> to vector<1x16x128xbf16>
    %4 = vector.broadcast %3 : vector<1x16x128xbf16> to vector<12x16x128xbf16>
    %c0_2 = arith.constant 0 : index
    %c0_3 = arith.constant 0 : index
    %c0_4 = arith.constant 0 : index
    %5 = vector.load %arg2[%c0_2, %c0_3, %c0_4] : memref<1x16x128xbf16, #tpu.memory_space<vmem>>, vector<1x16x128xbf16>
    %6 = vector.shape_cast %5 : vector<1x16x128xbf16> to vector<16x128xbf16>
    %7 = vector.shape_cast %6 : vector<16x128xbf16> to vector<1x16x128xbf16>
    %8 = vector.shape_cast %7 : vector<1x16x128xbf16> to vector<1x16x128xbf16>
    %9 = vector.broadcast %8 : vector<1x16x128xbf16> to vector<12x16x128xbf16>
    %c0_5 = arith.constant 0 : index
    %c0_6 = arith.constant 0 : index
    %c0_7 = arith.constant 0 : index
    %10 = vector.load %arg3[%c0_5, %c0_6, %c0_7] : memref<1x16x128xbf16, #tpu.memory_space<vmem>>, vector<1x16x128xbf16>
    %11 = vector.shape_cast %10 : vector<1x16x128xbf16> to vector<16x128xbf16>
    %12 = vector.shape_cast %11 : vector<16x128xbf16> to vector<1x16x128xbf16>
    %13 = vector.shape_cast %12 : vector<1x16x128xbf16> to vector<1x16x128xbf16>
    %14 = vector.broadcast %13 : vector<1x16x128xbf16> to vector<12x16x128xbf16>
    %c0_8 = arith.constant 0 : index
    %c0_9 = arith.constant 0 : index
    %c0_10 = arith.constant 0 : index
    %15 = vector.load %arg4[%c0_8, %c0_9, %c0_10] : memref<12x128x8xbf16, #tpu.memory_space<vmem>>, vector<12x128x8xbf16>
    "tpu.trace_start"() <{level = 10 : i32, message = "hsl,hld->hsd"}> : () -> ()
    %cst = arith.constant dense<0.000000e+00> : vector<12x16x8xf32>
    %16 = tpu.matmul %4, %15, %cst {dimension_numbers = #tpu.dot_dimension_numbers<[2], [1], [1], [2], [0, 0, 0, 1, 1, 2], [0], [0]>} : vector<12x16x128xbf16>, vector<12x128x8xbf16>, vector<12x16x8xf32> -> vector<12x16x8xf32>
    "tpu.trace_stop"() : () -> ()
    %c0_11 = arith.constant 0 : index
    %c0_12 = arith.constant 0 : index
    %c0_13 = arith.constant 0 : index
    %17 = vector.load %arg5[%c0_11, %c0_12, %c0_13] : memref<12x128x8xbf16, #tpu.memory_space<vmem>>, vector<12x128x8xbf16>
    "tpu.trace_start"() <{level = 10 : i32, message = "hsl,hld->hsd"}> : () -> ()
    %cst_14 = arith.constant dense<0.000000e+00> : vector<12x16x8xf32>
    %18 = tpu.matmul %9, %17, %cst_14 {dimension_numbers = #tpu.dot_dimension_numbers<[2], [1], [1], [2], [0, 0, 0, 1, 1, 2], [0], [0]>} : vector<12x16x128xbf16>, vector<12x128x8xbf16>, vector<12x16x8xf32> -> vector<12x16x8xf32>
    "tpu.trace_stop"() : () -> ()
    %c0_15 = arith.constant 0 : index
    %c0_16 = arith.constant 0 : index
    %c0_17 = arith.constant 0 : index
    %19 = vector.load %arg6[%c0_15, %c0_16, %c0_17] : memref<12x128x8xbf16, #tpu.memory_space<vmem>>, vector<12x128x8xbf16>
    "tpu.trace_start"() <{level = 10 : i32, message = "hsl,hld->hsd"}> : () -> ()
    %cst_18 = arith.constant dense<0.000000e+00> : vector<12x16x8xf32>
    %20 = tpu.matmul %14, %19, %cst_18 {dimension_numbers = #tpu.dot_dimension_numbers<[2], [1], [1], [2], [0, 0, 0, 1, 1, 2], [0], [0]>} : vector<12x16x128xbf16>, vector<12x128x8xbf16>, vector<12x16x8xf32> -> vector<12x16x8xf32>
    "tpu.trace_stop"() : () -> ()
    %21 = arith.truncf %18 : vector<12x16x8xf32> to vector<12x16x8xbf16>
    %22 = arith.truncf %16 : vector<12x16x8xf32> to vector<12x16x8xbf16>
    "tpu.trace_start"() <{level = 10 : i32, message = "hqd,hkd->hqk"}> : () -> ()
    %cst_19 = arith.constant dense<0.000000e+00> : vector<12x16x16xf32>
    %23 = tpu.matmul %21, %22, %cst_19 {dimension_numbers = #tpu.dot_dimension_numbers<[2], [2], [1], [1], [0, 0, 0, 1, 1, 1], [0], [0]>} : vector<12x16x8xbf16>, vector<12x16x8xbf16>, vector<12x16x16xf32> -> vector<12x16x16xf32>
    "tpu.trace_stop"() : () -> ()
    %cst_20 = arith.constant dense<0xFF800000> : vector<12x16xf32>
    %24 = vector.multi_reduction <maximumf>, %23, %cst_20 [2] : vector<12x16x16xf32> to vector<12x16xf32>
    %25 = vector.shape_cast %24 : vector<12x16xf32> to vector<12x16x1xf32>
    %26 = vector.broadcast %25 : vector<12x16x1xf32> to vector<12x16x16xf32>
    %27 = arith.subf %23, %26 : vector<12x16x16xf32>
    %28 = math.exp %27 : vector<12x16x16xf32>
    %cst_21 = arith.constant dense<0.000000e+00> : vector<12x16xf32>
    %29 = vector.multi_reduction <add>, %28, %cst_21 [2] : vector<12x16x16xf32> to vector<12x16xf32>
    %30 = vector.shape_cast %29 : vector<12x16xf32> to vector<12x16x1xf32>
    %31 = tpu.reciprocal %30 {approx = true} : vector<12x16x1xf32> -> vector<12x16x1xf32>
    %32 = vector.broadcast %31 : vector<12x16x1xf32> to vector<12x16x16xf32>
    %33 = arith.mulf %28, %32 : vector<12x16x16xf32>
    %34 = arith.truncf %33 : vector<12x16x16xf32> to vector<12x16x16xbf16>
    %35 = arith.truncf %20 : vector<12x16x8xf32> to vector<12x16x8xbf16>
    "tpu.trace_start"() <{level = 10 : i32, message = "hqk,hkd->hqd"}> : () -> ()
    %cst_22 = arith.constant dense<0.000000e+00> : vector<12x16x8xf32>
    %36 = tpu.matmul %34, %35, %cst_22 {dimension_numbers = #tpu.dot_dimension_numbers<[2], [1], [1], [2], [0, 0, 0, 1, 1, 2], [0], [0]>} : vector<12x16x16xbf16>, vector<12x16x8xbf16>, vector<12x16x8xf32> -> vector<12x16x8xf32>
    "tpu.trace_stop"() : () -> ()
    %37 = vector.extract_strided_slice %36 {offsets = [0, 0, 0], sizes = [1, 16, 8], strides = [1, 1, 1]} : vector<12x16x8xf32> to vector<1x16x8xf32>
    %38 = vector.shape_cast %37 : vector<1x16x8xf32> to vector<16x8xf32>
    %39 = vector.extract_strided_slice %36 {offsets = [1, 0, 0], sizes = [1, 16, 8], strides = [1, 1, 1]} : vector<12x16x8xf32> to vector<1x16x8xf32>
    %40 = vector.shape_cast %39 : vector<1x16x8xf32> to vector<16x8xf32>
    %41 = vector.extract_strided_slice %36 {offsets = [2, 0, 0], sizes = [1, 16, 8], strides = [1, 1, 1]} : vector<12x16x8xf32> to vector<1x16x8xf32>
    %42 = vector.shape_cast %41 : vector<1x16x8xf32> to vector<16x8xf32>
    %43 = vector.extract_strided_slice %36 {offsets = [3, 0, 0], sizes = [1, 16, 8], strides = [1, 1, 1]} : vector<12x16x8xf32> to vector<1x16x8xf32>
    %44 = vector.shape_cast %43 : vector<1x16x8xf32> to vector<16x8xf32>
    %45 = vector.extract_strided_slice %36 {offsets = [4, 0, 0], sizes = [1, 16, 8], strides = [1, 1, 1]} : vector<12x16x8xf32> to vector<1x16x8xf32>
    %46 = vector.shape_cast %45 : vector<1x16x8xf32> to vector<16x8xf32>
    %47 = vector.extract_strided_slice %36 {offsets = [5, 0, 0], sizes = [1, 16, 8], strides = [1, 1, 1]} : vector<12x16x8xf32> to vector<1x16x8xf32>
    %48 = vector.shape_cast %47 : vector<1x16x8xf32> to vector<16x8xf32>
    %49 = vector.extract_strided_slice %36 {offsets = [6, 0, 0], sizes = [1, 16, 8], strides = [1, 1, 1]} : vector<12x16x8xf32> to vector<1x16x8xf32>
    %50 = vector.shape_cast %49 : vector<1x16x8xf32> to vector<16x8xf32>
    %51 = vector.extract_strided_slice %36 {offsets = [7, 0, 0], sizes = [1, 16, 8], strides = [1, 1, 1]} : vector<12x16x8xf32> to vector<1x16x8xf32>
    %52 = vector.shape_cast %51 : vector<1x16x8xf32> to vector<16x8xf32>
    %53 = vector.extract_strided_slice %36 {offsets = [8, 0, 0], sizes = [1, 16, 8], strides = [1, 1, 1]} : vector<12x16x8xf32> to vector<1x16x8xf32>
    %54 = vector.shape_cast %53 : vector<1x16x8xf32> to vector<16x8xf32>
    %55 = vector.extract_strided_slice %36 {offsets = [9, 0, 0], sizes = [1, 16, 8], strides = [1, 1, 1]} : vector<12x16x8xf32> to vector<1x16x8xf32>
    %56 = vector.shape_cast %55 : vector<1x16x8xf32> to vector<16x8xf32>
    %57 = vector.extract_strided_slice %36 {offsets = [10, 0, 0], sizes = [1, 16, 8], strides = [1, 1, 1]} : vector<12x16x8xf32> to vector<1x16x8xf32>
    %58 = vector.shape_cast %57 : vector<1x16x8xf32> to vector<16x8xf32>
    %59 = vector.extract_strided_slice %36 {offsets = [11, 0, 0], sizes = [1, 16, 8], strides = [1, 1, 1]} : vector<12x16x8xf32> to vector<1x16x8xf32>
    %60 = vector.shape_cast %59 : vector<1x16x8xf32> to vector<16x8xf32>
    %61 = tpu.concatenate %38, %40, %42, %44, %46, %48, %50, %52, %54, %56, %58, %60 in 1 : vector<16x8xf32>, vector<16x8xf32>, vector<16x8xf32>, vector<16x8xf32>, vector<16x8xf32>, vector<16x8xf32>, vector<16x8xf32>, vector<16x8xf32>, vector<16x8xf32>, vector<16x8xf32>, vector<16x8xf32>, vector<16x8xf32> -> vector<16x96xf32>
    %62 = arith.truncf %61 : vector<16x96xf32> to vector<16x96xbf16>
    %c0_23 = arith.constant 0 : index
    %c0_24 = arith.constant 0 : index
    %63 = vector.load %arg7[%c0_23, %c0_24] : memref<96x128xbf16, #tpu.memory_space<vmem>>, vector<96x128xbf16>
    %cst_25 = arith.constant dense<0.000000e+00> : vector<16x128xf32>
    %64 = tpu.matmul %62, %63, %cst_25 {dimension_numbers = #tpu.dot_dimension_numbers<[1], [0], [0], [1], [0, 0, 1, 1], [], []>} : vector<16x96xbf16>, vector<96x128xbf16>, vector<16x128xf32> -> vector<16x128xf32>
    %c0_26 = arith.constant 0 : index
    %c0_27 = arith.constant 0 : index
    %65 = vector.load %arg8[%c0_26, %c0_27] : memref<1x128xf32, #tpu.memory_space<vmem>>, vector<1x128xf32>
    %66 = vector.broadcast %65 : vector<1x128xf32> to vector<16x128xf32>
    %67 = arith.addf %64, %66 : vector<16x128xf32>
    %c0_28 = arith.constant 0 : index
    %c0_29 = arith.constant 0 : index
    %c0_30 = arith.constant 0 : index
    %68 = vector.load %arg9[%c0_28, %c0_29, %c0_30] : memref<1x16x128xf32, #tpu.memory_space<vmem>>, vector<1x16x128xf32>
    %69 = vector.shape_cast %68 : vector<1x16x128xf32> to vector<16x128xf32>
    %70 = vector.shape_cast %67 : vector<16x128xf32> to vector<1x16x128xf32>
    tpu.vector_store %arg9[%c0_28, %c0_29, %c0_30], %70 {strides = array<i32>} : memref<1x16x128xf32, #tpu.memory_space<vmem>>, vector<1x16x128xf32>,
    return
  }
  func.func @transform_0(%arg0: i32) -> (i32, i32, i32) {
    %c0_i32 = arith.constant 0 : i32
    %c0_i32_0 = arith.constant 0 : i32
    %c0_i32_1 = arith.constant 0 : i32
    return %arg0, %c0_i32, %c0_i32_0 : i32, i32, i32
  }
  func.func @transform_1(%arg0: i32) -> (i32, i32, i32) {
    %c0_i32 = arith.constant 0 : i32
    %c0_i32_0 = arith.constant 0 : i32
    %c0_i32_1 = arith.constant 0 : i32
    return %arg0, %c0_i32, %c0_i32_0 : i32, i32, i32
  }
  func.func @transform_2(%arg0: i32) -> (i32, i32, i32) {
    %c0_i32 = arith.constant 0 : i32
    %c0_i32_0 = arith.constant 0 : i32
    %c0_i32_1 = arith.constant 0 : i32
    return %arg0, %c0_i32, %c0_i32_0 : i32, i32, i32
  }
  func.func @transform_3(%arg0: i32) -> (i32, i32, i32) {
    %c0_i32 = arith.constant 0 : i32
    %c0_i32_0 = arith.constant 0 : i32
    %c0_i32_1 = arith.constant 0 : i32
    %c0_i32_2 = arith.constant 0 : i32
    return %c0_i32, %c0_i32_0, %c0_i32_1 : i32, i32, i32
  }
  func.func @transform_4(%arg0: i32) -> (i32, i32, i32) {
    %c0_i32 = arith.constant 0 : i32
    %c0_i32_0 = arith.constant 0 : i32
    %c0_i32_1 = arith.constant 0 : i32
    %c0_i32_2 = arith.constant 0 : i32
    return %c0_i32, %c0_i32_0, %c0_i32_1 : i32, i32, i32
  }
  func.func @transform_5(%arg0: i32) -> (i32, i32, i32) {
    %c0_i32 = arith.constant 0 : i32
    %c0_i32_0 = arith.constant 0 : i32
    %c0_i32_1 = arith.constant 0 : i32
    %c0_i32_2 = arith.constant 0 : i32
    return %c0_i32, %c0_i32_0, %c0_i32_1 : i32, i32, i32
  }
  func.func @transform_6(%arg0: i32) -> (i32, i32) {
    %c0_i32 = arith.constant 0 : i32
    %c0_i32_0 = arith.constant 0 : i32
    %c0_i32_1 = arith.constant 0 : i32
    return %c0_i32, %c0_i32_0 : i32, i32
  }
  func.func @transform_7(%arg0: i32) -> (i32, i32) {
    %c0_i32 = arith.constant 0 : i32
    %c0_i32_0 = arith.constant 0 : i32
    %c0_i32_1 = arith.constant 0 : i32
    return %c0_i32, %c0_i32_0 : i32, i32
  }
  func.func @transform_8(%arg0: i32) -> (i32, i32, i32) {
    %c0_i32 = arith.constant 0 : i32
    %c0_i32_0 = arith.constant 0 : i32
    %c0_i32_1 = arith.constant 0 : i32
    return %arg0, %c0_i32, %c0_i32_0 : i32, i32, i32
  }
}

</mosaic_0001>

<bundles_post_ra>
// kernel: multi_head_attention.1
= control target key start
LH: loop header
LB: loop body
LE: loop exit
PB: predicated region body
PF: predicated region fallthrough
CT: control target
= control target key end

     0   :  { %13 = vsyncpa [#allocation3], 0  ;;  %s10191_s0 = inlined_call_operand.vmem [shape: bf16[2,16,128], index: 0, kind: input, shape index: {}]   ;;  %s10192_s1 = inlined_call_operand.vmem [shape: bf16[2,16,128], index: 1, kind: input, shape index: {}]   ;;  %s10193_s2 = inlined_call_operand.vmem [shape: bf16[2,16,128], index: 2, kind: input, shape index: {}]   ;;  %s10194_s3 = inlined_call_operand.vmem [shape: bf16[12,128,8], index: 3, kind: input, shape index: {}]   ;;  %s10195_s4 = inlined_call_operand.vmem [shape: bf16[12,128,8], index: 4, kind: input, shape index: {}]   ;;  %s10196_s5 = inlined_call_operand.vmem [shape: bf16[12,128,8], index: 5, kind: input, shape index: {}]   ;;  %s10197_s6 = inlined_call_operand.vmem [shape: bf16[96,128], index: 6, kind: input, shape index: {}]   ;;  %s10198_s7 = inlined_call_operand.vmem [shape: f32[1,128], index: 7, kind: input, shape index: {}]   ;;  %s10199_s8 = inlined_call_operand.hbm [shape: f32[2,16,128], index: 8, kind: output, shape index: {}]  }
   0x1   :  { %15 = vsyncpa [#allocation3 + $0x1], 0  ;;  %s8103_s27 = smov 0   ;;  %s8105_s28 = smov 0  }
   0x2   :  { %s8107_s29 = smov 0   ;;  %s8109_s30 = smov 0  }
   0x3 LB: > { %s8124_s9 = sadd.s32 4294967295, %s8041_s30   ;;  %s5877_s10 = sadd.s32 4294967294, %s8041_s30   ;;  %s8041_s30 = sphi %s8109_s30, %s10219_s30   ;;  %s8037_s29 = sphi %s8107_s29, %s10218_s29   ;;  %s8033_s28 = sphi %s8105_s28, %s10217_s28   ;;  %s8029_s27 = sphi %s8103_s27, %s10216_s27  }
   0x4   : > { %s8128_s11 = sadd.s32 1, %s8041_s30   ;;  %s211_s12 = sadd.s32 1, %s8037_s29 }
   0x5   : > { %s208_s13 = ssub.s32 %s8041_s30, %s8128_s11  ;;  %p221_p0 = scmp.ne.s32.totalorder %s8037_s29, %s8033_s28 }
   0x6   : > { %p209_p1 = scmp.eq.s32.totalorder %s208_s13, 0  ;;  %p222_p2 = scmp.eq.s32.totalorder %s8124_s9, 1 }
   0x7   : > { %p227_p3 = scmp.ne.s32.totalorder %s8033_s28, %s8029_s27  ;;  %p228_p4 = scmp.eq.s32.totalorder %s5877_s10, 1 }
   0x8   : > { %s8139_s14 = scalar_select %p209_p1, %s8037_s29, %s211_s12  }
   0x9   : > { %p8141_p5 = por %p222_p2, %p221_p0  ;;  %p8145_p6 = por %p228_p4, %p227_p3 }
   0xa   : > { %p5880_p7 = scmp.ge.s32.totalorder %s8041_s30, 1  ;;  %p285_p8 = scmp.lt.s32.totalorder %s8041_s30, 3 }
   0xc   : > { %p286_p9 = pnand %p5880_p7, %p285_p8 }
   0xd   : > { %p329_p10 = scmp.lt.s32.totalorder (!%p286_p9), %s8124_s9, 1  ;;  %s8048_s24 = smov (!%p286_p9), 32  }
   0xe   : > { %289 = sbr.rel (%p286_p9) target bundleno = 1697 (0x6a1), region = 52  ;;  %s8050_s18 = smov (!%p286_p9), 48  }
   0xf   : > { %s8055_s17 = smov (!%p286_p9), 88  }
  0x13   : > { %v7587_v0 = vld [vmem:[%s10194_s3 + $0x38] sm:$0xff]   ;;  %v8043_v1 = vmov 0.0   ;;  %v7589_v3 = vld [vmem:[%s10194_s3 + $0x30] sm:$0xff]   ;;  %vm8044_vm0 = vmmov 0   ;;  %v7591_v5 = vld [vmem:[%s10194_s3 + $0x28] sm:$0xff]   ;;  %s330_s13 = scalar_select %p329_p10, %s8124_s9, 1 }
  0x14   : > { %6599 = vmatprep.subr.bf16.mxu0 %v8043_v1  ;;  %6619 = vmatprep.subr.bf16.mxu1 %v8043_v1  ;;  %v7588_v2 = vld [vmem:[%s10194_s3 + $0x78] sm:$0xff]   ;;  %v7590_v4 = vld [vmem:[%s10194_s3 + $0x70] sm:$0xff]   ;;  %v7592_v6 = vld [vmem:[%s10194_s3 + $0x68] sm:$0xff]   ;;  %vm4173_vm1 = vcmask 64512   ;;  %vm4738_vm2 = vcmask 130048   ;;  %vm5647_vm3 = vcmask 195584  }
  0x15   : > { %6600 = vmatpush3.bf16.msra.mxu0 %v7587_v0  ;;  %6635 = vmatprep.mubr.msk.bf16.mxu1 %vm8044_vm0, %v8043_v1  ;;  %v7593_v7 = vld [vmem:[%s10194_s3 + $0x20] sm:$0xff]   ;;  %s8189_s21 = sshll.u32 %s330_s13, 3  ;;  %v7595_v9 = vld [vmem:[%s10194_s3 + $0x18] sm:$0xff]   ;;  %v7597_v11 = vld [vmem:[%s10194_s3 + $0x10] sm:$0xff]   ;;  %s8049_s13 = smov 40   ;;  %vm5650_vm4 = vcmask 261120  }
  0x16   : > { %6620 = vmatpush3.bf16.msra.mxu1 %v7588_v2  ;;  %6601 = vmatprep.subr.bf16.mxu0 %v8043_v1  ;;  %v7594_v8 = vld [vmem:[%s10194_s3 + $0x60] sm:$0xff]   ;;  %v7596_v10 = vld [vmem:[%s10194_s3 + $0x58] sm:$0xff]   ;;  %s8202_s12 = scalar_lea.vmem %s10191_s0, %s8189_s21  ;;  %v7598_v12 = vld [vmem:[%s10194_s3 + $0x50] sm:$0xff]   ;;  %s338_s10 = scalar_lea.vmem %s10192_s1, %s8189_s21  ;;  %vm5653_vm5 = vcmask 326656   ;;  %vm5656_vm6 = vcmask 392192   ;;  %vm5659_vm7 = vcmask 457728  }
  0x17   : > { %6621 = vmatprep.subr.bf16.mxu1 %v8043_v1  ;;  %6615 = vmatprep.mubr.msk.bf16.mxu0 %vm8044_vm0, %v8043_v1  ;;  %v7599_v13 = vld [vmem:[%s10194_s3 + $0x8] sm:$0xff]   ;;  %v7601_v15 = vld [vmem:[%s10194_s3] sm:$0xff]   ;;  %v7604_v18 = vld [vmem:[%s10194_s3 + $0xb8] sm:$0xff]   ;;  %s343_s22 = scalar_lea.vmem %s10193_s2, %s8189_s21  ;;  %s8045_s21 = smov 8   ;;  %vm5662_vm8 = vcmask 523264   ;;  %vm5665_vm9 = vcmask 588800  }
  0x18   : > { %v7600_v14 = vld [vmem:[%s10194_s3 + $0x48] sm:$0xff]   ;;  %v7602_v16 = vld [vmem:[%s10194_s3 + $0x40] sm:$0xff]   ;;  %v7605_v19 = vld [vmem:[%s10194_s3 + $0xf8] sm:$0xff]   ;;  %vm5668_vm10 = vcmask 654336   ;;  %vm5671_vm11 = vcmask 719872   ;;  %vm5730_vm12 = vcmask 785408  }
  0x19   : > { %6602 = vmatpush3.bf16.msra.mxu0 %v7589_v3  ;;  %v8230_v17 = vld [vmem:[%s8202_s12] sm:$0xff]   ;;  %v7606_v20 = vld [vmem:[%s10194_s3 + $0xb0] sm:$0xff]   ;;  %v7608_v22 = vld [vmem:[%s10194_s3 + $0xa8] sm:$0xff]  }
  0x1a   : > { %6622 = vmatpush3.bf16.msra.mxu1 %v7590_v4  ;;  %6603 = vmatprep.subr.bf16.mxu0 %v8043_v1  ;;  %v7607_v21 = vld [vmem:[%s10194_s3 + $0xf0] sm:$0xff]   ;;  %v7609_v23 = vld [vmem:[%s10194_s3 + $0xe8] sm:$0xff]   ;;  %v7610_v24 = vld [vmem:[%s10194_s3 + $0xa0] sm:$0xff]  }
  0x1b   : > { %6623 = vmatprep.subr.bf16.mxu1 %v8043_v1  ;;  %v7611_v25 = vld [vmem:[%s10194_s3 + $0xe0] sm:$0xff]   ;;  %v7612_v26 = vld [vmem:[%s10194_s3 + $0x98] sm:$0xff]   ;;  %v7614_v28 = vld [vmem:[%s10194_s3 + $0x90] sm:$0xff]  }
  0x1c   : > { %v7613_v27 = vld [vmem:[%s10194_s3 + $0xd8] sm:$0xff]   ;;  %v7615_v29 = vld [vmem:[%s10194_s3 + $0xd0] sm:$0xff]   ;;  %v7616_v30 = vld [vmem:[%s10194_s3 + $0x88] sm:$0xff]  }
  0x1d   : > { %6604 = vmatpush3.bf16.msra.mxu0 %v7591_v5  ;;  %v7617_v31 = vld [vmem:[%s10194_s3 + $0xc8] sm:$0xff]   ;;  %v7618_v32 = vld [vmem:[%s10194_s3 + $0x80] sm:$0xff]   ;;  %v7620_v34 = vld [vmem:[%s10194_s3 + $0x138] sm:$0xff]  }
  0x1e   : > { %6624 = vmatpush3.bf16.msra.mxu1 %v7592_v6  ;;  %6605 = vmatprep.subr.bf16.mxu0 %v8043_v1  ;;  %v7619_v33 = vld [vmem:[%s10194_s3 + $0xc0] sm:$0xff]   ;;  %v7621_v35 = vld [vmem:[%s10194_s3 + $0x178] sm:$0xff]   ;;  %v7622_v36 = vld [vmem:[%s10194_s3 + $0x130] sm:$0xff]  }
  0x1f   : > { %6625 = vmatprep.subr.bf16.mxu1 %v8043_v1  ;;  %v7623_v37 = vld [vmem:[%s10194_s3 + $0x170] sm:$0xff]   ;;  %v7624_v38 = vld [vmem:[%s10194_s3 + $0x128] sm:$0xff]   ;;  %v7626_v40 = vld [vmem:[%s10194_s3 + $0x120] sm:$0xff]  }
  0x20   : > { %v7625_v39 = vld [vmem:[%s10194_s3 + $0x168] sm:$0xff]   ;;  %v7627_v41 = vld [vmem:[%s10194_s3 + $0x160] sm:$0xff]   ;;  %v7628_v42 = vld [vmem:[%s10194_s3 + $0x118] sm:$0xff]  }
  0x21   : > { %6606 = vmatpush3.bf16.msra.mxu0 %v7593_v7  ;;  %v7629_v43 = vld [vmem:[%s10194_s3 + $0x158] sm:$0xff]   ;;  %v7630_v44 = vld [vmem:[%s10194_s3 + $0x110] sm:$0xff]   ;;  %v7632_v46 = vld [vmem:[%s10194_s3 + $0x108] sm:$0xff]  }
  0x22   : > { %6626 = vmatpush3.bf16.msra.mxu1 %v7594_v8  ;;  %6607 = vmatprep.subr.bf16.mxu0 %v8043_v1  ;;  %v7631_v45 = vld [vmem:[%s10194_s3 + $0x150] sm:$0xff]   ;;  %v7633_v47 = vld [vmem:[%s10194_s3 + $0x148] sm:$0xff]   ;;  %v7634_v48 = vld [vmem:[%s10194_s3 + $0x100] sm:$0xff]  }
  0x23   : > { %6627 = vmatprep.subr.bf16.mxu1 %v8043_v1  ;;  %v7635_v49 = vld [vmem:[%s10194_s3 + $0x140] sm:$0xff]   ;;  %v7636_v50 = vld [vmem:[%s10194_s3 + $0x1b8] sm:$0xff]   ;;  %v7638_v52 = vld [vmem:[%s10194_s3 + $0x1b0] sm:$0xff]  }
  0x24   : > { %v7637_v51 = vld [vmem:[%s10194_s3 + $0x1f8] sm:$0xff]   ;;  %v7639_v53 = vld [vmem:[%s10194_s3 + $0x1f0] sm:$0xff]   ;;  %v7640_v54 = vld [vmem:[%s10194_s3 + $0x1a8] sm:$0xff]  }
  0x25   : > { %6608 = vmatpush3.bf16.msra.mxu0 %v7595_v9  ;;  %v7641_v55 = vld [vmem:[%s10194_s3 + $0x1e8] sm:$0xff]   ;;  %v7642_v56 = vld [vmem:[%s10194_s3 + $0x1a0] sm:$0xff]   ;;  %v7644_v58 = vld [vmem:[%s10194_s3 + $0x198] sm:$0xff]  }
  0x26   : > { %6628 = vmatpush3.bf16.msra.mxu1 %v7596_v10  ;;  %6609 = vmatprep.subr.bf16.mxu0 %v8043_v1  ;;  %v7643_v57 = vld [vmem:[%s10194_s3 + $0x1e0] sm:$0xff]   ;;  %v7645_v59 = vld [vmem:[%s10194_s3 + $0x1d8] sm:$0xff]   ;;  %v7646_v60 = vld [vmem:[%s10194_s3 + $0x190] sm:$0xff]  }
  0x27   : > { %6629 = vmatprep.subr.bf16.mxu1 %v8043_v1  ;;  %v7647_v61 = vld [vmem:[%s10194_s3 + $0x1d0] sm:$0xff]   ;;  %v7648_v62 = vld [vmem:[%s10194_s3 + $0x188] sm:$0xff]   ;;  %v7650_v0 = vld [vmem:[%s10194_s3 + $0x180] sm:$0xff]  }
  0x28   : > { %v7649_v63 = vld [vmem:[%s10194_s3 + $0x1c8] sm:$0xff]   ;;  %v7651_v2 = vld [vmem:[%s10194_s3 + $0x1c0] sm:$0xff]   ;;  %v7652_v3 = vld [vmem:[%s10194_s3 + $0x238] sm:$0xff]  }
  0x29   : > { %6610 = vmatpush3.bf16.msra.mxu0 %v7597_v11  ;;  %v7653_v4 = vld [vmem:[%s10194_s3 + $0x278] sm:$0xff]   ;;  %v7654_v5 = vld [vmem:[%s10194_s3 + $0x230] sm:$0xff]   ;;  %v7656_v7 = vld [vmem:[%s10194_s3 + $0x228] sm:$0xff]  }
  0x2a   : > { %6630 = vmatpush3.bf16.msra.mxu1 %v7598_v12  ;;  %6611 = vmatprep.subr.bf16.mxu0 %v8043_v1  ;;  %v7655_v6 = vld [vmem:[%s10194_s3 + $0x270] sm:$0xff]   ;;  %v7657_v8 = vld [vmem:[%s10194_s3 + $0x268] sm:$0xff]   ;;  %v7658_v9 = vld [vmem:[%s10194_s3 + $0x220] sm:$0xff]  }
  0x2b   : > { %6631 = vmatprep.subr.bf16.mxu1 %v8043_v1  ;;  %v7659_v10 = vld [vmem:[%s10194_s3 + $0x260] sm:$0xff]   ;;  %v7660_v11 = vld [vmem:[%s10194_s3 + $0x218] sm:$0xff]  }
  0x2c   : > { %v7661_v12 = vld [vmem:[%s10194_s3 + $0x258] sm:$0xff]  }
  0x2d   : > { %6612 = vmatpush3.bf16.msra.mxu0 %v7599_v13  ;;  %v7662_v13 = vld [vmem:[%s10194_s3 + $0x210] sm:$0xff]  }
  0x2e   : > { %6632 = vmatpush3.bf16.msra.mxu1 %v7600_v14  ;;  %6613 = vmatprep.subr.bf16.mxu0 %v8043_v1  ;;  %v7663_v14 = vld [vmem:[%s10194_s3 + $0x250] sm:$0xff]  }
  0x2f   : > { %6633 = vmatprep.subr.bf16.mxu1 %v8043_v1 }
  0x31   : > { %6614 = vmatpush3.bf16.msra.mxu0 %v7601_v15  ;;  %v7664_v15 = vld [vmem:[%s10194_s3 + $0x208] sm:$0xff]  }
  0x32   : > { %6634 = vmatpush3.bf16.msra.mxu1 %v7602_v16  ;;  %6639 = vmatprep.subr.bf16.mxu0 %v8043_v1  ;;  %v7665_v16 = vld [vmem:[%s10194_s3 + $0x248] sm:$0xff]  }
  0x33   : > { %6659 = vmatprep.subr.bf16.mxu1 %v8043_v1 }
  0x34   : > { %6616 = vmatmul.mubr.bf16.vlgmr.msra.gmra.mxu0 %v8230_v17 }
  0x35   : > { %6636 = vmatmul.mubr.bf16.vlgmr.msra.gmra.mxu1 %v8230_v17  ;;  %6640 = vmatpush3.bf16.msra.mxu0 %v7604_v18  ;;  %v7666_v18 = vld [vmem:[%s10194_s3 + $0x200] sm:$0xff]  }
  0x36   : > { %6660 = vmatpush3.bf16.msra.mxu1 %v7605_v19  ;;  %6641 = vmatprep.subr.bf16.mxu0 %v8043_v1  ;;  %v7667_v19 = vld [vmem:[%s10194_s3 + $0x240] sm:$0xff]  }
  0x37   : > { %6661 = vmatprep.subr.bf16.mxu1 %v8043_v1  ;;  %6675 = vmatprep.mubr.msk.bf16.mxu1 %vm8044_vm0, %v8043_v1 }
  0x38   : > { %6655 = vmatprep.mubr.msk.bf16.mxu0 %vm8044_vm0, %v8043_v1 }
  0x39   : > { %6642 = vmatpush3.bf16.msra.mxu0 %v7606_v20  ;;  %v7668_v20 = vld [vmem:[%s10194_s3 + $0x2b8] sm:$0xff]  }
  0x3a   : > { %6662 = vmatpush3.bf16.msra.mxu1 %v7607_v21  ;;  %6643 = vmatprep.subr.bf16.mxu0 %v8043_v1  ;;  %v7669_v21 = vld [vmem:[%s10194_s3 + $0x2f8] sm:$0xff]  }
  0x3b   : > { %6663 = vmatprep.subr.bf16.mxu1 %v8043_v1 }
  0x3d   : > { %6644 = vmatpush3.bf16.msra.mxu0 %v7608_v22  ;;  %v7670_v22 = vld [vmem:[%s10194_s3 + $0x2b0] sm:$0xff]  }
  0x3e   : > { %6664 = vmatpush3.bf16.msra.mxu1 %v7609_v23  ;;  %6645 = vmatprep.subr.bf16.mxu0 %v8043_v1  ;;  %v7671_v23 = vld [vmem:[%s10194_s3 + $0x2f0] sm:$0xff]  }
  0x3f   : > { %6665 = vmatprep.subr.bf16.mxu1 %v8043_v1 }
  0x41   : > { %6646 = vmatpush3.bf16.msra.mxu0 %v7610_v24  ;;  %v7672_v24 = vld [vmem:[%s10194_s3 + $0x2a8] sm:$0xff]  }
  0x42   : > { %6666 = vmatpush3.bf16.msra.mxu1 %v7611_v25  ;;  %6647 = vmatprep.subr.bf16.mxu0 %v8043_v1  ;;  %v7673_v25 = vld [vmem:[%s10194_s3 + $0x2e8] sm:$0xff]  }
  0x43   : > { %6667 = vmatprep.subr.bf16.mxu1 %v8043_v1 }
  0x45   : > { %6648 = vmatpush3.bf16.msra.mxu0 %v7612_v26  ;;  %v7675_v26 = vld [vmem:[%s10194_s3 + $0x2e0] sm:$0xff]  }
  0x46   : > { %6668 = vmatpush3.bf16.msra.mxu1 %v7613_v27  ;;  %6649 = vmatprep.subr.bf16.mxu0 %v8043_v1  ;;  %v7676_v27 = vld [vmem:[%s10194_s3 + $0x298] sm:$0xff]  }
  0x47   : > { %6669 = vmatprep.subr.bf16.mxu1 %v8043_v1 }
  0x49   : > { %6650 = vmatpush3.bf16.msra.mxu0 %v7614_v28  ;;  %v7677_v28 = vld [vmem:[%s10194_s3 + $0x2d8] sm:$0xff]  }
  0x4a   : > { %6670 = vmatpush3.bf16.msra.mxu1 %v7615_v29  ;;  %6651 = vmatprep.subr.bf16.mxu0 %v8043_v1  ;;  %v7678_v29 = vld [vmem:[%s10194_s3 + $0x290] sm:$0xff]  }
  0x4b   : > { %6671 = vmatprep.subr.bf16.mxu1 %v8043_v1 }
  0x4d   : > { %6652 = vmatpush3.bf16.msra.mxu0 %v7616_v30  ;;  %v7679_v30 = vld [vmem:[%s10194_s3 + $0x2d0] sm:$0xff]  }
  0x4e   : > { %6672 = vmatpush3.bf16.msra.mxu1 %v7617_v31  ;;  %6653 = vmatprep.subr.bf16.mxu0 %v8043_v1  ;;  %v7680_v31 = vld [vmem:[%s10194_s3 + $0x288] sm:$0xff]  }
  0x4f   : > { %6673 = vmatprep.subr.bf16.mxu1 %v8043_v1 }
  0x51   : > { %6654 = vmatpush3.bf16.msra.mxu0 %v7618_v32  ;;  %v7681_v32 = vld [vmem:[%s10194_s3 + $0x2c8] sm:$0xff]  }
  0x52   : > { %6674 = vmatpush3.bf16.msra.mxu1 %v7619_v33  ;;  %6679 = vmatprep.subr.bf16.mxu0 %v8043_v1  ;;  %v7682_v33 = vld [vmem:[%s10194_s3 + $0x280] sm:$0xff]  }
  0x53   : > { %6699 = vmatprep.subr.bf16.mxu1 %v8043_v1 }
  0x54   : > { %6656 = vmatmul.mubr.bf16.vlgmr.msra.gmra.mxu0 %v8230_v17 }
  0x55   : > { %6676 = vmatmul.mubr.bf16.vlgmr.msra.gmra.mxu1 %v8230_v17  ;;  %6680 = vmatpush3.bf16.msra.mxu0 %v7620_v34  ;;  %v7683_v34 = vld [vmem:[%s10194_s3 + $0x2c0] sm:$0xff]  }
  0x56   : > { %6700 = vmatpush3.bf16.msra.mxu1 %v7621_v35  ;;  %6681 = vmatprep.subr.bf16.mxu0 %v8043_v1  ;;  %v7684_v35 = vld [vmem:[%s10195_s4 + $0x38] sm:$0xff]  }
  0x57   : > { %6701 = vmatprep.subr.bf16.mxu1 %v8043_v1  ;;  %6715 = vmatprep.mubr.msk.bf16.mxu1 %vm8044_vm0, %v8043_v1 }
  0x58   : > { %6695 = vmatprep.mubr.msk.bf16.mxu0 %vm8044_vm0, %v8043_v1 }
  0x59   : > { %6682 = vmatpush3.bf16.msra.mxu0 %v7622_v36  ;;  %v7685_v36 = vld [vmem:[%s10195_s4 + $0x78] sm:$0xff]  }
  0x5a   : > { %6702 = vmatpush3.bf16.msra.mxu1 %v7623_v37  ;;  %6683 = vmatprep.subr.bf16.mxu0 %v8043_v1  ;;  %v7980_v37 = vld [vmem:[%s8202_s12] sm:$0xff]   ;;  %s8047_s12 = smov 24  }
  0x5b   : > { %6703 = vmatprep.subr.bf16.mxu1 %v8043_v1 }
  0x5d   : > { %6684 = vmatpush3.bf16.msra.mxu0 %v7624_v38  ;;  %v7686_v38 = vld [vmem:[%s10195_s4 + $0x30] sm:$0xff]  }
  0x5e   : > { %6704 = vmatpush3.bf16.msra.mxu1 %v7625_v39  ;;  %6685 = vmatprep.subr.bf16.mxu0 %v8043_v1  ;;  %v7687_v39 = vld [vmem:[%s10195_s4 + $0x70] sm:$0xff]  }
  0x5f   : > { %6705 = vmatprep.subr.bf16.mxu1 %v8043_v1 }
  0x61   : > { %6686 = vmatpush3.bf16.msra.mxu0 %v7626_v40  ;;  %v7688_v40 = vld [vmem:[%s10195_s4 + $0x28] sm:$0xff]  }
  0x62   : > { %6706 = vmatpush3.bf16.msra.mxu1 %v7627_v41  ;;  %6687 = vmatprep.subr.bf16.mxu0 %v8043_v1  ;;  %v7689_v41 = vld [vmem:[%s10195_s4 + $0x68] sm:$0xff]  }
  0x63   : > { %6707 = vmatprep.subr.bf16.mxu1 %v8043_v1 }
  0x65   : > { %6688 = vmatpush3.bf16.msra.mxu0 %v7628_v42  ;;  %v7690_v42 = vld [vmem:[%s10195_s4 + $0x20] sm:$0xff]  }
  0x66   : > { %6708 = vmatpush3.bf16.msra.mxu1 %v7629_v43  ;;  %6689 = vmatprep.subr.bf16.mxu0 %v8043_v1  ;;  %v7691_v43 = vld [vmem:[%s10195_s4 + $0x60] sm:$0xff]  }
  0x67   : > { %6709 = vmatprep.subr.bf16.mxu1 %v8043_v1 }
  0x69   : > { %6690 = vmatpush3.bf16.msra.mxu0 %v7630_v44  ;;  %v7692_v44 = vld [vmem:[%s10195_s4 + $0x18] sm:$0xff]  }
  0x6a   : > { %6710 = vmatpush3.bf16.msra.mxu1 %v7631_v45  ;;  %6691 = vmatprep.subr.bf16.mxu0 %v8043_v1  ;;  %v7693_v45 = vld [vmem:[%s10195_s4 + $0x58] sm:$0xff]  }
  0x6b   : > { %6711 = vmatprep.subr.bf16.mxu1 %v8043_v1 }
  0x6d   : > { %6692 = vmatpush3.bf16.msra.mxu0 %v7632_v46  ;;  %v7694_v46 = vld [vmem:[%s10195_s4 + $0x10] sm:$0xff]  }
  0x6e   : > { %6712 = vmatpush3.bf16.msra.mxu1 %v7633_v47  ;;  %6693 = vmatprep.subr.bf16.mxu0 %v8043_v1  ;;  %v7695_v47 = vld [vmem:[%s10195_s4 + $0x50] sm:$0xff]  }
  0x6f   : > { %6713 = vmatprep.subr.bf16.mxu1 %v8043_v1 }
  0x71   : > { %6694 = vmatpush3.bf16.msra.mxu0 %v7634_v48  ;;  %v7696_v48 = vld [vmem:[%s10195_s4 + $0x8] sm:$0xff]  }
  0x72   : > { %6714 = vmatpush3.bf16.msra.mxu1 %v7635_v49  ;;  %6719 = vmatprep.subr.bf16.mxu0 %v8043_v1  ;;  %v7697_v49 = vld [vmem:[%s10195_s4 + $0x48] sm:$0xff]  }
  0x73   : > { %6739 = vmatprep.subr.bf16.mxu1 %v8043_v1 }
  0x74   : > { %6696 = vmatmul.mubr.bf16.vlgmr.msra.gmra.mxu0 %v8230_v17 }
  0x75   : > { %6716 = vmatmul.mubr.bf16.vlgmr.msra.gmra.mxu1 %v8230_v17  ;;  %6720 = vmatpush3.bf16.msra.mxu0 %v7636_v50  ;;  %v7698_v50 = vld [vmem:[%s10195_s4] sm:$0xff]  }
  0x76   : > { %6740 = vmatpush3.bf16.msra.mxu1 %v7637_v51  ;;  %6721 = vmatprep.subr.bf16.mxu0 %v8043_v1  ;;  %v7699_v51 = vld [vmem:[%s10195_s4 + $0x40] sm:$0xff]  }
  0x77   : > { %6741 = vmatprep.subr.bf16.mxu1 %v8043_v1  ;;  %6755 = vmatprep.mubr.msk.bf16.mxu1 %vm8044_vm0, %v8043_v1 }
  0x78   : > { %6735 = vmatprep.mubr.msk.bf16.mxu0 %vm8044_vm0, %v8043_v1 }
  0x79   : > { %6722 = vmatpush3.bf16.msra.mxu0 %v7638_v52  ;;  %v8659_v52 = vld [vmem:[%s338_s10] sm:$0xff]   ;;  %s8054_s10 = smov 80  }
  0x7a   : > { %6742 = vmatpush3.bf16.msra.mxu1 %v7639_v53  ;;  %6723 = vmatprep.subr.bf16.mxu0 %v8043_v1  ;;  %v7701_v53 = vld [vmem:[%s10195_s4 + $0xb8] sm:$0xff]  }
  0x7b   : > { %6743 = vmatprep.subr.bf16.mxu1 %v8043_v1 }
  0x7d   : > { %6724 = vmatpush3.bf16.msra.mxu0 %v7640_v54  ;;  %v7702_v54 = vld [vmem:[%s10195_s4 + $0xf8] sm:$0xff]  }
  0x7e   : > { %6744 = vmatpush3.bf16.msra.mxu1 %v7641_v55  ;;  %6725 = vmatprep.subr.bf16.mxu0 %v8043_v1  ;;  %v7703_v55 = vld [vmem:[%s10195_s4 + $0xb0] sm:$0xff]  }
  0x7f   : > { %6745 = vmatprep.subr.bf16.mxu1 %v8043_v1 }
  0x81   : > { %6726 = vmatpush3.bf16.msra.mxu0 %v7642_v56  ;;  %v7704_v56 = vld [vmem:[%s10195_s4 + $0xf0] sm:$0xff]  }
  0x82   : > { %6746 = vmatpush3.bf16.msra.mxu1 %v7643_v57  ;;  %6727 = vmatprep.subr.bf16.mxu0 %v8043_v1 }
  0x83   : > { %6747 = vmatprep.subr.bf16.mxu1 %v8043_v1 }
  0x85   : > { %6728 = vmatpush3.bf16.msra.mxu0 %v7644_v58 }
  0x86   : > { %6748 = vmatpush3.bf16.msra.mxu1 %v7645_v59  ;;  %6729 = vmatprep.subr.bf16.mxu0 %v8043_v1 }
  0x87   : > { %6749 = vmatprep.subr.bf16.mxu1 %v8043_v1 }
  0x89   : > { %6730 = vmatpush3.bf16.msra.mxu0 %v7646_v60 }
  0x8a   : > { %6750 = vmatpush3.bf16.msra.mxu1 %v7647_v61  ;;  %6731 = vmatprep.subr.bf16.mxu0 %v8043_v1  ;;  %v7705_v61 = vld [vmem:[%s10195_s4 + $0xa8] sm:$0xff]  }
  0x8b   : > { %6751 = vmatprep.subr.bf16.mxu1 %v8043_v1 }
  0x8d   : > { %6732 = vmatpush3.bf16.msra.mxu0 %v7648_v62  ;;  %v7706_v62 = vld [vmem:[%s10195_s4 + $0xe8] sm:$0xff]  }
  0x8e   : > { %6752 = vmatpush3.bf16.msra.mxu1 %v7649_v63  ;;  %6733 = vmatprep.subr.bf16.mxu0 %v8043_v1 }
  0x8f   : > { %6753 = vmatprep.subr.bf16.mxu1 %v8043_v1 }
  0x91   : > { %6734 = vmatpush3.bf16.msra.mxu0 %v7650_v0 }
  0x92   : > { %6754 = vmatpush3.bf16.msra.mxu1 %v7651_v2  ;;  %6759 = vmatprep.subr.bf16.mxu0 %v8043_v1 }
  0x93   : > { %6779 = vmatprep.subr.bf16.mxu1 %v8043_v1 }
  0x94   : > { %6736 = vmatmul.mubr.bf16.vlgmr.msra.gmra.mxu0 %v8230_v17 }
  0x95   : > { %6756 = vmatmul.mubr.bf16.vlgmr.msra.gmra.mxu1 %v8230_v17  ;;  %6760 = vmatpush3.bf16.msra.mxu0 %v7652_v3 }
  0x96   : > { %6780 = vmatpush3.bf16.msra.mxu1 %v7653_v4  ;;  %6761 = vmatprep.subr.bf16.mxu0 %v8043_v1 }
  0x97   : > { %6781 = vmatprep.subr.bf16.mxu1 %v8043_v1  ;;  %6795 = vmatprep.mubr.msk.bf16.mxu1 %vm8044_vm0, %v8043_v1 }
  0x98   : > { %6775 = vmatprep.mubr.msk.bf16.mxu0 %vm8044_vm0, %v8043_v1 }
  0x99   : > { %6762 = vmatpush3.bf16.msra.mxu0 %v7654_v5 }
  0x9a   : > { %6782 = vmatpush3.bf16.msra.mxu1 %v7655_v6  ;;  %6763 = vmatprep.subr.bf16.mxu0 %v8043_v1  ;;  %v7707_v6 = vld [vmem:[%s10195_s4 + $0xa0] sm:$0xff]  }
  0x9b   : > { %6783 = vmatprep.subr.bf16.mxu1 %v8043_v1 }
  0x9d   : > { %6764 = vmatpush3.bf16.msra.mxu0 %v7656_v7  ;;  %v7708_v7 = vld [vmem:[%s10195_s4 + $0xe0] sm:$0xff]  }
  0x9e   : > { %6784 = vmatpush3.bf16.msra.mxu1 %v7657_v8  ;;  %6765 = vmatprep.subr.bf16.mxu0 %v8043_v1  ;;  %v7709_v8 = vld [vmem:[%s10195_s4 + $0x98] sm:$0xff]  }
  0x9f   : > { %6785 = vmatprep.subr.bf16.mxu1 %v8043_v1 }
  0xa1   : > { %6766 = vmatpush3.bf16.msra.mxu0 %v7658_v9  ;;  %v7710_v9 = vld [vmem:[%s10195_s4 + $0xd8] sm:$0xff]  }
  0xa2   : > { %6786 = vmatpush3.bf16.msra.mxu1 %v7659_v10  ;;  %6767 = vmatprep.subr.bf16.mxu0 %v8043_v1  ;;  %v7711_v10 = vld [vmem:[%s10195_s4 + $0x90] sm:$0xff]  }
  0xa3   : > { %6787 = vmatprep.subr.bf16.mxu1 %v8043_v1 }
  0xa5   : > { %6768 = vmatpush3.bf16.msra.mxu0 %v7660_v11  ;;  %v7712_v11 = vld [vmem:[%s10195_s4 + $0xd0] sm:$0xff]  }
  0xa6   : > { %6788 = vmatpush3.bf16.msra.mxu1 %v7661_v12  ;;  %6769 = vmatprep.subr.bf16.mxu0 %v8043_v1  ;;  %v7713_v12 = vld [vmem:[%s10195_s4 + $0x88] sm:$0xff]  }
  0xa7   : > { %6789 = vmatprep.subr.bf16.mxu1 %v8043_v1 }
  0xa9   : > { %6770 = vmatpush3.bf16.msra.mxu0 %v7662_v13  ;;  %v7714_v13 = vld [vmem:[%s10195_s4 + $0xc8] sm:$0xff]  }
  0xaa   : > { %6790 = vmatpush3.bf16.msra.mxu1 %v7663_v14  ;;  %6771 = vmatprep.subr.bf16.mxu0 %v8043_v1  ;;  %v7715_v14 = vld [vmem:[%s10195_s4 + $0x80] sm:$0xff]  }
  0xab   : > { %6791 = vmatprep.subr.bf16.mxu1 %v8043_v1 }
  0xad   : > { %6772 = vmatpush3.bf16.msra.mxu0 %v7664_v15  ;;  %v7716_v15 = vld [vmem:[%s10195_s4 + $0xc0] sm:$0xff]  }
  0xae   : > { %6792 = vmatpush3.bf16.msra.mxu1 %v7665_v16  ;;  %6773 = vmatprep.subr.bf16.mxu0 %v8043_v1  ;;  %v7717_v16 = vld [vmem:[%s10195_s4 + $0x138] sm:$0xff]  }
  0xaf   : > { %6793 = vmatprep.subr.bf16.mxu1 %v8043_v1 }
  0xb1   : > { %6774 = vmatpush3.bf16.msra.mxu0 %v7666_v18  ;;  %v7718_v18 = vld [vmem:[%s10195_s4 + $0x178] sm:$0xff]  }
  0xb2   : > { %6794 = vmatpush3.bf16.msra.mxu1 %v7667_v19  ;;  %6799 = vmatprep.subr.bf16.mxu0 %v8043_v1  ;;  %v7719_v19 = vld [vmem:[%s10195_s4 + $0x130] sm:$0xff]  }
  0xb3   : > { %6819 = vmatprep.subr.bf16.mxu1 %v8043_v1 }
  0xb4   : > { %6776 = vmatmul.mubr.bf16.vlgmr.msra.gmra.mxu0 %v8230_v17 }
  0xb5   : > { %6796 = vmatmul.mubr.bf16.vlgmr.msra.gmra.mxu1 %v8230_v17  ;;  %6800 = vmatpush3.bf16.msra.mxu0 %v7668_v20  ;;  %v7674_v17 = vld [vmem:[%s10194_s3 + $0x2a0] sm:$0xff]   ;;  %v7720_v20 = vld [vmem:[%s10195_s4 + $0x170] sm:$0xff]  }
  0xb6   : > { %6820 = vmatpush3.bf16.msra.mxu1 %v7669_v21  ;;  %6801 = vmatprep.subr.bf16.mxu0 %v8043_v1 }
  0xb7   : > { %6821 = vmatprep.subr.bf16.mxu1 %v8043_v1  ;;  %6835 = vmatprep.mubr.msk.bf16.mxu1 %vm8044_vm0, %v8043_v1 }
  0xb8   : > { %6815 = vmatprep.mubr.msk.bf16.mxu0 %vm8044_vm0, %v8043_v1 }
  0xb9   : > { %6802 = vmatpush3.bf16.msra.mxu0 %v7670_v22 }
  0xba   : > { %6822 = vmatpush3.bf16.msra.mxu1 %v7671_v23  ;;  %6803 = vmatprep.subr.bf16.mxu0 %v8043_v1 }
  0xbb   : > { %6823 = vmatprep.subr.bf16.mxu1 %v8043_v1 }
  0xbd   : > { %6804 = vmatpush3.bf16.msra.mxu0 %v7672_v24 }
  0xbe   : > { %6824 = vmatpush3.bf16.msra.mxu1 %v7673_v25  ;;  %6805 = vmatprep.subr.bf16.mxu0 %v8043_v1  ;;  %v7721_v25 = vld [vmem:[%s10195_s4 + $0x128] sm:$0xff]  }
  0xbf   : > { %6825 = vmatprep.subr.bf16.mxu1 %v8043_v1 }
  0xc1   : > { %6806 = vmatpush3.bf16.msra.mxu0 %v7674_v17 }
  0xc2   : > { %6826 = vmatpush3.bf16.msra.mxu1 %v7675_v26  ;;  %6807 = vmatprep.subr.bf16.mxu0 %v8043_v1 }
  0xc3   : > { %6827 = vmatprep.subr.bf16.mxu1 %v8043_v1 }
  0xc5   : > { %6808 = vmatpush3.bf16.msra.mxu0 %v7676_v27 }
  0xc6   : > { %6828 = vmatpush3.bf16.msra.mxu1 %v7677_v28  ;;  %6809 = vmatprep.subr.bf16.mxu0 %v8043_v1 }
  0xc7   : > { %6829 = vmatprep.subr.bf16.mxu1 %v8043_v1 }
  0xc9   : > { %6810 = vmatpush3.bf16.msra.mxu0 %v7678_v29  ;;  %v7722_v29 = vld [vmem:[%s10195_s4 + $0x168] sm:$0xff]  }
  0xca   : > { %6830 = vmatpush3.bf16.msra.mxu1 %v7679_v30  ;;  %6811 = vmatprep.subr.bf16.mxu0 %v8043_v1 }
  0xcb   : > { %6831 = vmatprep.subr.bf16.mxu1 %v8043_v1 }
  0xcd   : > { %6812 = vmatpush3.bf16.msra.mxu0 %v7680_v31 }
  0xce   : > { %6832 = vmatpush3.bf16.msra.mxu1 %v7681_v32  ;;  %6813 = vmatprep.subr.bf16.mxu0 %v8043_v1  ;;  %v7723_v32 = vld [vmem:[%s10195_s4 + $0x120] sm:$0xff]  }
  0xcf   : > { %6833 = vmatprep.subr.bf16.mxu1 %v8043_v1 }
  0xd1   : > { %6814 = vmatpush3.bf16.msra.mxu0 %v7682_v33  ;;  %v7724_v33 = vld [vmem:[%s10195_s4 + $0x160] sm:$0xff]  }
  0xd2   : > { %6834 = vmatpush3.bf16.msra.mxu1 %v7683_v34  ;;  %6839 = vmatprep.subr.bf16.mxu0 %v8043_v1  ;;  %v7725_v34 = vld [vmem:[%s10195_s4 + $0x118] sm:$0xff]  }
  0xd3   : > { %6859 = vmatprep.subr.bf16.mxu1 %v8043_v1 }
  0xd4   : > { %6816 = vmatmul.mubr.bf16.vlgmr.msra.gmra.mxu0 %v7980_v37 }
  0xd5   : > { %6836 = vmatmul.mubr.bf16.vlgmr.msra.gmra.mxu1 %v7980_v37  ;;  %6840 = vmatpush3.bf16.msra.mxu0 %v7684_v35  ;;  %v7726_v35 = vld [vmem:[%s10195_s4 + $0x158] sm:$0xff]   ;;  %v7728_v37 = vld [vmem:[%s10195_s4 + $0x150] sm:$0xff]  }
  0xd6   : > { %6860 = vmatpush3.bf16.msra.mxu1 %v7685_v36  ;;  %6841 = vmatprep.subr.bf16.mxu0 %v8043_v1  ;;  %v7727_v36 = vld [vmem:[%s10195_s4 + $0x110] sm:$0xff]  }
  0xd7   : > { %6861 = vmatprep.subr.bf16.mxu1 %v8043_v1  ;;  %6875 = vmatprep.mubr.msk.bf16.mxu1 %vm8044_vm0, %v8043_v1 }
  0xd8   : > { %6855 = vmatprep.mubr.msk.bf16.mxu0 %vm8044_vm0, %v8043_v1 }
  0xd9   : > { %6842 = vmatpush3.bf16.msra.mxu0 %v7686_v38  ;;  %v7729_v38 = vld [vmem:[%s10195_s4 + $0x108] sm:$0xff]  }
  0xda   : > { %6862 = vmatpush3.bf16.msra.mxu1 %v7687_v39  ;;  %6843 = vmatprep.subr.bf16.mxu0 %v8043_v1  ;;  %v7730_v39 = vld [vmem:[%s10195_s4 + $0x148] sm:$0xff]  }
  0xdb   : > { %6863 = vmatprep.subr.bf16.mxu1 %v8043_v1 }
  0xdd   : > { %6844 = vmatpush3.bf16.msra.mxu0 %v7688_v40  ;;  %v7731_v40 = vld [vmem:[%s10195_s4 + $0x100] sm:$0xff]  }
  0xde   : > { %6864 = vmatpush3.bf16.msra.mxu1 %v7689_v41  ;;  %6845 = vmatprep.subr.bf16.mxu0 %v8043_v1  ;;  %v7732_v41 = vld [vmem:[%s10195_s4 + $0x140] sm:$0xff]  }
  0xdf   : > { %6865 = vmatprep.subr.bf16.mxu1 %v8043_v1 }
  0xe1   : > { %6846 = vmatpush3.bf16.msra.mxu0 %v7690_v42  ;;  %v7733_v42 = vld [vmem:[%s10195_s4 + $0x1b8] sm:$0xff]  }
  0xe2   : > { %6866 = vmatpush3.bf16.msra.mxu1 %v7691_v43  ;;  %6847 = vmatprep.subr.bf16.mxu0 %v8043_v1  ;;  %v7734_v43 = vld [vmem:[%s10195_s4 + $0x1f8] sm:$0xff]  }
  0xe3   : > { %6867 = vmatprep.subr.bf16.mxu1 %v8043_v1 }
  0xe5   : > { %6848 = vmatpush3.bf16.msra.mxu0 %v7692_v44 }
  0xe6   : > { %6868 = vmatpush3.bf16.msra.mxu1 %v7693_v45  ;;  %6849 = vmatprep.subr.bf16.mxu0 %v8043_v1 }
  0xe7   : > { %6869 = vmatprep.subr.bf16.mxu1 %v8043_v1 }
  0xe9   : > { %6850 = vmatpush3.bf16.msra.mxu0 %v7694_v46  ;;  %v7735_v46 = vld [vmem:[%s10195_s4 + $0x1b0] sm:$0xff]  }
  0xea   : > { %6870 = vmatpush3.bf16.msra.mxu1 %v7695_v47  ;;  %6851 = vmatprep.subr.bf16.mxu0 %v8043_v1  ;;  %v7736_v47 = vld [vmem:[%s10195_s4 + $0x1f0] sm:$0xff]  }
  0xeb   : > { %6871 = vmatprep.subr.bf16.mxu1 %v8043_v1 }
  0xed   : > { %6852 = vmatpush3.bf16.msra.mxu0 %v7696_v48 }
  0xee   : > { %6872 = vmatpush3.bf16.msra.mxu1 %v7697_v49  ;;  %6853 = vmatprep.subr.bf16.mxu0 %v8043_v1 }
  0xef   : > { %6873 = vmatprep.subr.bf16.mxu1 %v8043_v1 }
  0xf1   : > { %6854 = vmatpush3.bf16.msra.mxu0 %v7698_v50 }
  0xf2   : > { %6874 = vmatpush3.bf16.msra.mxu1 %v7699_v51  ;;  %6879 = vmatprep.subr.bf16.mxu0 %v8043_v1 }
  0xf3   : > { %6899 = vmatprep.subr.bf16.mxu1 %v8043_v1 }
  0xf4   : > { %6856 = vmatmul.mubr.bf16.vlgmr.msra.gmra.mxu0 %v8659_v52  ;;  %v8677_v57 = vpop.f32.mrf.mxu0 }
  0xf5   : > { %v8679_v58 = vpop.f32.mrf.mxu1  ;;  %6876 = vmatmul.mubr.bf16.vlgmr.msra.gmra.mxu1 %v8659_v52  ;;  %6880 = vmatpush3.bf16.msra.mxu0 %v7701_v53  ;;  %v7737_v53 = vld [vmem:[%s10195_s4 + $0x1a8] sm:$0xff]  }
  0xf6   : > { %6900 = vmatpush3.bf16.msra.mxu1 %v7702_v54  ;;  %6881 = vmatprep.subr.bf16.mxu0 %v8043_v1  ;;  %v6617_v59 = vpop.f32.mrf.mxu0 }
  0xf7   : > { %v6637_v60 = vpop.f32.mrf.mxu1  ;;  %6901 = vmatprep.subr.bf16.mxu1 %v8043_v1  ;;  %6915 = vmatprep.mubr.msk.bf16.mxu1 %vm8044_vm0, %v8043_v1 }
  0xf8   : > { %v8692_v63 = vpop.f32.mrf.mxu0  ;;  %6895 = vmatprep.mubr.msk.bf16.mxu0 %vm8044_vm0, %v8043_v1 }
  0xf9   : > { %v8696_v0 = vpop.f32.mrf.mxu1  ;;  %6882 = vmatpush3.bf16.msra.mxu0 %v7703_v55  ;;  %v4161_v2 = vpack.c.bf16 %v8692_v63, %v8677_v57 }
  0xfa   : > { %v4162_v3 = vpack.c.bf16 %v8696_v0, %v8679_v58  ;;  %6902 = vmatpush3.bf16.msra.mxu1 %v7704_v56  ;;  %6883 = vmatprep.subr.bf16.mxu0 %v8043_v1  ;;  %v6618_v4 = vpop.f32.mrf.mxu0  ;;  %v7738_v56 = vld [vmem:[%s10195_s4 + $0x1e8] sm:$0xff]  }
  0xfb   : > { %v6638_v5 = vpop.f32.mrf.mxu1  ;;  %6903 = vmatprep.subr.bf16.mxu1 %v8043_v1  ;;  %v7741_v4 = vld [vmem:[%s10195_s4 + $0x198] sm:$0xff]  }
  0xfc   : > { %v7742_v5 = vld [vmem:[%s10195_s4 + $0x1d8] sm:$0xff]  }
  0xfd   : > { %6884 = vmatpush3.bf16.msra.mxu0 %v7705_v61  ;;  %v7739_v61 = vld [vmem:[%s10195_s4 + $0x1a0] sm:$0xff]  }
  0xfe   : > { %6904 = vmatpush3.bf16.msra.mxu1 %v7706_v62  ;;  %6885 = vmatprep.subr.bf16.mxu0 %v8043_v1  ;;  %v7740_v62 = vld [vmem:[%s10195_s4 + $0x1e0] sm:$0xff]  }
  0xff   : > { %6905 = vmatprep.subr.bf16.mxu1 %v8043_v1 }
 0x101   : > { %6886 = vmatpush3.bf16.msra.mxu0 %v7707_v6  ;;  %v7743_v6 = vld [vmem:[%s10195_s4 + $0x190] sm:$0xff]  }
 0x102   : > { %6906 = vmatpush3.bf16.msra.mxu1 %v7708_v7  ;;  %6887 = vmatprep.subr.bf16.mxu0 %v8043_v1  ;;  %v7744_v7 = vld [vmem:[%s10195_s4 + $0x1d0] sm:$0xff]  }
 0x103   : > { %6907 = vmatprep.subr.bf16.mxu1 %v8043_v1 }
 0x105   : > { %6888 = vmatpush3.bf16.msra.mxu0 %v7709_v8  ;;  %v7745_v8 = vld [vmem:[%s10195_s4 + $0x188] sm:$0xff]  }
 0x106   : > { %6908 = vmatpush3.bf16.msra.mxu1 %v7710_v9  ;;  %6889 = vmatprep.subr.bf16.mxu0 %v8043_v1  ;;  %v7746_v9 = vld [vmem:[%s10195_s4 + $0x1c8] sm:$0xff]  }
 0x107   : > { %6909 = vmatprep.subr.bf16.mxu1 %v8043_v1 }
 0x109   : > { %6890 = vmatpush3.bf16.msra.mxu0 %v7711_v10  ;;  %v7747_v10 = vld [vmem:[%s10195_s4 + $0x180] sm:$0xff]  }
 0x10a   : > { %6910 = vmatpush3.bf16.msra.mxu1 %v7712_v11  ;;  %6891 = vmatprep.subr.bf16.mxu0 %v8043_v1  ;;  %v7748_v11 = vld [vmem:[%s10195_s4 + $0x1c0] sm:$0xff]  }
 0x10b   : > { %6911 = vmatprep.subr.bf16.mxu1 %v8043_v1 }
 0x10d   : > { %6892 = vmatpush3.bf16.msra.mxu0 %v7713_v12  ;;  %v7749_v12 = vld [vmem:[%s10195_s4 + $0x238] sm:$0xff]  }
 0x10e   : > { %6912 = vmatpush3.bf16.msra.mxu1 %v7714_v13  ;;  %6893 = vmatprep.subr.bf16.mxu0 %v8043_v1  ;;  %v7750_v13 = vld [vmem:[%s10195_s4 + $0x278] sm:$0xff]  }
 0x10f   : > { %6913 = vmatprep.subr.bf16.mxu1 %v8043_v1 }
 0x111   : > { %6894 = vmatpush3.bf16.msra.mxu0 %v7715_v14 }
 0x112   : > { %6914 = vmatpush3.bf16.msra.mxu1 %v7716_v15  ;;  %6919 = vmatprep.subr.bf16.mxu0 %v8043_v1 }
 0x113   : > { %6939 = vmatprep.subr.bf16.mxu1 %v8043_v1 }
 0x114   : > { %6896 = vmatmul.mubr.bf16.vlgmr.msra.gmra.mxu0 %v8659_v52  ;;  %v8759_v21 = vpop.f32.mrf.mxu0 }
 0x115   : > { %v8761_v22 = vpop.f32.mrf.mxu1  ;;  %6916 = vmatmul.mubr.bf16.vlgmr.msra.gmra.mxu1 %v8659_v52  ;;  %6920 = vmatpush3.bf16.msra.mxu0 %v7717_v16  ;;  %v7751_v16 = vld [vmem:[%s10195_s4 + $0x230] sm:$0xff]  }
 0x116   : > { %6940 = vmatpush3.bf16.msra.mxu1 %v7718_v18  ;;  %6921 = vmatprep.subr.bf16.mxu0 %v8043_v1  ;;  %v6657_v23 = vpop.f32.mrf.mxu0  ;;  %v7752_v18 = vld [vmem:[%s10195_s4 + $0x270] sm:$0xff]  }
 0x117   : > { %v6677_v24 = vpop.f32.mrf.mxu1  ;;  %6941 = vmatprep.subr.bf16.mxu1 %v8043_v1  ;;  %6955 = vmatprep.mubr.msk.bf16.mxu1 %vm8044_vm0, %v8043_v1 }
 0x118   : > { %v8771_v17 = vpop.f32.mrf.mxu0  ;;  %6935 = vmatprep.mubr.msk.bf16.mxu0 %vm8044_vm0, %v8043_v1 }
 0x119   : > { %v8775_v26 = vpop.f32.mrf.mxu1  ;;  %6922 = vmatpush3.bf16.msra.mxu0 %v7719_v19  ;;  %v4163_v27 = vpack.c.bf16 %v8771_v17, %v8759_v21 }
 0x11a   : > { %v4164_v28 = vpack.c.bf16 %v8775_v26, %v8761_v22  ;;  %6942 = vmatpush3.bf16.msra.mxu1 %v7720_v20  ;;  %6923 = vmatprep.subr.bf16.mxu0 %v8043_v1  ;;  %v6658_v30 = vpop.f32.mrf.mxu0 }
 0x11b   : > { %v6678_v31 = vpop.f32.mrf.mxu1  ;;  %6943 = vmatprep.subr.bf16.mxu1 %v8043_v1 }
 0x11c   : > { %v7754_v31 = vld [vmem:[%s10195_s4 + $0x268] sm:$0xff]   ;;  %v4319_v0 = vsel %vm4173_vm1, %v4164_v28, 0 }
 0x11d   : > { %6924 = vmatpush3.bf16.msra.mxu0 %v7721_v25  ;;  %v7753_v25 = vld [vmem:[%s10195_s4 + $0x228] sm:$0xff]  }
 0x11e   : > { %6944 = vmatpush3.bf16.msra.mxu1 %v7722_v29  ;;  %6925 = vmatprep.subr.bf16.mxu0 %v8043_v1 }
 0x11f   : > { %6945 = vmatprep.subr.bf16.mxu1 %v8043_v1 }
 0x121   : > { %6926 = vmatpush3.bf16.msra.mxu0 %v7723_v32 }
 0x122   : > { %6946 = vmatpush3.bf16.msra.mxu1 %v7724_v33  ;;  %6927 = vmatprep.subr.bf16.mxu0 %v8043_v1 }
 0x123   : > { %6947 = vmatprep.subr.bf16.mxu1 %v8043_v1 }
 0x125   : > { %6928 = vmatpush3.bf16.msra.mxu0 %v7725_v34  ;;  %v7755_v34 = vld [vmem:[%s10195_s4 + $0x220] sm:$0xff]  }
 0x126   : > { %6948 = vmatpush3.bf16.msra.mxu1 %v7726_v35  ;;  %6929 = vmatprep.subr.bf16.mxu0 %v8043_v1  ;;  %v7756_v35 = vld [vmem:[%s10195_s4 + $0x260] sm:$0xff]  }
 0x127   : > { %6949 = vmatprep.subr.bf16.mxu1 %v8043_v1 }
 0x129   : > { %6930 = vmatpush3.bf16.msra.mxu0 %v7727_v36  ;;  %v7757_v36 = vld [vmem:[%s10195_s4 + $0x218] sm:$0xff]  }
 0x12a   : > { %6950 = vmatpush3.bf16.msra.mxu1 %v7728_v37  ;;  %6931 = vmatprep.subr.bf16.mxu0 %v8043_v1  ;;  %v7758_v37 = vld [vmem:[%s10195_s4 + $0x258] sm:$0xff]  }
 0x12b   : > { %6951 = vmatprep.subr.bf16.mxu1 %v8043_v1 }
 0x12d   : > { %6932 = vmatpush3.bf16.msra.mxu0 %v7729_v38  ;;  %v7759_v38 = vld [vmem:[%s10195_s4 + $0x210] sm:$0xff]  }
 0x12e   : > { %6952 = vmatpush3.bf16.msra.mxu1 %v7730_v39  ;;  %6933 = vmatprep.subr.bf16.mxu0 %v8043_v1  ;;  %v7760_v39 = vld [vmem:[%s10195_s4 + $0x250] sm:$0xff]  }
 0x12f   : > { %6953 = vmatprep.subr.bf16.mxu1 %v8043_v1 }
 0x131   : > { %6934 = vmatpush3.bf16.msra.mxu0 %v7731_v40  ;;  %v7761_v40 = vld [vmem:[%s10195_s4 + $0x208] sm:$0xff]  }
 0x132   : > { %6954 = vmatpush3.bf16.msra.mxu1 %v7732_v41  ;;  %6959 = vmatprep.subr.bf16.mxu0 %v8043_v1  ;;  %v7762_v41 = vld [vmem:[%s10195_s4 + $0x248] sm:$0xff]  }
 0x133   : > { %6979 = vmatprep.subr.bf16.mxu1 %v8043_v1 }
 0x134   : > { %6936 = vmatmul.mubr.bf16.vlgmr.msra.gmra.mxu0 %v8659_v52  ;;  %v8839_v44 = vpop.f32.mrf.mxu0 }
 0x135   : > { %v8841_v45 = vpop.f32.mrf.mxu1  ;;  %6956 = vmatmul.mubr.bf16.vlgmr.msra.gmra.mxu1 %v8659_v52  ;;  %6960 = vmatpush3.bf16.msra.mxu0 %v7733_v42  ;;  %v7763_v42 = vld [vmem:[%s10195_s4 + $0x200] sm:$0xff]  }
 0x136   : > { %6980 = vmatpush3.bf16.msra.mxu1 %v7734_v43  ;;  %6961 = vmatprep.subr.bf16.mxu0 %v8043_v1  ;;  %v6697_v48 = vpop.f32.mrf.mxu0  ;;  %v7764_v43 = vld [vmem:[%s10195_s4 + $0x240] sm:$0xff]  }
 0x137   : > { %v6717_v49 = vpop.f32.mrf.mxu1  ;;  %6981 = vmatprep.subr.bf16.mxu1 %v8043_v1  ;;  %6995 = vmatprep.mubr.msk.bf16.mxu1 %vm8044_vm0, %v8043_v1 }
 0x138   : > { %v8854_v50 = vpop.f32.mrf.mxu0  ;;  %6975 = vmatprep.mubr.msk.bf16.mxu0 %vm8044_vm0, %v8043_v1 }
 0x139   : > { %v8858_v51 = vpop.f32.mrf.mxu1  ;;  %6962 = vmatpush3.bf16.msra.mxu0 %v7735_v46  ;;  %v4165_v54 = vpack.c.bf16 %v8854_v50, %v8839_v44  ;;  %v7765_v46 = vld [vmem:[%s10195_s4 + $0x2b8] sm:$0xff]  }
 0x13a   : > { %6982 = vmatpush3.bf16.msra.mxu1 %v7736_v47  ;;  %6963 = vmatprep.subr.bf16.mxu0 %v8043_v1  ;;  %v6698_v59 = vpop.f32.mrf.mxu0  ;;  %v7766_v47 = vld [vmem:[%s10195_s4 + $0x2f8] sm:$0xff]   ;;  %v10203_v26 = vpack.c.bf16 %v8858_v51, %v8841_v45 }
 0x13b   : > { %v6718_v60 = vpop.f32.mrf.mxu1  ;;  %6983 = vmatprep.subr.bf16.mxu1 %v8043_v1 }
 0x13c   : > { %v4413_v28 = vsel %vm4173_vm1, %v10203_v26, 0 }
 0x13d   : > { %6964 = vmatpush3.bf16.msra.mxu0 %v7737_v53  ;;  %v7767_v53 = vld [vmem:[%s10195_s4 + $0x2b0] sm:$0xff]  }
 0x13e   : > { %6984 = vmatpush3.bf16.msra.mxu1 %v7738_v56  ;;  %6965 = vmatprep.subr.bf16.mxu0 %v8043_v1  ;;  %v7768_v56 = vld [vmem:[%s10195_s4 + $0x2f0] sm:$0xff]  }
 0x13f   : > { %6985 = vmatprep.subr.bf16.mxu1 %v8043_v1 }
 0x141   : > { %6966 = vmatpush3.bf16.msra.mxu0 %v7739_v61 }
 0x142   : > { %6986 = vmatpush3.bf16.msra.mxu1 %v7740_v62  ;;  %6967 = vmatprep.subr.bf16.mxu0 %v8043_v1 }
 0x143   : > { %6987 = vmatprep.subr.bf16.mxu1 %v8043_v1 }
 0x145   : > { %6968 = vmatpush3.bf16.msra.mxu0 %v7741_v4  ;;  %v7769_v4 = vld [vmem:[%s10195_s4 + $0x2a8] sm:$0xff]  }
 0x146   : > { %6988 = vmatpush3.bf16.msra.mxu1 %v7742_v5  ;;  %6969 = vmatprep.subr.bf16.mxu0 %v8043_v1 }
 0x147   : > { %6989 = vmatprep.subr.bf16.mxu1 %v8043_v1 }
 0x149   : > { %6970 = vmatpush3.bf16.msra.mxu0 %v7743_v6  ;;  %v7851_v6 = vld [vmem:[%s10196_s5 + $0x268] sm:$0xff]  }
 0x14a   : > { %6990 = vmatpush3.bf16.msra.mxu1 %v7744_v7  ;;  %6971 = vmatprep.subr.bf16.mxu0 %v8043_v1  ;;  %v7770_v7 = vld [vmem:[%s10195_s4 + $0x2e8] sm:$0xff]  }
 0x14b   : > { %6991 = vmatprep.subr.bf16.mxu1 %v8043_v1 }
 0x14d   : > { %6972 = vmatpush3.bf16.msra.mxu0 %v7745_v8 }
 0x14e   : > { %6992 = vmatpush3.bf16.msra.mxu1 %v7746_v9  ;;  %6973 = vmatprep.subr.bf16.mxu0 %v8043_v1 }
 0x14f   : > { %6993 = vmatprep.subr.bf16.mxu1 %v8043_v1 }
 0x151   : > { %6974 = vmatpush3.bf16.msra.mxu0 %v7747_v10  ;;  %v7771_v10 = vld [vmem:[%s10195_s4 + $0x2a0] sm:$0xff]  }
 0x152   : > { %6994 = vmatpush3.bf16.msra.mxu1 %v7748_v11  ;;  %6999 = vmatprep.subr.bf16.mxu0 %v8043_v1  ;;  %v7772_v11 = vld [vmem:[%s10195_s4 + $0x2e0] sm:$0xff]  }
 0x153   : > { %7019 = vmatprep.subr.bf16.mxu1 %v8043_v1 }
 0x154   : > { %6976 = vmatmul.mubr.bf16.vlgmr.msra.gmra.mxu0 %v8659_v52  ;;  %v8921_v14 = vpop.f32.mrf.mxu0 }
 0x155   : > { %v8923_v15 = vpop.f32.mrf.mxu1  ;;  %6996 = vmatmul.mubr.bf16.vlgmr.msra.gmra.mxu1 %v8659_v52  ;;  %7000 = vmatpush3.bf16.msra.mxu0 %v7749_v12  ;;  %v7773_v12 = vld [vmem:[%s10195_s4 + $0x298] sm:$0xff]  }
 0x156   : > { %7020 = vmatpush3.bf16.msra.mxu1 %v7750_v13  ;;  %7001 = vmatprep.subr.bf16.mxu0 %v8043_v1  ;;  %v6737_v19 = vpop.f32.mrf.mxu0  ;;  %v7774_v13 = vld [vmem:[%s10195_s4 + $0x2d8] sm:$0xff]  }
 0x157   : > { %v6757_v20 = vpop.f32.mrf.mxu1  ;;  %7021 = vmatprep.subr.bf16.mxu1 %v8043_v1  ;;  %7035 = vmatprep.mubr.msk.bf16.mxu1 %vm8044_vm0, %v8043_v1  ;;  %v7777_v19 = vld [vmem:[%s10195_s4 + $0x288] sm:$0xff]  }
 0x158   : > { %v8936_v23 = vpop.f32.mrf.mxu0  ;;  %7015 = vmatprep.mubr.msk.bf16.mxu0 %vm8044_vm0, %v8043_v1  ;;  %v7778_v20 = vld [vmem:[%s10195_s4 + $0x2c8] sm:$0xff]  }
 0x159   : > { %v8940_v24 = vpop.f32.mrf.mxu1  ;;  %7002 = vmatpush3.bf16.msra.mxu0 %v7751_v16  ;;  %v4167_v29 = vpack.c.bf16 %v8936_v23, %v8921_v14  ;;  %v7775_v16 = vld [vmem:[%s10195_s4 + $0x290] sm:$0xff]  }
 0x15a   : > { %7022 = vmatpush3.bf16.msra.mxu1 %v7752_v18  ;;  %7003 = vmatprep.subr.bf16.mxu0 %v8043_v1  ;;  %v6738_v32 = vpop.f32.mrf.mxu0  ;;  %v7776_v18 = vld [vmem:[%s10195_s4 + $0x2d0] sm:$0xff]   ;;  %v10206_v14 = vpack.c.bf16 %v8940_v24, %v8923_v15 }
 0x15b   : > { %v6758_v33 = vpop.f32.mrf.mxu1  ;;  %7023 = vmatprep.subr.bf16.mxu1 %v8043_v1  ;;  %v7781_v32 = vld [vmem:[%s10196_s5 + $0x38] sm:$0xff]   ;;  %v4460_v58 = vsel %vm4173_vm1, %v4167_v29, 0 }
 0x15c   : > { %v7782_v33 = vld [vmem:[%s10196_s5 + $0x78] sm:$0xff]   ;;  %v4507_v23 = vsel %vm4173_vm1, %v10206_v14, 0 }
 0x15d   : > { %7004 = vmatpush3.bf16.msra.mxu0 %v7753_v25  ;;  %v7779_v25 = vld [vmem:[%s10195_s4 + $0x280] sm:$0xff]  }
 0x15e   : > { %7024 = vmatpush3.bf16.msra.mxu1 %v7754_v31  ;;  %7005 = vmatprep.subr.bf16.mxu0 %v8043_v1  ;;  %v7780_v31 = vld [vmem:[%s10195_s4 + $0x2c0] sm:$0xff]  }
 0x15f   : > { %7025 = vmatprep.subr.bf16.mxu1 %v8043_v1 }
 0x161   : > { %7006 = vmatpush3.bf16.msra.mxu0 %v7755_v34 }
 0x162   : > { %7026 = vmatpush3.bf16.msra.mxu1 %v7756_v35  ;;  %7007 = vmatprep.subr.bf16.mxu0 %v8043_v1 }
 0x163   : > { %7027 = vmatprep.subr.bf16.mxu1 %v8043_v1 }
 0x165   : > { %7008 = vmatpush3.bf16.msra.mxu0 %v7757_v36  ;;  %v7783_v36 = vld [vmem:[%s10196_s5 + $0x30] sm:$0xff]  }
 0x166   : > { %7028 = vmatpush3.bf16.msra.mxu1 %v7758_v37  ;;  %7009 = vmatprep.subr.bf16.mxu0 %v8043_v1  ;;  %v7784_v37 = vld [vmem:[%s10196_s5 + $0x70] sm:$0xff]  }
 0x167   : > { %7029 = vmatprep.subr.bf16.mxu1 %v8043_v1 }
 0x169   : > { %7010 = vmatpush3.bf16.msra.mxu0 %v7759_v38 }
 0x16a   : > { %7030 = vmatpush3.bf16.msra.mxu1 %v7760_v39  ;;  %7011 = vmatprep.subr.bf16.mxu0 %v8043_v1 }
 0x16b   : > { %7031 = vmatprep.subr.bf16.mxu1 %v8043_v1 }
 0x16d   : > { %7012 = vmatpush3.bf16.msra.mxu0 %v7761_v40 }
 0x16e   : > { %7032 = vmatpush3.bf16.msra.mxu1 %v7762_v41  ;;  %7013 = vmatprep.subr.bf16.mxu0 %v8043_v1  ;;  %v7785_v41 = vld [vmem:[%s10196_s5 + $0x28] sm:$0xff]  }
 0x16f   : > { %7033 = vmatprep.subr.bf16.mxu1 %v8043_v1 }
 0x171   : > { %7014 = vmatpush3.bf16.msra.mxu0 %v7763_v42 }
 0x172   : > { %7034 = vmatpush3.bf16.msra.mxu1 %v7764_v43  ;;  %7039 = vmatprep.subr.bf16.mxu0 %v8043_v1 }
 0x173   : > { %7059 = vmatprep.subr.bf16.mxu1 %v8043_v1 }
 0x174   : > { %7016 = vmatmul.mubr.bf16.vlgmr.msra.gmra.mxu0 %v8659_v52  ;;  %v9003_v48 = vpop.f32.mrf.mxu0 }
 0x175   : > { %v9005_v49 = vpop.f32.mrf.mxu1  ;;  %7036 = vmatmul.mubr.bf16.vlgmr.msra.gmra.mxu1 %v8659_v52  ;;  %7040 = vmatpush3.bf16.msra.mxu0 %v7765_v46  ;;  %v7786_v46 = vld [vmem:[%s10196_s5 + $0x68] sm:$0xff]  }
 0x176   : > { %7060 = vmatpush3.bf16.msra.mxu1 %v7766_v47  ;;  %7041 = vmatprep.subr.bf16.mxu0 %v8043_v1  ;;  %v6777_v59 = vpop.f32.mrf.mxu0 }
 0x177   : > { %v6797_v60 = vpop.f32.mrf.mxu1  ;;  %7061 = vmatprep.subr.bf16.mxu1 %v8043_v1  ;;  %7075 = vmatprep.mubr.msk.bf16.mxu1 %vm8044_vm0, %v8043_v1  ;;  %v7788_v59 = vld [vmem:[%s10196_s5 + $0x60] sm:$0xff]  }
 0x178   : > { %v9018_v61 = vpop.f32.mrf.mxu0  ;;  %7055 = vmatprep.mubr.msk.bf16.mxu0 %vm8044_vm0, %v8043_v1  ;;  %v7789_v60 = vld [vmem:[%s10196_s5 + $0x18] sm:$0xff]  }
 0x179   : > { %v9022_v62 = vpop.f32.mrf.mxu1  ;;  %7042 = vmatpush3.bf16.msra.mxu0 %v7767_v53  ;;  %v4169_v5 = vpack.c.bf16 %v9018_v61, %v9003_v48 }
 0x17a   : > { %7062 = vmatpush3.bf16.msra.mxu1 %v7768_v56  ;;  %7043 = vmatprep.subr.bf16.mxu0 %v8043_v1  ;;  %v6778_v8 = vpop.f32.mrf.mxu0  ;;  %v7787_v56 = vld [vmem:[%s10196_s5 + $0x20] sm:$0xff]  }
 0x17b   : > { %v6798_v9 = vpop.f32.mrf.mxu1  ;;  %7063 = vmatprep.subr.bf16.mxu1 %v8043_v1  ;;  %v7792_v8 = vld [vmem:[%s10196_s5 + $0x50] sm:$0xff]  }
 0x17c   : > { %v7793_v9 = vld [vmem:[%s10196_s5 + $0x8] sm:$0xff]  }
 0x17d   : > { %7044 = vmatpush3.bf16.msra.mxu0 %v7769_v4  ;;  %v7790_v4 = vld [vmem:[%s10196_s5 + $0x58] sm:$0xff]  }
 0x17e   : > { %7064 = vmatpush3.bf16.msra.mxu1 %v7770_v7  ;;  %7045 = vmatprep.subr.bf16.mxu0 %v8043_v1  ;;  %v7791_v7 = vld [vmem:[%s10196_s5 + $0x10] sm:$0xff]  }
 0x17f   : > { %7065 = vmatprep.subr.bf16.mxu1 %v8043_v1 }
 0x181   : > { %7046 = vmatpush3.bf16.msra.mxu0 %v7771_v10  ;;  %v7794_v10 = vld [vmem:[%s10196_s5 + $0x48] sm:$0xff]  }
 0x182   : > { %7066 = vmatpush3.bf16.msra.mxu1 %v7772_v11  ;;  %7047 = vmatprep.subr.bf16.mxu0 %v8043_v1  ;;  %v7795_v11 = vld [vmem:[%s10196_s5] sm:$0xff]  }
 0x183   : > { %7067 = vmatprep.subr.bf16.mxu1 %v8043_v1 }
 0x185   : > { %7048 = vmatpush3.bf16.msra.mxu0 %v7773_v12  ;;  %v7796_v12 = vld [vmem:[%s10196_s5 + $0x40] sm:$0xff]  }
 0x186   : > { %7068 = vmatpush3.bf16.msra.mxu1 %v7774_v13  ;;  %7049 = vmatprep.subr.bf16.mxu0 %v8043_v1  ;;  %v9163_v13 = vld [vmem:[%s343_s22] sm:$0xff]   ;;  %s8046_s22 = smov 16  }
 0x187   : > { %7069 = vmatprep.subr.bf16.mxu1 %v8043_v1 }
 0x189   : > { %7050 = vmatpush3.bf16.msra.mxu0 %v7775_v16  ;;  %v7798_v16 = vld [vmem:[%s10196_s5 + $0xb8] sm:$0xff]  }
 0x18a   : > { %7070 = vmatpush3.bf16.msra.mxu1 %v7776_v18  ;;  %7051 = vmatprep.subr.bf16.mxu0 %v8043_v1  ;;  %v7799_v18 = vld [vmem:[%s10196_s5 + $0xf8] sm:$0xff]  }
 0x18b   : > { %7071 = vmatprep.subr.bf16.mxu1 %v8043_v1 }
 0x18d   : > { %7052 = vmatpush3.bf16.msra.mxu0 %v7777_v19 }
 0x18e   : > { %7072 = vmatpush3.bf16.msra.mxu1 %v7778_v20  ;;  %7053 = vmatprep.subr.bf16.mxu0 %v8043_v1 }
 0x18f   : > { %7073 = vmatprep.subr.bf16.mxu1 %v8043_v1 }
 0x191   : > { %7054 = vmatpush3.bf16.msra.mxu0 %v7779_v25  ;;  %v7800_v25 = vld [vmem:[%s10196_s5 + $0xb0] sm:$0xff]  }
 0x192   : > { %7074 = vmatpush3.bf16.msra.mxu1 %v7780_v31  ;;  %7079 = vmatprep.subr.bf16.mxu0 %v8043_v1  ;;  %v7801_v31 = vld [vmem:[%s10196_s5 + $0xf0] sm:$0xff]  }
 0x193   : > { %7099 = vmatprep.subr.bf16.mxu1 %v8043_v1 }
 0x194   : > { %7056 = vmatmul.mubr.bf16.vlgmr.msra.gmra.mxu0 %v8659_v52  ;;  %v9085_v34 = vpop.f32.mrf.mxu0 }
 0x195   : > { %v9087_v35 = vpop.f32.mrf.mxu1  ;;  %7076 = vmatmul.mubr.bf16.vlgmr.msra.gmra.mxu1 %v8659_v52  ;;  %7080 = vmatpush3.bf16.msra.mxu0 %v7781_v32 }
 0x196   : > { %7100 = vmatpush3.bf16.msra.mxu1 %v7782_v33  ;;  %7081 = vmatprep.subr.bf16.mxu0 %v8043_v1  ;;  %v6817_v38 = vpop.f32.mrf.mxu0 }
 0x197   : > { %v6837_v39 = vpop.f32.mrf.mxu1  ;;  %7101 = vmatprep.subr.bf16.mxu1 %v8043_v1  ;;  %7115 = vmatprep.mubr.msk.bf16.mxu1 %vm8044_vm0, %v8043_v1  ;;  %v7802_v38 = vld [vmem:[%s10196_s5 + $0xa8] sm:$0xff]  }
 0x198   : > { %v9100_v52 = vpop.f32.mrf.mxu0  ;;  %7095 = vmatprep.mubr.msk.bf16.mxu0 %vm8044_vm0, %v8043_v1 }
 0x199   : > { %v9104_v40 = vpop.f32.mrf.mxu1  ;;  %7082 = vmatpush3.bf16.msra.mxu0 %v7783_v36  ;;  %v10205_v50 = vpack.c.bf16 %v9100_v52, %v9085_v34 }
 0x19a   : > { %7102 = vmatpush3.bf16.msra.mxu1 %v7784_v37  ;;  %7083 = vmatprep.subr.bf16.mxu0 %v8043_v1  ;;  %v6818_v47 = vpop.f32.mrf.mxu0 }
 0x19b   : > { %v6838_v53 = vpop.f32.mrf.mxu1  ;;  %7103 = vmatprep.subr.bf16.mxu1 %v8043_v1  ;;  %v4648_v51 = vsel %vm4173_vm1, %v10205_v50, 0 }
 0x19d   : > { %7084 = vmatpush3.bf16.msra.mxu0 %v7785_v41 }
 0x19e   : > { %7104 = vmatpush3.bf16.msra.mxu1 %v7786_v46  ;;  %7085 = vmatprep.subr.bf16.mxu0 %v8043_v1  ;;  %v7803_v46 = vld [vmem:[%s10196_s5 + $0xe8] sm:$0xff]  }
 0x19f   : > { %7105 = vmatprep.subr.bf16.mxu1 %v8043_v1 }
 0x1a1   : > { %7086 = vmatpush3.bf16.msra.mxu0 %v7787_v56  ;;  %v7804_v56 = vld [vmem:[%s10196_s5 + $0xa0] sm:$0xff]  }
 0x1a2   : > { %7106 = vmatpush3.bf16.msra.mxu1 %v7788_v59  ;;  %7087 = vmatprep.subr.bf16.mxu0 %v8043_v1  ;;  %v7805_v59 = vld [vmem:[%s10196_s5 + $0xe0] sm:$0xff]  }
 0x1a3   : > { %7107 = vmatprep.subr.bf16.mxu1 %v8043_v1 }
 0x1a5   : > { %7088 = vmatpush3.bf16.msra.mxu0 %v7789_v60  ;;  %v7806_v60 = vld [vmem:[%s10196_s5 + $0x98] sm:$0xff]  }
 0x1a6   : > { %7108 = vmatpush3.bf16.msra.mxu1 %v7790_v4  ;;  %7089 = vmatprep.subr.bf16.mxu0 %v8043_v1  ;;  %v7807_v4 = vld [vmem:[%s10196_s5 + $0xd8] sm:$0xff]  }
 0x1a7   : > { %7109 = vmatprep.subr.bf16.mxu1 %v8043_v1 }
 0x1a9   : > { %7090 = vmatpush3.bf16.msra.mxu0 %v7791_v7  ;;  %v7808_v7 = vld [vmem:[%s10196_s5 + $0x90] sm:$0xff]  }
 0x1aa   : > { %7110 = vmatpush3.bf16.msra.mxu1 %v7792_v8  ;;  %7091 = vmatprep.subr.bf16.mxu0 %v8043_v1  ;;  %v7809_v8 = vld [vmem:[%s10196_s5 + $0xd0] sm:$0xff]  }
 0x1ab   : > { %7111 = vmatprep.subr.bf16.mxu1 %v8043_v1 }
 0x1ad   : > { %7092 = vmatpush3.bf16.msra.mxu0 %v7793_v9  ;;  %v7810_v9 = vld [vmem:[%s10196_s5 + $0x88] sm:$0xff]  }
 0x1ae   : > { %7112 = vmatpush3.bf16.msra.mxu1 %v7794_v10  ;;  %7093 = vmatprep.subr.bf16.mxu0 %v8043_v1  ;;  %v7811_v10 = vld [vmem:[%s10196_s5 + $0xc8] sm:$0xff]  }
 0x1af   : > { %7113 = vmatprep.subr.bf16.mxu1 %v8043_v1 }
 0x1b1   : > { %7094 = vmatpush3.bf16.msra.mxu0 %v7795_v11  ;;  %v7812_v11 = vld [vmem:[%s10196_s5 + $0x80] sm:$0xff]  }
 0x1b2   : > { %7114 = vmatpush3.bf16.msra.mxu1 %v7796_v12  ;;  %7119 = vmatprep.subr.bf16.mxu0 %v8043_v1  ;;  %v7813_v12 = vld [vmem:[%s10196_s5 + $0xc0] sm:$0xff]  }
 0x1b3   : > { %7139 = vmatprep.subr.bf16.mxu1 %v8043_v1 }
 0x1b4   : > { %7096 = vmatmul.mubr.bf16.vlgmr.msra.gmra.mxu0 %v9163_v13  ;;  %v9174_v19 = vpop.f32.mrf.mxu0 }
 0x1b5   : > { %v9176_v20 = vpop.f32.mrf.mxu1  ;;  %7116 = vmatmul.mubr.bf16.vlgmr.msra.gmra.mxu1 %v9163_v13  ;;  %7120 = vmatpush3.bf16.msra.mxu0 %v7798_v16  ;;  %v7814_v16 = vld [vmem:[%s10196_s5 + $0x138] sm:$0xff]  }
 0x1b6   : > { %7140 = vmatpush3.bf16.msra.mxu1 %v7799_v18  ;;  %7121 = vmatprep.subr.bf16.mxu0 %v8043_v1  ;;  %v6857_v32 = vpop.f32.mrf.mxu0  ;;  %v7815_v18 = vld [vmem:[%s10196_s5 + $0x178] sm:$0xff]  }
 0x1b7   : > { %v6877_v33 = vpop.f32.mrf.mxu1  ;;  %7141 = vmatprep.subr.bf16.mxu1 %v8043_v1  ;;  %7155 = vmatprep.mubr.msk.bf16.mxu1 %vm8044_vm0, %v8043_v1  ;;  %v7816_v32 = vld [vmem:[%s10196_s5 + $0x130] sm:$0xff]  }
 0x1b8   : > { %v9189_v36 = vpop.f32.mrf.mxu0  ;;  %7135 = vmatprep.mubr.msk.bf16.mxu0 %vm8044_vm0, %v8043_v1  ;;  %v7817_v33 = vld [vmem:[%s10196_s5 + $0x170] sm:$0xff]  }
 0x1b9   : > { %v9193_v37 = vpop.f32.mrf.mxu1  ;;  %7122 = vmatpush3.bf16.msra.mxu0 %v7800_v25  ;;  %v4149_v39 = vpack.c.bf16 %v9189_v36, %v9174_v19 }
 0x1ba   : > { %v4150_v41 = vpack.c.bf16 %v9193_v37, %v9176_v20  ;;  %7142 = vmatpush3.bf16.msra.mxu1 %v7801_v31  ;;  %7123 = vmatprep.subr.bf16.mxu0 %v8043_v1  ;;  %v6858_v47 = vpop.f32.mrf.mxu0  ;;  %v10208_v20 = vpack.c.bf16 %v9022_v62, %v9005_v49  ;;  %v10210_v49 = vpack.c.bf16 %v9104_v40, %v9087_v35 }
 0x1bb   : > { %v6878_v53 = vpop.f32.mrf.mxu1  ;;  %7143 = vmatprep.subr.bf16.mxu1 %v8043_v1 }
 0x1bc   : > { %v4601_v36 = vsel %vm4173_vm1, %v10208_v20, 0  ;;  %v4695_v62 = vsel %vm4173_vm1, %v10210_v49, 0 }
 0x1bd   : > { %7124 = vmatpush3.bf16.msra.mxu0 %v7802_v38 }
 0x1be   : > { %7144 = vmatpush3.bf16.msra.mxu1 %v7803_v46  ;;  %7125 = vmatprep.subr.bf16.mxu0 %v8043_v1 }
 0x1bf   : > { %7145 = vmatprep.subr.bf16.mxu1 %v8043_v1 }
 0x1c1   : > { %7126 = vmatpush3.bf16.msra.mxu0 %v7804_v56  ;;  %v7818_v56 = vld [vmem:[%s10196_s5 + $0x128] sm:$0xff]  }
 0x1c2   : > { %7146 = vmatpush3.bf16.msra.mxu1 %v7805_v59  ;;  %7127 = vmatprep.subr.bf16.mxu0 %v8043_v1 }
 0x1c3   : > { %7147 = vmatprep.subr.bf16.mxu1 %v8043_v1 }
 0x1c5   : > { %7128 = vmatpush3.bf16.msra.mxu0 %v7806_v60 }
 0x1c6   : > { %7148 = vmatpush3.bf16.msra.mxu1 %v7807_v4  ;;  %7129 = vmatprep.subr.bf16.mxu0 %v8043_v1  ;;  %v7819_v4 = vld [vmem:[%s10196_s5 + $0x168] sm:$0xff]  }
 0x1c7   : > { %7149 = vmatprep.subr.bf16.mxu1 %v8043_v1 }
 0x1c9   : > { %7130 = vmatpush3.bf16.msra.mxu0 %v7808_v7 }
 0x1ca   : > { %7150 = vmatpush3.bf16.msra.mxu1 %v7809_v8  ;;  %7131 = vmatprep.subr.bf16.mxu0 %v8043_v1 }
 0x1cb   : > { %7151 = vmatprep.subr.bf16.mxu1 %v8043_v1 }
 0x1cd   : > { %7132 = vmatpush3.bf16.msra.mxu0 %v7810_v9  ;;  %v7820_v9 = vld [vmem:[%s10196_s5 + $0x120] sm:$0xff]  }
 0x1ce   : > { %7152 = vmatpush3.bf16.msra.mxu1 %v7811_v10  ;;  %7133 = vmatprep.subr.bf16.mxu0 %v8043_v1  ;;  %v7821_v10 = vld [vmem:[%s10196_s5 + $0x160] sm:$0xff]  }
 0x1cf   : > { %7153 = vmatprep.subr.bf16.mxu1 %v8043_v1 }
 0x1d1   : > { %7134 = vmatpush3.bf16.msra.mxu0 %v7812_v11  ;;  %v7822_v11 = vld [vmem:[%s10196_s5 + $0x118] sm:$0xff]  }
 0x1d2   : > { %7154 = vmatpush3.bf16.msra.mxu1 %v7813_v12  ;;  %7159 = vmatprep.subr.bf16.mxu0 %v8043_v1  ;;  %v7823_v12 = vld [vmem:[%s10196_s5 + $0x158] sm:$0xff]  }
 0x1d3   : > { %7179 = vmatprep.subr.bf16.mxu1 %v8043_v1 }
 0x1d4   : > { %7136 = vmatmul.mubr.bf16.vlgmr.msra.gmra.mxu0 %v9163_v13  ;;  %v9256_v25 = vpop.f32.mrf.mxu0 }
 0x1d5   : > { %v9258_v31 = vpop.f32.mrf.mxu1  ;;  %7156 = vmatmul.mubr.bf16.vlgmr.msra.gmra.mxu1 %v9163_v13  ;;  %7160 = vmatpush3.bf16.msra.mxu0 %v7814_v16  ;;  %v7824_v16 = vld [vmem:[%s10196_s5 + $0x110] sm:$0xff]  }
 0x1d6   : > { %7180 = vmatpush3.bf16.msra.mxu1 %v7815_v18  ;;  %7161 = vmatprep.subr.bf16.mxu0 %v8043_v1  ;;  %v6897_v38 = vpop.f32.mrf.mxu0  ;;  %v7825_v18 = vld [vmem:[%s10196_s5 + $0x150] sm:$0xff]  }
 0x1d7   : > { %v6917_v46 = vpop.f32.mrf.mxu1  ;;  %7181 = vmatprep.subr.bf16.mxu1 %v8043_v1  ;;  %7195 = vmatprep.mubr.msk.bf16.mxu1 %vm8044_vm0, %v8043_v1  ;;  %v7828_v38 = vld [vmem:[%s10196_s5 + $0x100] sm:$0xff]  }
 0x1d8   : > { %v9271_v47 = vpop.f32.mrf.mxu0  ;;  %7175 = vmatprep.mubr.msk.bf16.mxu0 %vm8044_vm0, %v8043_v1  ;;  %v7829_v46 = vld [vmem:[%s10196_s5 + $0x140] sm:$0xff]  }
 0x1d9   : > { %v9275_v53 = vpop.f32.mrf.mxu1  ;;  %7162 = vmatpush3.bf16.msra.mxu0 %v7816_v32  ;;  %v4151_v59 = vpack.c.bf16 %v9271_v47, %v9256_v25  ;;  %v7826_v32 = vld [vmem:[%s10196_s5 + $0x108] sm:$0xff]  }
 0x1da   : > { %7182 = vmatpush3.bf16.msra.mxu1 %v7817_v33  ;;  %7163 = vmatprep.subr.bf16.mxu0 %v8043_v1  ;;  %v6898_v7 = vpop.f32.mrf.mxu0  ;;  %v7827_v33 = vld [vmem:[%s10196_s5 + $0x148] sm:$0xff]   ;;  %v10204_v44 = vpack.c.bf16 %v9275_v53, %v9258_v31 }
 0x1db   : > { %v6918_v8 = vpop.f32.mrf.mxu1  ;;  %7183 = vmatprep.subr.bf16.mxu1 %v8043_v1 }
 0x1dd   : > { %7164 = vmatpush3.bf16.msra.mxu0 %v7818_v56  ;;  %v7830_v56 = vld [vmem:[%s10196_s5 + $0x1b8] sm:$0xff]  }
 0x1de   : > { %7184 = vmatpush3.bf16.msra.mxu1 %v7819_v4  ;;  %7165 = vmatprep.subr.bf16.mxu0 %v8043_v1  ;;  %v7831_v4 = vld [vmem:[%s10196_s5 + $0x1f8] sm:$0xff]  }
 0x1df   : > { %7185 = vmatprep.subr.bf16.mxu1 %v8043_v1 }
 0x1e1   : > { %7166 = vmatpush3.bf16.msra.mxu0 %v7820_v9  ;;  %v7832_v9 = vld [vmem:[%s10196_s5 + $0x1b0] sm:$0xff]  }
 0x1e2   : > { %7186 = vmatpush3.bf16.msra.mxu1 %v7821_v10  ;;  %7167 = vmatprep.subr.bf16.mxu0 %v8043_v1  ;;  %v7833_v10 = vld [vmem:[%s10196_s5 + $0x1f0] sm:$0xff]  }
 0x1e3   : > { %7187 = vmatprep.subr.bf16.mxu1 %v8043_v1 }
 0x1e5   : > { %7168 = vmatpush3.bf16.msra.mxu0 %v7822_v11 }
 0x1e6   : > { %7188 = vmatpush3.bf16.msra.mxu1 %v7823_v12  ;;  %7169 = vmatprep.subr.bf16.mxu0 %v8043_v1 }
 0x1e7   : > { %7189 = vmatprep.subr.bf16.mxu1 %v8043_v1 }
 0x1e9   : > { %7170 = vmatpush3.bf16.msra.mxu0 %v7824_v16 }
 0x1ea   : > { %7190 = vmatpush3.bf16.msra.mxu1 %v7825_v18  ;;  %7171 = vmatprep.subr.bf16.mxu0 %v8043_v1 }
 0x1eb   : > { %7191 = vmatprep.subr.bf16.mxu1 %v8043_v1 }
 0x1ed   : > { %7172 = vmatpush3.bf16.msra.mxu0 %v7826_v32  ;;  %v7834_v32 = vld [vmem:[%s10196_s5 + $0x1a8] sm:$0xff]  }
 0x1ee   : > { %7192 = vmatpush3.bf16.msra.mxu1 %v7827_v33  ;;  %7173 = vmatprep.subr.bf16.mxu0 %v8043_v1 }
 0x1ef   : > { %7193 = vmatprep.subr.bf16.mxu1 %v8043_v1 }
 0x1f1   : > { %7174 = vmatpush3.bf16.msra.mxu0 %v7828_v38 }
 0x1f2   : > { %7194 = vmatpush3.bf16.msra.mxu1 %v7829_v46  ;;  %7199 = vmatprep.subr.bf16.mxu0 %v8043_v1  ;;  %v7835_v46 = vld [vmem:[%s10196_s5 + $0x1e8] sm:$0xff]  }
 0x1f3   : > { %7219 = vmatprep.subr.bf16.mxu1 %v8043_v1 }
 0x1f4   : > { %7176 = vmatmul.mubr.bf16.vlgmr.msra.gmra.mxu0 %v9163_v13  ;;  %v9338_v7 = vpop.f32.mrf.mxu0 }
 0x1f5   : > { %v9340_v8 = vpop.f32.mrf.mxu1  ;;  %7196 = vmatmul.mubr.bf16.vlgmr.msra.gmra.mxu1 %v9163_v13  ;;  %7200 = vmatpush3.bf16.msra.mxu0 %v7830_v56 }
 0x1f6   : > { %7220 = vmatpush3.bf16.msra.mxu1 %v7831_v4  ;;  %7201 = vmatprep.subr.bf16.mxu0 %v8043_v1  ;;  %v6937_v11 = vpop.f32.mrf.mxu0 }
 0x1f7   : > { %v6957_v12 = vpop.f32.mrf.mxu1  ;;  %7221 = vmatprep.subr.bf16.mxu1 %v8043_v1  ;;  %7235 = vmatprep.mubr.msk.bf16.mxu1 %vm8044_vm0, %v8043_v1  ;;  %v7838_v11 = vld [vmem:[%s10196_s5 + $0x198] sm:$0xff]  }
 0x1f8   : > { %v9353_v16 = vpop.f32.mrf.mxu0  ;;  %7215 = vmatprep.mubr.msk.bf16.mxu0 %vm8044_vm0, %v8043_v1  ;;  %v7839_v12 = vld [vmem:[%s10196_s5 + $0x1d8] sm:$0xff]  }
 0x1f9   : > { %v9357_v18 = vpop.f32.mrf.mxu1  ;;  %7202 = vmatpush3.bf16.msra.mxu0 %v7832_v9  ;;  %v4153_v33 = vpack.c.bf16 %v9353_v16, %v9338_v7  ;;  %v7836_v9 = vld [vmem:[%s10196_s5 + $0x1a0] sm:$0xff]  }
 0x1fa   : > { %7222 = vmatpush3.bf16.msra.mxu1 %v7833_v10  ;;  %7203 = vmatprep.subr.bf16.mxu0 %v8043_v1  ;;  %v6938_v56 = vpop.f32.mrf.mxu0  ;;  %v7837_v10 = vld [vmem:[%s10196_s5 + $0x1e0] sm:$0xff]   ;;  %v10207_v48 = vpack.c.bf16 %v9357_v18, %v9340_v8 }
 0x1fb   : > { %v6958_v4 = vpop.f32.mrf.mxu1  ;;  %7223 = vmatprep.subr.bf16.mxu1 %v8043_v1  ;;  %v7842_v56 = vld [vmem:[%s10196_s5 + $0x188] sm:$0xff]  }
 0x1fc   : > { %v7843_v4 = vld [vmem:[%s10196_s5 + $0x1c8] sm:$0xff]  }
 0x1fd   : > { %7204 = vmatpush3.bf16.msra.mxu0 %v7834_v32  ;;  %v7840_v32 = vld [vmem:[%s10196_s5 + $0x190] sm:$0xff]  }
 0x1fe   : > { %7224 = vmatpush3.bf16.msra.mxu1 %v7835_v46  ;;  %7205 = vmatprep.subr.bf16.mxu0 %v8043_v1  ;;  %v7841_v46 = vld [vmem:[%s10196_s5 + $0x1d0] sm:$0xff]  }
 0x1ff   : > { %7225 = vmatprep.subr.bf16.mxu1 %v8043_v1 }
 0x201   : > { %7206 = vmatpush3.bf16.msra.mxu0 %v7836_v9  ;;  %v7844_v9 = vld [vmem:[%s10196_s5 + $0x180] sm:$0xff]  }
 0x202   : > { %7226 = vmatpush3.bf16.msra.mxu1 %v7837_v10  ;;  %7207 = vmatprep.subr.bf16.mxu0 %v8043_v1  ;;  %v7845_v10 = vld [vmem:[%s10196_s5 + $0x1c0] sm:$0xff]  }
 0x203   : > { %7227 = vmatprep.subr.bf16.mxu1 %v8043_v1 }
 0x205   : > { %7208 = vmatpush3.bf16.msra.mxu0 %v7838_v11  ;;  %v7846_v11 = vld [vmem:[%s10196_s5 + $0x238] sm:$0xff]  }
 0x206   : > { %7228 = vmatpush3.bf16.msra.mxu1 %v7839_v12  ;;  %7209 = vmatprep.subr.bf16.mxu0 %v8043_v1  ;;  %v7847_v12 = vld [vmem:[%s10196_s5 + $0x278] sm:$0xff]  }
 0x207   : > { %7229 = vmatprep.subr.bf16.mxu1 %v8043_v1 }
 0x209   : > { %7210 = vmatpush3.bf16.msra.mxu0 %v7840_v32 }
 0x20a   : > { %7230 = vmatpush3.bf16.msra.mxu1 %v7841_v46  ;;  %7211 = vmatprep.subr.bf16.mxu0 %v8043_v1 }
 0x20b   : > { %7231 = vmatprep.subr.bf16.mxu1 %v8043_v1 }
 0x20d   : > { %7212 = vmatpush3.bf16.msra.mxu0 %v7842_v56  ;;  %v7848_v56 = vld [vmem:[%s10196_s5 + $0x230] sm:$0xff]  }
 0x20e   : > { %7232 = vmatpush3.bf16.msra.mxu1 %v7843_v4  ;;  %7213 = vmatprep.subr.bf16.mxu0 %v8043_v1  ;;  %v7849_v4 = vld [vmem:[%s10196_s5 + $0x270] sm:$0xff]  }
 0x20f   : > { %7233 = vmatprep.subr.bf16.mxu1 %v8043_v1 }
 0x211   : > { %7214 = vmatpush3.bf16.msra.mxu0 %v7844_v9 }
 0x212   : > { %7234 = vmatpush3.bf16.msra.mxu1 %v7845_v10  ;;  %7239 = vmatprep.subr.bf16.mxu0 %v8043_v1 }
 0x213   : > { %7259 = vmatprep.subr.bf16.mxu1 %v8043_v1 }
 0x214   : > { %7216 = vmatmul.mubr.bf16.vlgmr.msra.gmra.mxu0 %v9163_v13  ;;  %v9420_v32 = vpop.f32.mrf.mxu0 }
 0x215   : > { %v9422_v46 = vpop.f32.mrf.mxu1  ;;  %7236 = vmatmul.mubr.bf16.vlgmr.msra.gmra.mxu1 %v9163_v13  ;;  %7240 = vmatpush3.bf16.msra.mxu0 %v7846_v11 }
 0x216   : > { %7260 = vmatpush3.bf16.msra.mxu1 %v7847_v12  ;;  %7241 = vmatprep.subr.bf16.mxu0 %v8043_v1  ;;  %v6977_v9 = vpop.f32.mrf.mxu0  ;;  %v7850_v12 = vld [vmem:[%s10196_s5 + $0x228] sm:$0xff]  }
 0x217   : > { %v6997_v10 = vpop.f32.mrf.mxu1  ;;  %7261 = vmatprep.subr.bf16.mxu1 %v8043_v1  ;;  %7275 = vmatprep.mubr.msk.bf16.mxu1 %vm8044_vm0, %v8043_v1 }
 0x218   : > { %v9435_v43 = vpop.f32.mrf.mxu0  ;;  %7255 = vmatprep.mubr.msk.bf16.mxu0 %vm8044_vm0, %v8043_v1 }
 0x219   : > { %v9439_v11 = vpop.f32.mrf.mxu1  ;;  %7242 = vmatpush3.bf16.msra.mxu0 %v7848_v56  ;;  %v7852_v56 = vld [vmem:[%s10196_s5 + $0x220] sm:$0xff]   ;;  %v10202_v22 = vpack.c.bf16 %v9435_v43, %v9420_v32 }
 0x21a   : > { %7262 = vmatpush3.bf16.msra.mxu1 %v7849_v4  ;;  %7243 = vmatprep.subr.bf16.mxu0 %v8043_v1  ;;  %v6978_v38 = vpop.f32.mrf.mxu0  ;;  %v7853_v4 = vld [vmem:[%s10196_s5 + $0x260] sm:$0xff]   ;;  %v10209_v37 = vpack.c.bf16 %v9439_v11, %v9422_v46 }
 0x21b   : > { %v6998_v30 = vpop.f32.mrf.mxu1  ;;  %7263 = vmatprep.subr.bf16.mxu1 %v8043_v1  ;;  %v7856_v38 = vld [vmem:[%s10196_s5 + $0x210] sm:$0xff]  }
 0x21c   : > { %v7854_v30 = vld [vmem:[%s10196_s5 + $0x218] sm:$0xff]  }
 0x21d   : > { %7244 = vmatpush3.bf16.msra.mxu0 %v7850_v12  ;;  %v7857_v12 = vld [vmem:[%s10196_s5 + $0x250] sm:$0xff]  }
 0x21e   : > { %7264 = vmatpush3.bf16.msra.mxu1 %v7851_v6  ;;  %7245 = vmatprep.subr.bf16.mxu0 %v8043_v1  ;;  %v7855_v6 = vld [vmem:[%s10196_s5 + $0x258] sm:$0xff]  }
 0x21f   : > { %7265 = vmatprep.subr.bf16.mxu1 %v8043_v1 }
 0x221   : > { %7246 = vmatpush3.bf16.msra.mxu0 %v7852_v56  ;;  %v7858_v56 = vld [vmem:[%s10196_s5 + $0x208] sm:$0xff]  }
 0x222   : > { %7266 = vmatpush3.bf16.msra.mxu1 %v7853_v4  ;;  %7247 = vmatprep.subr.bf16.mxu0 %v8043_v1  ;;  %v7859_v4 = vld [vmem:[%s10196_s5 + $0x248] sm:$0xff]  }
 0x223   : > { %7267 = vmatprep.subr.bf16.mxu1 %v8043_v1 }
 0x225   : > { %7248 = vmatpush3.bf16.msra.mxu0 %v7854_v30  ;;  %v7860_v30 = vld [vmem:[%s10196_s5 + $0x200] sm:$0xff]  }
 0x226   : > { %7268 = vmatpush3.bf16.msra.mxu1 %v7855_v6  ;;  %7249 = vmatprep.subr.bf16.mxu0 %v8043_v1  ;;  %v7861_v6 = vld [vmem:[%s10196_s5 + $0x240] sm:$0xff]  }
 0x227   : > { %7269 = vmatprep.subr.bf16.mxu1 %v8043_v1 }
 0x229   : > { %7250 = vmatpush3.bf16.msra.mxu0 %v7856_v38  ;;  %v7862_v38 = vld [vmem:[%s10196_s5 + $0x2b8] sm:$0xff]  }
 0x22a   : > { %7270 = vmatpush3.bf16.msra.mxu1 %v7857_v12  ;;  %7251 = vmatprep.subr.bf16.mxu0 %v8043_v1  ;;  %v7863_v12 = vld [vmem:[%s10196_s5 + $0x2f8] sm:$0xff]  }
 0x22b   : > { %7271 = vmatprep.subr.bf16.mxu1 %v8043_v1 }
 0x22d   : > { %7252 = vmatpush3.bf16.msra.mxu0 %v7858_v56 }
 0x22e   : > { %7272 = vmatpush3.bf16.msra.mxu1 %v7859_v4  ;;  %7253 = vmatprep.subr.bf16.mxu0 %v8043_v1 }
 0x22f   : > { %7273 = vmatprep.subr.bf16.mxu1 %v8043_v1 }
 0x231   : > { %7254 = vmatpush3.bf16.msra.mxu0 %v7860_v30  ;;  %v7864_v30 = vld [vmem:[%s10196_s5 + $0x2b0] sm:$0xff]  }
 0x232   : > { %7274 = vmatpush3.bf16.msra.mxu1 %v7861_v6  ;;  %7279 = vmatprep.subr.bf16.mxu0 %v8043_v1  ;;  %v7865_v6 = vld [vmem:[%s10196_s5 + $0x2f0] sm:$0xff]  }
 0x233   : > { %7299 = vmatprep.subr.bf16.mxu1 %v8043_v1 }
 0x234   : > { %7256 = vmatmul.mubr.bf16.vlgmr.msra.gmra.mxu0 %v9163_v13  ;;  %v9502_v56 = vpop.f32.mrf.mxu0 }
 0x235   : > { %v9504_v4 = vpop.f32.mrf.mxu1  ;;  %7276 = vmatmul.mubr.bf16.vlgmr.msra.gmra.mxu1 %v9163_v13  ;;  %7280 = vmatpush3.bf16.msra.mxu0 %v7862_v38 }
 0x236   : > { %7300 = vmatpush3.bf16.msra.mxu1 %v7863_v12  ;;  %7281 = vmatprep.subr.bf16.mxu0 %v8043_v1  ;;  %v7017_v10 = vpop.f32.mrf.mxu0  ;;  %v7866_v12 = vld [vmem:[%s10196_s5 + $0x2a8] sm:$0xff]  }
 0x237   : > { %v7037_v42 = vpop.f32.mrf.mxu1  ;;  %7301 = vmatprep.subr.bf16.mxu1 %v8043_v1  ;;  %7295 = vmatprep.mubr.msk.bf16.mxu0 %vm8044_vm0, %v8043_v1  ;;  %v7867_v10 = vld [vmem:[%s10196_s5 + $0x2e8] sm:$0xff]  }
 0x238   : > { %v9517_v60 = vpop.f32.mrf.mxu0  ;;  %7315 = vmatprep.mubr.msk.bf16.mxu1 %vm8044_vm0, %v8043_v1 }
 0x239   : > { %v9521_v38 = vpop.f32.mrf.mxu1  ;;  %7282 = vmatpush3.bf16.msra.mxu0 %v7864_v30  ;;  %v7868_v30 = vld [vmem:[%s10196_s5 + $0x2a0] sm:$0xff]   ;;  %v4157_v45 = vpack.c.bf16 %v9517_v60, %v9502_v56 }
 0x23a   : > { %v4158_v42 = vpack.c.bf16 %v9521_v38, %v9504_v4  ;;  %7302 = vmatpush3.bf16.msra.mxu1 %v7865_v6  ;;  %7283 = vmatprep.subr.bf16.mxu0 %v8043_v1  ;;  %v7018_v55 = vpop.f32.mrf.mxu0  ;;  %v7869_v6 = vld [vmem:[%s10196_s5 + $0x2e0] sm:$0xff]  }
 0x23b   : > { %v7038_v9 = vpop.f32.mrf.mxu1  ;;  %7303 = vmatprep.subr.bf16.mxu1 %v8043_v1  ;;  %v7870_v55 = vld [vmem:[%s10196_s5 + $0x298] sm:$0xff]  }
 0x23c   : > { %v7871_v9 = vld [vmem:[%s10196_s5 + $0x2d8] sm:$0xff]  }
 0x23d   : > { %7284 = vmatpush3.bf16.msra.mxu0 %v7866_v12  ;;  %v7872_v12 = vld [vmem:[%s10196_s5 + $0x290] sm:$0xff]  }
 0x23e   : > { %7304 = vmatpush3.bf16.msra.mxu1 %v7867_v10  ;;  %7285 = vmatprep.subr.bf16.mxu0 %v8043_v1  ;;  %v7873_v10 = vld [vmem:[%s10196_s5 + $0x2d0] sm:$0xff]  }
 0x23f   : > { %7305 = vmatprep.subr.bf16.mxu1 %v8043_v1 }
 0x241   : > { %7286 = vmatpush3.bf16.msra.mxu0 %v7868_v30  ;;  %v7874_v30 = vld [vmem:[%s10196_s5 + $0x288] sm:$0xff]  }
 0x242   : > { %7306 = vmatpush3.bf16.msra.mxu1 %v7869_v6  ;;  %7287 = vmatprep.subr.bf16.mxu0 %v8043_v1  ;;  %v7875_v6 = vld [vmem:[%s10196_s5 + $0x2c8] sm:$0xff]  }
 0x243   : > { %7307 = vmatprep.subr.bf16.mxu1 %v8043_v1 }
 0x245   : > { %7288 = vmatpush3.bf16.msra.mxu0 %v7870_v55  ;;  %v7876_v55 = vld [vmem:[%s10196_s5 + $0x280] sm:$0xff]  }
 0x246   : > { %7308 = vmatpush3.bf16.msra.mxu1 %v7871_v9  ;;  %7289 = vmatprep.subr.bf16.mxu0 %v8043_v1  ;;  %v7877_v9 = vld [vmem:[%s10196_s5 + $0x2c0] sm:$0xff]  }
 0x247   : > { %7309 = vmatprep.subr.bf16.mxu1 %v8043_v1 }
 0x249   : > { %7290 = vmatpush3.bf16.msra.mxu0 %v7872_v12  ;;  %v4272_v12 = vsel %vm4173_vm1, %v4163_v27, 0 }
 0x24a   : > { %7310 = vmatpush3.bf16.msra.mxu1 %v7873_v10  ;;  %7291 = vmatprep.subr.bf16.mxu0 %v8043_v1 }
 0x24b   : > { %7311 = vmatprep.subr.bf16.mxu1 %v8043_v1 }
 0x24d   : > { %7292 = vmatpush3.bf16.msra.mxu0 %v7874_v30  ;;  %v4178_v30 = vsel %vm4173_vm1, %v4161_v2, 0 }
 0x24e   : > { %7312 = vmatpush3.bf16.msra.mxu1 %v7875_v6  ;;  %7293 = vmatprep.subr.bf16.mxu0 %v8043_v1 }
 0x24f   : > { %7313 = vmatprep.subr.bf16.mxu1 %v8043_v1 }
 0x251   : > { %7294 = vmatpush3.bf16.msra.mxu0 %v7876_v55  ;;  %v4225_v55 = vsel %vm4173_vm1, %v4162_v3, 0  ;;  %v4554_v3 = vsel %vm4173_vm1, %v4169_v5, 0 }
 0x252   : > { %7314 = vmatpush3.bf16.msra.mxu1 %v7877_v9  ;;  %7331 = vmatprep.subr.bf16.mxu0 %v8043_v1 }
 0x253   : > { %7319 = vmatprep.subr.bf16.mxu1 %v8043_v1 }
 0x254   : > { %7296 = vmatmul.mubr.bf16.vlgmr.msra.gmra.mxu0 %v9163_v13  ;;  %v9580_v10 = vpop.f32.mrf.mxu0 }
 0x255   : > { %v9586_v6 = vpop.f32.mrf.mxu1  ;;  %7316 = vmatmul.mubr.bf16.vlgmr.msra.gmra.mxu1 %v9163_v13  ;;  %7332 = vmatpush3.bf16.xpose.msra.mxu0 %v4272_v12  ;;  %v4366_v13 = vsel %vm4173_vm1, %v4165_v54, 0 }
 0x256   : > { %7320 = vmatpush3.bf16.xpose.msra.mxu1 %v4178_v30  ;;  %7321 = vmatprep.mubr.msk.bf16.mxu1 %vm8044_vm0, %v8043_v1  ;;  %v7057_v21 = vpop.f32.mrf.mxu0 }
 0x257   : > { %v7077_v17 = vpop.f32.mrf.mxu1  ;;  %7333 = vmatprep.mubr.msk.bf16.mxu0 %vm8044_vm0, %v8043_v1  ;;  %7325 = vmatprep.subr.bf16.mxu1 %v8043_v1 }
 0x258   : > { %7343 = vmatprep.subr.bf16.mxu0 %v8043_v1  ;;  %v2790_v57 = vpop.f32.mrf.mxu0 }
 0x259   : > { %v9595_v63 = vpop.f32.mrf.mxu1  ;;  %v4159_v52 = vpack.c.bf16 %v2790_v57, %v9580_v10 }
 0x25a   : > { %v7058_v2 = vpop.f32.mrf.mxu0 }
 0x25b   : > { %v7078_v27 = vpop.f32.mrf.mxu1 }
 0x25c   : > { %7334 = vmatmul.mubr.msk.bf16.vlgmr.msra.gmra.mxu0 %vm4173_vm1, %v4151_v59 }
 0x25d   : > { %7322 = vmatmul.mubr.msk.bf16.vlgmr.msra.gmra.mxu1 %vm4173_vm1, %v4149_v39  ;;  %7344 = vmatpush3.bf16.xpose.msra.mxu0 %v4366_v13  ;;  %v4160_v39 = vpack.c.bf16 %v9595_v63, %v9586_v6 }
 0x25e   : > { %7326 = vmatpush3.bf16.xpose.msra.mxu1 %v4225_v55  ;;  %7327 = vmatprep.mubr.msk.bf16.mxu1 %vm8044_vm0, %v8043_v1 }
 0x25f   : > { %7345 = vmatprep.mubr.msk.bf16.mxu0 %vm8044_vm0, %v8043_v1  ;;  %7337 = vmatprep.subr.bf16.mxu1 %v8043_v1 }
 0x260   : > { %7355 = vmatprep.subr.bf16.mxu0 %v8043_v1 }
 0x264   : > { %7346 = vmatmul.mubr.msk.bf16.vlgmr.msra.gmra.mxu0 %vm4173_vm1, %v4153_v33 }
 0x265   : > { %7328 = vmatmul.mubr.msk.bf16.vlgmr.msra.gmra.mxu1 %vm4173_vm1, %v4150_v41  ;;  %7356 = vmatpush3.bf16.xpose.msra.mxu0 %v4460_v58 }
 0x266   : > { %7338 = vmatpush3.bf16.xpose.msra.mxu1 %v4319_v0  ;;  %7339 = vmatprep.mubr.msk.bf16.mxu1 %vm8044_vm0, %v8043_v1 }
 0x267   : > { %7357 = vmatprep.mubr.msk.bf16.mxu0 %vm8044_vm0, %v8043_v1  ;;  %7349 = vmatprep.subr.bf16.mxu1 %v8043_v1 }
 0x268   : > { %7367 = vmatprep.subr.bf16.mxu0 %v8043_v1 }
 0x26c   : > { %7358 = vmatmul.mubr.msk.bf16.vlgmr.msra.gmra.mxu0 %vm4173_vm1, %v10202_v22 }
 0x26d   : > { %7340 = vmatmul.mubr.msk.bf16.vlgmr.msra.gmra.mxu1 %vm4173_vm1, %v10204_v44  ;;  %7368 = vmatpush3.bf16.xpose.msra.mxu0 %v4554_v3 }
 0x26e   : > { %7350 = vmatpush3.bf16.xpose.msra.mxu1 %v4413_v28  ;;  %7351 = vmatprep.mubr.msk.bf16.mxu1 %vm8044_vm0, %v8043_v1 }
 0x26f   : > { %7369 = vmatprep.mubr.msk.bf16.mxu0 %vm8044_vm0, %v8043_v1  ;;  %7361 = vmatprep.subr.bf16.mxu1 %v8043_v1 }
 0x270   : > { %7379 = vmatprep.subr.bf16.mxu0 %v8043_v1 }
 0x274   : > { %7370 = vmatmul.mubr.msk.bf16.vlgmr.msra.gmra.mxu0 %vm4173_vm1, %v4157_v45  ;;  %v3163_v54 = vpop.f32.mrf.mxu0 }
 0x275   : > { %v3252_v29 = vpop.f32.mrf.mxu1  ;;  %7352 = vmatmul.mubr.msk.bf16.vlgmr.msra.gmra.mxu1 %vm4173_vm1, %v10207_v48  ;;  %7380 = vmatpush3.bf16.xpose.msra.mxu0 %v4648_v51 }
 0x276   : > { %7362 = vmatpush3.bf16.xpose.msra.mxu1 %v4507_v23  ;;  %7363 = vmatprep.mubr.msk.bf16.mxu1 %vm8044_vm0, %v8043_v1  ;;  %v7097_v61 = vpop.f32.mrf.mxu0 }
 0x277   : > { %v7117_v5 = vpop.f32.mrf.mxu1  ;;  %7381 = vmatprep.mubr.msk.bf16.mxu0 %vm8044_vm0, %v8043_v1  ;;  %7373 = vmatprep.subr.bf16.mxu1 %v8043_v1 }
 0x278   : > { %v3166_v15 = vpop.f32.mrf.mxu0  ;;  %7391 = vmatprep.subr.bf16.mxu0 %v8043_v1 }
 0x279   : > { %v3255_v24 = vpop.f32.mrf.mxu1  ;;  %v5015_v34 = vpack.c.bf16 %v3166_v15, %v3163_v54 }
 0x27a   : > { %v7098_v43 = vpop.f32.mrf.mxu0  ;;  %v5016_v41 = vpack.c.bf16 %v3255_v24, %v3252_v29 }
 0x27b   : > { %v7118_v19 = vpop.f32.mrf.mxu1 }
 0x27c   : > { %7382 = vmatmul.mubr.msk.bf16.vlgmr.msra.gmra.mxu0 %vm4173_vm1, %v4159_v52 }
 0x27d   : > { %7364 = vmatmul.mubr.msk.bf16.vlgmr.msra.gmra.mxu1 %vm4173_vm1, %v10209_v37  ;;  %7392 = vmatpush3.bf16.msra.mxu0 %v5015_v34 }
 0x27e   : > { %7374 = vmatpush3.bf16.xpose.msra.mxu1 %v4601_v36  ;;  %7375 = vmatprep.mubr.msk.bf16.mxu1 %vm8044_vm0, %v8043_v1 }
 0x27f   : > { %7385 = vmatprep.subr.bf16.mxu1 %v8043_v1  ;;  %7393 = vmatprep.mubr.msk.bf16.mxu0 %vm8044_vm0, %v8043_v1 }
 0x280   : > { %7403 = vmatprep.subr.bf16.mxu0 %v8043_v1 }
 0x285   : > { %7376 = vmatmul.mubr.msk.bf16.vlgmr.msra.gmra.mxu1 %vm4173_vm1, %v4158_v42 }
 0x286   : > { %7386 = vmatpush3.bf16.xpose.msra.mxu1 %v4695_v62  ;;  %7387 = vmatprep.mubr.msk.bf16.mxu1 %vm8044_vm0, %v8043_v1 }
 0x287   : > { %7397 = vmatprep.subr.bf16.mxu1 %v8043_v1 }
 0x28d   : > { %7388 = vmatmul.mubr.msk.bf16.vlgmr.msra.gmra.mxu1 %vm4173_vm1, %v4160_v39 }
 0x28e   : > { %7398 = vmatpush3.bf16.msra.mxu1 %v5016_v41  ;;  %7399 = vmatprep.mubr.msk.bf16.mxu1 %vm8044_vm0, %v8043_v1 }
 0x28f   : > { %7409 = vmatprep.subr.bf16.mxu1 %v8043_v1 }
 0x294   : > { %v9717_v35 = vpop.f32.mrf.mxu0 }
 0x295   : > { %v9719_v40 = vpop.f32.mrf.mxu1 }
 0x296   : > { %v7137_v25 = vpop.f32.mrf.mxu0 }
 0x297   : > { %v7157_v31 = vpop.f32.mrf.mxu1 }
 0x298   : > { %v9721_v47 = vpop.f32.mrf.mxu0 }
 0x299   : > { %v9723_v53 = vpop.f32.mrf.mxu1  ;;  %v5017_v59 = vpack.c.bf16 %v9721_v47, %v9717_v35 }
 0x29a   : > { %v5018_v60 = vpack.c.bf16 %v9723_v53, %v9719_v40  ;;  %v7138_v7 = vpop.f32.mrf.mxu0 }
 0x29b   : > { %v7158_v8 = vpop.f32.mrf.mxu1 }
 0x2b4   : > { %v9729_v16 = vpop.f32.mrf.mxu0 }
 0x2b5   : > { %v9731_v18 = vpop.f32.mrf.mxu1 }
 0x2b6   : > { %v7177_v33 = vpop.f32.mrf.mxu0 }
 0x2b7   : > { %v7197_v32 = vpop.f32.mrf.mxu1 }
 0x2b8   : > { %v9733_v46 = vpop.f32.mrf.mxu0 }
 0x2b9   : > { %v9735_v11 = vpop.f32.mrf.mxu1  ;;  %v5019_v56 = vpack.c.bf16 %v9733_v46, %v9729_v16 }
 0x2ba   : > { %v5020_v4 = vpack.c.bf16 %v9735_v11, %v9731_v18  ;;  %v7178_v38 = vpop.f32.mrf.mxu0 }
 0x2bb   : > { %v7198_v42 = vpop.f32.mrf.mxu1 }
 0x2d4   : > { %v9741_v9 = vpop.f32.mrf.mxu0 }
 0x2d5   : > { %v9743_v12 = vpop.f32.mrf.mxu1 }
 0x2d6   : > { %v7217_v10 = vpop.f32.mrf.mxu0 }
 0x2d7   : > { %v7237_v30 = vpop.f32.mrf.mxu1 }
 0x2d8   : > { %v9745_v6 = vpop.f32.mrf.mxu0 }
 0x2d9   : > { %v9747_v21 = vpop.f32.mrf.mxu1  ;;  %v5021_v17 = vpack.c.bf16 %v9745_v6, %v9741_v9 }
 0x2da   : > { %v7218_v63 = vpop.f32.mrf.mxu0  ;;  %v10211_v9 = vpack.c.bf16 %v9747_v21, %v9743_v12 }
 0x2db   : > { %v7238_v2 = vpop.f32.mrf.mxu1 }
 0x2f4   : > { %v9753_v27 = vpop.f32.mrf.mxu0 }
 0x2f5   : > { %v9755_v13 = vpop.f32.mrf.mxu1 }
 0x2f6   : > { %v7257_v55 = vpop.f32.mrf.mxu0 }
 0x2f7   : > { %v7277_v58 = vpop.f32.mrf.mxu1 }
 0x2f8   : > { %v9757_v0 = vpop.f32.mrf.mxu0 }
 0x2f9   : > { %v9759_v3 = vpop.f32.mrf.mxu1  ;;  %v10212_v12 = vpack.c.bf16 %v9757_v0, %v9753_v27 }
 0x2fa   : > { %v7258_v28 = vpop.f32.mrf.mxu0 }
 0x2fb   : > { %v7278_v44 = vpop.f32.mrf.mxu1 }
 0x314   : > { %v9765_v45 = vpop.f32.mrf.mxu0 }
 0x315   : > { %v9767_v50 = vpop.f32.mrf.mxu1 }
 0x316   : > { %v7297_v51 = vpop.f32.mrf.mxu0 }
 0x317   : > { %v7317_v54 = vpop.f32.mrf.mxu1 }
 0x318   : > { %v9769_v14 = vpop.f32.mrf.mxu0 }
 0x319   : > { %v9773_v29 = vpop.f32.mrf.mxu1 }
 0x31a   : > { %v7298_v61 = vpop.f32.mrf.mxu0 }
 0x31b   : > { %v7318_v5 = vpop.f32.mrf.mxu1 }
 0x31c   : > { %v9777_v15 = vpop.f32.mrf.mxu0 }
 0x31d   : > { %v9779_v24 = vpop.f32.mrf.mxu1  ;;  %v4751_v25 = vsel %vm4738_vm2, %v9777_v15, -inf }
 0x31e   : > { %v4739_v34 = vsel %vm4738_vm2, %v9779_v24, -inf  ;;  %v7335_v52 = vpop.f32.mrf.mxu0 }
 0x31f   : > { %4740 = vmax.xlane.f32.xlu0 %v4739_v34  ;;  %v7323_v43 = vpop.f32.mrf.mxu1 }
 0x320   : > { %v9783_v19 = vpop.f32.mrf.mxu0 }
 0x321   : > { %v9785_v20 = vpop.f32.mrf.mxu1  ;;  %v4754_v2 = vsel %vm4738_vm2, %v9783_v19, -inf }
 0x322   : > { %v4742_v36 = vsel %vm4738_vm2, %v9785_v20, -inf  ;;  %v7336_v37 = vpop.f32.mrf.mxu0 }
 0x323   : > { %4743 = vmax.xlane.f32.xlu0 %v4742_v36  ;;  %v7324_v49 = vpop.f32.mrf.mxu1 }
 0x324   : > { %v9789_v62 = vpop.f32.mrf.mxu0 }
 0x325   : > { %v9791_v39 = vpop.f32.mrf.mxu1  ;;  %v4763_v54 = vsel %vm4738_vm2, %v9789_v62, -inf }
 0x326   : > { %v4745_v41 = vsel %vm4738_vm2, %v9791_v39, -inf  ;;  %v7347_v31 = vpop.f32.mrf.mxu0 }
 0x327   : > { %4746 = vmax.xlane.f32.xlu1 %v4745_v41  ;;  %v7329_v7 = vpop.f32.mrf.mxu1  ;;  %4752 = vmax.xlane.f32.xlu0 %v4751_v25 }
 0x328   : > { %v9797_v8 = vpop.f32.mrf.mxu0 }
 0x329   : > { %v9799_v33 = vpop.f32.mrf.mxu1  ;;  %v4766_v36 = vsel %vm4738_vm2, %v9797_v8, -inf }
 0x32a   : > { %v4748_v32 = vsel %vm4738_vm2, %v9799_v33, -inf  ;;  %v7348_v38 = vpop.f32.mrf.mxu0 }
 0x32b   : > { %4749 = vmax.xlane.f32.xlu1 %v4748_v32  ;;  %v7330_v42 = vpop.f32.mrf.mxu1 }
 0x32c   : > { %v9803_v10 = vpop.f32.mrf.mxu0 }
 0x32d   : > { %v9805_v30 = vpop.f32.mrf.mxu1  ;;  %v4775_v7 = vsel %vm4738_vm2, %v9803_v10, -inf }
 0x32e   : > { %v4757_v63 = vsel %vm4738_vm2, %v9805_v30, -inf  ;;  %v7359_v55 = vpop.f32.mrf.mxu0 }
 0x32f   : > { %v7341_v58 = vpop.f32.mrf.mxu1  ;;  %4758 = vmax.xlane.f32.xlu0 %v4757_v63  ;;  %4755 = vmax.xlane.f32.xlu1 %v4754_v2 }
 0x330   : > { %v9811_v28 = vpop.f32.mrf.mxu0 }
 0x331   : > { %v9813_v44 = vpop.f32.mrf.mxu1  ;;  %v4778_v55 = vsel %vm4738_vm2, %v9811_v28, -inf }
 0x332   : > { %v4760_v51 = vsel %vm4738_vm2, %v9813_v44, -inf  ;;  %v7360_v61 = vpop.f32.mrf.mxu0 }
 0x333   : > { %v7342_v5 = vpop.f32.mrf.mxu1  ;;  %4761 = vmax.xlane.f32.xlu1 %v4760_v51  ;;  %4764 = vmax.xlane.f32.xlu0 %v4763_v54 }
 0x334   : > { %v9819_v34 = vpop.f32.mrf.mxu0 }
 0x335   : > { %v9821_v52 = vpop.f32.mrf.mxu1 }
 0x336   : > { %v4769_v43 = vsel %vm4738_vm2, %v9821_v52, -inf  ;;  %v7371_v37 = vpop.f32.mrf.mxu0 }
 0x337   : > { %v7353_v49 = vpop.f32.mrf.mxu1  ;;  %4770 = vmax.xlane.f32.xlu0 %v4769_v43  ;;  %4767 = vmax.xlane.f32.xlu1 %v4766_v36  ;;  %v4787_v43 = vsel %vm4738_vm2, %v9819_v34, -inf }
 0x338   : > { %v9827_v41 = vpop.f32.mrf.mxu0 }
 0x339   : > { %v9829_v25 = vpop.f32.mrf.mxu1 }
 0x33a   : > { %v4772_v31 = vsel %vm4738_vm2, %v9829_v25, -inf  ;;  %v7372_v32 = vpop.f32.mrf.mxu0 }
 0x33b   : > { %v7354_v38 = vpop.f32.mrf.mxu1  ;;  %4773 = vmax.xlane.f32.xlu1 %v4772_v31  ;;  %4776 = vmax.xlane.f32.xlu0 %v4775_v7  ;;  %v4790_v7 = vsel %vm4738_vm2, %v9827_v41, -inf }
 0x33c   : > { %v9835_v42 = vpop.f32.mrf.mxu0 }
 0x33d   : > { %v9837_v63 = vpop.f32.mrf.mxu1 }
 0x33e   : > { %v4781_v2 = vsel %vm4738_vm2, %v9837_v63, -inf  ;;  %v7383_v58 = vpop.f32.mrf.mxu0 }
 0x33f   : > { %v7365_v51 = vpop.f32.mrf.mxu1  ;;  %4782 = vmax.xlane.f32.xlu0 %v4781_v2  ;;  %4779 = vmax.xlane.f32.xlu1 %v4778_v55  ;;  %v4799_v55 = vsel %vm4738_vm2, %v9835_v42, -inf }
 0x340   : > { %v9843_v54 = vpop.f32.mrf.mxu0 }
 0x341   : > { %v9845_v61 = vpop.f32.mrf.mxu1 }
 0x342   : > { %v4784_v5 = vsel %vm4738_vm2, %v9845_v61, -inf  ;;  %v7384_v36 = vpop.f32.mrf.mxu0 }
 0x343   : > { %v7366_v37 = vpop.f32.mrf.mxu1  ;;  %4785 = vmax.xlane.f32.xlu1 %v4784_v5  ;;  %4788 = vmax.xlane.f32.xlu0 %v4787_v43  ;;  %v4802_v43 = vsel %vm4738_vm2, %v9843_v54, -inf }
 0x345   : > { %v9851_v49 = vpop.f32.mrf.mxu1 }
 0x346   : > { %v4793_v31 = vsel %vm4738_vm2, %v9851_v49, -inf }
 0x347   : > { %v7377_v32 = vpop.f32.mrf.mxu1  ;;  %4794 = vmax.xlane.f32.xlu0 %v4793_v31  ;;  %4791 = vmax.xlane.f32.xlu1 %v4790_v7 }
 0x349   : > { %v9857_v38 = vpop.f32.mrf.mxu1 }
 0x34a   : > { %v4796_v2 = vsel %vm4738_vm2, %v9857_v38, -inf }
 0x34b   : > { %v7378_v58 = vpop.f32.mrf.mxu1  ;;  %4797 = vmax.xlane.f32.xlu1 %v4796_v2  ;;  %4800 = vmax.xlane.f32.xlu0 %v4799_v55 }
 0x34d   : > { %v9863_v51 = vpop.f32.mrf.mxu1 }
 0x34e   : > { %v4805_v5 = vsel %vm4738_vm2, %v9863_v51, -inf }
 0x34f   : > { %v7389_v36 = vpop.f32.mrf.mxu1  ;;  %4806 = vmax.xlane.f32.xlu0 %v4805_v5  ;;  %4803 = vmax.xlane.f32.xlu1 %v4802_v43 }
 0x351   : > { %v9869_v37 = vpop.f32.mrf.mxu1 }
 0x352   : > { %v4808_v31 = vsel %vm4738_vm2, %v9869_v37, -inf }
 0x353   : > { %v7390_v7 = vpop.f32.mrf.mxu1  ;;  %4809 = vmax.xlane.f32.xlu1 %v4808_v31 }
 0x3a8   : > { %v4741_v32 = vpop.xlane.xlu0 %4740 }
 0x3a9   : > { %v4811_v2 = vsub.f32 %v9779_v24, %v4741_v32 }
 0x3ab   : > { %v4835_v55 = vmul.f32 1.442695, %v4811_v2 }
 0x3ac   : > { %v4744_v58 = vpop.xlane.xlu0 %4743 }
 0x3ad   : > { %7884 = vpow2.f32 %v4835_v55  ;;  %v4812_v48 = vsub.f32 %v9785_v20, %v4744_v58 }
 0x3af   : > { %v4837_v23 = vmul.f32 1.442695, %v4812_v48 }
 0x3b0   : > { %v4747_v26 = vpop.xlane.xlu1 %4746  ;;  %v4753_v36 = vpop.xlane.xlu0 %4752 }
 0x3b1   : > { %7886 = vpow2.f32 %v4837_v23  ;;  %v4813_v5 = vsub.f32 %v9791_v39, %v4747_v26  ;;  %v4815_v43 = vsub.f32 %v9777_v15, %v4753_v36 }
 0x3b3   : > { %v4839_v22 = vmul.f32 1.442695, %v4813_v5  ;;  %v4843_v57 = vmul.f32 1.442695, %v4815_v43 }
 0x3b4   : > { %v4750_v7 = vpop.xlane.xlu1 %4749 }
 0x3b5   : > { %7888 = vpow2.f32 %v4839_v22  ;;  %v4814_v31 = vsub.f32 %v9799_v33, %v4750_v7 }
 0x3b6   : > { %7890 = vpow2.f32 %v4843_v57 }
 0x3b7   : > { %v4841_v24 = vmul.f32 1.442695, %v4814_v31 }
 0x3b8   : > { %v4759_v32 = vpop.xlane.xlu0 %4758  ;;  %v4756_v2 = vpop.xlane.xlu1 %4755 }
 0x3b9   : > { %7892 = vpow2.f32 %v4841_v24  ;;  %v4817_v48 = vsub.f32 %v9805_v30, %v4759_v32  ;;  %v4816_v20 = vsub.f32 %v9783_v19, %v4756_v2 }
 0x3ba   : > { %v9880_v23 = vpop.eup %7884 }
 0x3bb   : > { %v4847_v26 = vmul.f32 1.442695, %v4817_v48  ;;  %v4845_v39 = vmul.f32 1.442695, %v4816_v20  ;;  %v4883_v15 = vsel %vm4738_vm2, %v9880_v23, 0.0 }
 0x3bc   : > { %v4762_v55 = vpop.xlane.xlu1 %4761  ;;  %v4765_v22 = vpop.xlane.xlu0 %4764  ;;  %4884 = vadd.xlane.f32.xlu0 %v4883_v15 }
 0x3bd   : > { %7894 = vpow2.f32 %v4847_v26  ;;  %v4818_v57 = vsub.f32 %v9813_v44, %v4762_v55  ;;  %v4819_v33 = vsub.f32 %v9789_v62, %v4765_v22 }
 0x3be   : > { %v9886_v58 = vpop.eup %7886  ;;  %7896 = vpow2.f32 %v4845_v39 }
 0x3bf   : > { %v4849_v30 = vmul.f32 1.442695, %v4818_v57  ;;  %v4851_v19 = vmul.f32 1.442695, %v4819_v33  ;;  %v4886_v36 = vsel %vm4738_vm2, %v9886_v58, 0.0 }
 0x3c0   : > { %v4771_v5 = vpop.xlane.xlu0 %4770  ;;  %v4768_v43 = vpop.xlane.xlu1 %4767  ;;  %4887 = vadd.xlane.f32.xlu1 %v4886_v36 }
 0x3c1   : > { %7898 = vpow2.f32 %v4849_v30  ;;  %v4821_v7 = vsub.f32 %v9821_v52, %v4771_v5  ;;  %v4820_v31 = vsub.f32 %v9797_v8, %v4768_v43 }
 0x3c2   : > { %v9892_v24 = vpop.eup %7888  ;;  %7900 = vpow2.f32 %v4851_v19 }
 0x3c3   : > { %v4855_v62 = vmul.f32 1.442695, %v4821_v7  ;;  %v4853_v44 = vmul.f32 1.442695, %v4820_v31  ;;  %v4889_v32 = vsel %vm4738_vm2, %v9892_v24, 0.0  ;;  %v9896_v2 = vpop.eup %7890 }
 0x3c4   : > { %v4774_v48 = vpop.xlane.xlu1 %4773  ;;  %v4777_v20 = vpop.xlane.xlu0 %4776  ;;  %4890 = vadd.xlane.f32.xlu0 %v4889_v32  ;;  %v4895_v55 = vsel %vm4738_vm2, %v9896_v2, 0.0 }
 0x3c5   : > { %7902 = vpow2.f32 %v4855_v62  ;;  %v4822_v26 = vsub.f32 %v9829_v25, %v4774_v48  ;;  %v4823_v52 = vsub.f32 %v9803_v10, %v4777_v20 }
 0x3c6   : > { %v9900_v39 = vpop.eup %7892  ;;  %7904 = vpow2.f32 %v4853_v44 }
 0x3c7   : > { %v4857_v8 = vmul.f32 1.442695, %v4822_v26  ;;  %v4859_v15 = vmul.f32 1.442695, %v4823_v52  ;;  %v4892_v22 = vsel %vm4738_vm2, %v9900_v39, 0.0 }
 0x3c8   : > { %v4783_v57 = vpop.xlane.xlu0 %4782  ;;  %v4780_v33 = vpop.xlane.xlu1 %4779  ;;  %4896 = vadd.xlane.f32.xlu0 %v4895_v55  ;;  %4893 = vadd.xlane.f32.xlu1 %v4892_v22 }
 0x3c9   : > { %7906 = vpow2.f32 %v4857_v8  ;;  %v4825_v25 = vsub.f32 %v9837_v63, %v4783_v57  ;;  %v4824_v10 = vsub.f32 %v9811_v28, %v4780_v33 }
 0x3ca   : > { %v9908_v30 = vpop.eup %7894  ;;  %7908 = vpow2.f32 %v4859_v15 }
 0x3cb   : > { %v9910_v19 = vpop.eup %7896  ;;  %v4863_v36 = vmul.f32 1.442695, %v4825_v25  ;;  %v4861_v5 = vmul.f32 1.442695, %v4824_v10  ;;  %v4901_v43 = vsel %vm4738_vm2, %v9908_v30, 0.0 }
 0x3cc   : > { %v4786_v7 = vpop.xlane.xlu1 %4785  ;;  %v4789_v31 = vpop.xlane.xlu0 %4788  ;;  %4902 = vadd.xlane.f32.xlu0 %v4901_v43  ;;  %v4898_v62 = vsel %vm4738_vm2, %v9910_v19, 0.0 }
 0x3cd   : > { %7910 = vpow2.f32 %v4863_v36  ;;  %v4826_v63 = vsub.f32 %v9845_v61, %v4786_v7  ;;  %v4827_v28 = vsub.f32 %v9819_v34, %v4789_v31  ;;  %4899 = vadd.xlane.f32.xlu1 %v4898_v62 }
 0x3ce   : > { %v9918_v44 = vpop.eup %7898  ;;  %7912 = vpow2.f32 %v4861_v5 }
 0x3cf   : > { %v9920_v32 = vpop.eup %7900  ;;  %v4865_v48 = vmul.f32 1.442695, %v4826_v63  ;;  %v4867_v20 = vmul.f32 1.442695, %v4827_v28  ;;  %v4904_v26 = vsel %vm4738_vm2, %v9918_v44, 0.0 }
 0x3d0   : > { %v4795_v52 = vpop.xlane.xlu0 %4794  ;;  %v4792_v8 = vpop.xlane.xlu1 %4791  ;;  %v4907_v15 = vsel %vm4738_vm2, %v9920_v32, 0.0 }
 0x3d1   : > { %7914 = vpow2.f32 %v4865_v48  ;;  %v4829_v61 = vsub.f32 %v9851_v49, %v4795_v52  ;;  %v4828_v34 = vsub.f32 %v9827_v41, %v4792_v8  ;;  %4908 = vadd.xlane.f32.xlu0 %v4907_v15  ;;  %4905 = vadd.xlane.f32.xlu1 %v4904_v26 }
 0x3d2   : > { %v9928_v55 = vpop.eup %7902  ;;  %7916 = vpow2.f32 %v4867_v20 }
 0x3d3   : > { %v9930_v22 = vpop.eup %7904  ;;  %v4871_v57 = vmul.f32 1.442695, %v4829_v61  ;;  %v4869_v33 = vmul.f32 1.442695, %v4828_v34  ;;  %v4913_v25 = vsel %vm4738_vm2, %v9928_v55, 0.0 }
 0x3d4   : > { %v4798_v10 = vpop.xlane.xlu1 %4797  ;;  %v4801_v36 = vpop.xlane.xlu0 %4800  ;;  %v4910_v5 = vsel %vm4738_vm2, %v9930_v22, 0.0 }
 0x3d5   : > { %7918 = vpow2.f32 %v4871_v57  ;;  %v4830_v41 = vsub.f32 %v9857_v38, %v4798_v10  ;;  %4914 = vadd.xlane.f32.xlu0 %v4913_v25  ;;  %v4831_v49 = vsub.f32 %v9835_v42, %v4801_v36  ;;  %4911 = vadd.xlane.f32.xlu1 %v4910_v5 }
 0x3d6   : > { %v9938_v43 = vpop.eup %7906  ;;  %7920 = vpow2.f32 %v4869_v33 }
 0x3d7   : > { %v9940_v7 = vpop.eup %7908  ;;  %v4873_v31 = vmul.f32 1.442695, %v4830_v41  ;;  %v4875_v62 = vmul.f32 1.442695, %v4831_v49  ;;  %v4916_v63 = vsel %vm4738_vm2, %v9938_v43, 0.0 }
 0x3d8   : > { %v4919_v28 = vsel %vm4738_vm2, %v9940_v7, 0.0  ;;  %v4807_v48 = vpop.xlane.xlu0 %4806  ;;  %v4804_v20 = vpop.xlane.xlu1 %4803 }
 0x3d9   : > { %7922 = vpow2.f32 %v4873_v31  ;;  %4920 = vadd.xlane.f32.xlu0 %v4919_v28  ;;  %v4833_v42 = vsub.f32 %v9863_v51, %v4807_v48  ;;  %4917 = vadd.xlane.f32.xlu1 %v4916_v63  ;;  %v4832_v38 = vsub.f32 %v9843_v54, %v4804_v20 }
 0x3da   : > { %v9948_v26 = vpop.eup %7910  ;;  %7924 = vpow2.f32 %v4875_v62 }
 0x3db   : > { %v9950_v52 = vpop.eup %7912  ;;  %v4879_v8 = vmul.f32 1.442695, %v4833_v42  ;;  %v4877_v15 = vmul.f32 1.442695, %v4832_v38  ;;  %v4925_v61 = vsel %vm4738_vm2, %v9948_v26, 0.0 }
 0x3dc   : > { %v4922_v34 = vsel %vm4738_vm2, %v9950_v52, 0.0  ;;  %v4810_v57 = vpop.xlane.xlu1 %4809 }
 0x3dd   : > { %7926 = vpow2.f32 %v4879_v8  ;;  %4926 = vadd.xlane.f32.xlu0 %v4925_v61  ;;  %4923 = vadd.xlane.f32.xlu1 %v4922_v34  ;;  %v4834_v51 = vsub.f32 %v9869_v37, %v4810_v57 }
 0x3de   : > { %v9957_v54 = vpop.eup %7914  ;;  %7928 = vpow2.f32 %v4877_v15 }
 0x3df   : > { %v9959_v33 = vpop.eup %7916  ;;  %v4881_v25 = vmul.f32 1.442695, %v4834_v51  ;;  %v4928_v10 = vsel %vm4738_vm2, %v9957_v54, 0.0 }
 0x3e0   : > { %v4931_v36 = vsel %vm4738_vm2, %v9959_v33, 0.0 }
 0x3e1   : > { %7930 = vpow2.f32 %v4881_v25  ;;  %4932 = vadd.xlane.f32.xlu0 %v4931_v36  ;;  %4929 = vadd.xlane.f32.xlu1 %v4928_v10 }
 0x3e2   : > { %v9965_v5 = vpop.eup %7918 }
 0x3e3   : > { %v9967_v41 = vpop.eup %7920  ;;  %v4937_v37 = vsel %vm4738_vm2, %v9965_v5, 0.0 }
 0x3e4   : > { %v4934_v49 = vsel %vm4738_vm2, %v9967_v41, 0.0 }
 0x3e5   : > { %4938 = vadd.xlane.f32.xlu0 %v4937_v37  ;;  %4935 = vadd.xlane.f32.xlu1 %v4934_v49 }
 0x3e6   : > { %v9973_v31 = vpop.eup %7922 }
 0x3e7   : > { %v9975_v62 = vpop.eup %7924  ;;  %v4940_v63 = vsel %vm4738_vm2, %v9973_v31, 0.0 }
 0x3e8   : > { %v4943_v28 = vsel %vm4738_vm2, %v9975_v62, 0.0 }
 0x3e9   : > { %4944 = vadd.xlane.f32.xlu0 %v4943_v28  ;;  %4941 = vadd.xlane.f32.xlu1 %v4940_v63 }
 0x3ea   : > { %v9981_v48 = vpop.eup %7926 }
 0x3eb   : > { %v9983_v20 = vpop.eup %7928  ;;  %v4949_v42 = vsel %vm4738_vm2, %v9981_v48, 0.0 }
 0x3ec   : > { %v4946_v38 = vsel %vm4738_vm2, %v9983_v20, 0.0 }
 0x3ed   : > { %4950 = vadd.xlane.f32.xlu0 %v4949_v42  ;;  %4947 = vadd.xlane.f32.xlu1 %v4946_v38 }
 0x3ee   : > { %v9989_v8 = vpop.eup %7930 }
 0x3ef   : > { %v4952_v15 = vsel %vm4738_vm2, %v9989_v8, 0.0 }
 0x3f1   : > { %4953 = vadd.xlane.f32.xlu1 %v4952_v15 }
 0x445   : > { %v4885_v61 = vpop.xlane.xlu0 %4884 }
 0x446   : > { %7932 = vrcp.f32 %v4885_v61 }
 0x449   : > { %v4888_v34 = vpop.xlane.xlu1 %4887 }
 0x44a   : > { %7934 = vrcp.f32 %v4888_v34 }
 0x44d   : > { %v4891_v57 = vpop.xlane.xlu0 %4890 }
 0x44e   : > { %7936 = vrcp.f32 %v4891_v57 }
 0x451   : > { %v4897_v51 = vpop.xlane.xlu0 %4896  ;;  %v4894_v25 = vpop.xlane.xlu1 %4893 }
 0x452   : > { %7938 = vrcp.f32 %v4894_v25 }
 0x453   : > { %v7933_v10 = vpop.eup %7932  ;;  %7940 = vrcp.f32 %v4897_v51 }
 0x454   : > { %v4979_v63 = vmul.f32 %v7933_v10, %v9880_v23 }
 0x455   : > { %v4903_v36 = vpop.xlane.xlu0 %4902 }
 0x456   : > { %v4900_v37 = vpop.xlane.xlu1 %4899 }
 0x457   : > { %v7935_v49 = vpop.eup %7934  ;;  %7942 = vrcp.f32 %v4900_v37 }
 0x458   : > { %v4980_v28 = vmul.f32 %v7935_v49, %v9886_v58  ;;  %7944 = vrcp.f32 %v4903_v36 }
 0x45a   : > { %v4909_v42 = vpop.xlane.xlu0 %4908  ;;  %v4906_v38 = vpop.xlane.xlu1 %4905  ;;  %v5003_v15 = vpack.c.bf16 %v4980_v28, %v4979_v63 }
 0x45b   : > { %7946 = vrcp.f32 %v4906_v38  ;;  %v7937_v61 = vpop.eup %7936 }
 0x45c   : > { %7394 = vmatmul.mubr.msk.bf16.vlgmr.msra.gmra.mxu0 %vm4738_vm2, %v5003_v15  ;;  %7948 = vrcp.f32 %v4909_v42  ;;  %v4981_v57 = vmul.f32 %v7937_v61, %v9892_v24 }
 0x45d   : > { %7404 = vmatpush3.bf16.msra.mxu0 %v5017_v59  ;;  %7405 = vmatprep.mubr.msk.bf16.mxu0 %vm8044_vm0, %v8043_v1 }
 0x45e   : > { %v4915_v34 = vpop.xlane.xlu0 %4914  ;;  %v4912_v23 = vpop.xlane.xlu1 %4911  ;;  %7415 = vmatprep.subr.bf16.mxu0 %v8043_v1 }
 0x45f   : > { %v7939_v58 = vpop.eup %7938  ;;  %7950 = vrcp.f32 %v4912_v23 }
 0x460   : > { %v4982_v51 = vmul.f32 %v7939_v58, %v9900_v39  ;;  %v7941_v25 = vpop.eup %7940  ;;  %7952 = vrcp.f32 %v4915_v34 }
 0x461   : > { %v4983_v36 = vmul.f32 %v7941_v25, %v9896_v2 }
 0x462   : > { %v4921_v10 = vpop.xlane.xlu0 %4920  ;;  %v4918_v35 = vpop.xlane.xlu1 %4917  ;;  %v5004_v47 = vpack.c.bf16 %v4982_v51, %v4981_v57 }
 0x463   : > { %7954 = vrcp.f32 %v4918_v35 }
 0x464   : > { %v7943_v59 = vpop.eup %7942  ;;  %7400 = vmatmul.mubr.msk.bf16.vlgmr.msra.gmra.mxu1 %vm4738_vm2, %v5004_v47  ;;  %7956 = vrcp.f32 %v4921_v10 }
 0x465   : > { %v4984_v37 = vmul.f32 %v7943_v59, %v9910_v19  ;;  %7410 = vmatpush3.bf16.msra.mxu1 %v5018_v60  ;;  %7411 = vmatprep.mubr.msk.bf16.mxu1 %vm8044_vm0, %v8043_v1  ;;  %v7945_v49 = vpop.eup %7944  ;;  %v10213_v59 = vpack.c.bf16 %v9759_v3, %v9755_v13 }
 0x466   : > { %v4927_v24 = vpop.xlane.xlu0 %4926  ;;  %v4924_v39 = vpop.xlane.xlu1 %4923  ;;  %7421 = vmatprep.subr.bf16.mxu1 %v8043_v1  ;;  %v4985_v60 = vmul.f32 %v7945_v49, %v9908_v30 }
 0x467   : > { %v5005_v63 = vpack.c.bf16 %v4984_v37, %v4983_v36  ;;  %7958 = vrcp.f32 %v4924_v39 }
 0x468   : > { %v7947_v28 = vpop.eup %7946  ;;  %7960 = vrcp.f32 %v4927_v24 }
 0x469   : > { %7406 = vmatmul.mubr.msk.bf16.vlgmr.msra.gmra.mxu0 %vm4738_vm2, %v5005_v63  ;;  %v4986_v2 = vmul.f32 %v7947_v28, %v9918_v44  ;;  %v7949_v19 = vpop.eup %7948 }
 0x46a   : > { %7416 = vmatpush3.bf16.msra.mxu0 %v5019_v56  ;;  %v4933_v40 = vpop.xlane.xlu0 %4932  ;;  %v4930_v53 = vpop.xlane.xlu1 %4929  ;;  %7417 = vmatprep.mubr.msk.bf16.mxu0 %vm8044_vm0, %v8043_v1  ;;  %v4987_v56 = vmul.f32 %v7949_v19, %v9920_v32 }
 0x46b   : > { %7427 = vmatprep.subr.bf16.mxu0 %v8043_v1  ;;  %7962 = vrcp.f32 %v4930_v53  ;;  %v5006_v42 = vpack.c.bf16 %v4986_v2, %v4985_v60 }
 0x46c   : > { %v7951_v38 = vpop.eup %7950  ;;  %7964 = vrcp.f32 %v4933_v40 }
 0x46d   : > { %7412 = vmatmul.mubr.msk.bf16.vlgmr.msra.gmra.mxu1 %vm4738_vm2, %v5006_v42  ;;  %v4988_v30 = vmul.f32 %v7951_v38, %v9930_v22  ;;  %v7953_v15 = vpop.eup %7952 }
 0x46e   : > { %v4939_v16 = vpop.xlane.xlu0 %4938  ;;  %v4936_v46 = vpop.xlane.xlu1 %4935  ;;  %7422 = vmatpush3.bf16.msra.mxu1 %v5020_v4  ;;  %7423 = vmatprep.mubr.msk.bf16.mxu1 %vm8044_vm0, %v8043_v1  ;;  %v4989_v22 = vmul.f32 %v7953_v15, %v9928_v55 }
 0x46f   : > { %7966 = vrcp.f32 %v4936_v46  ;;  %v5007_v44 = vpack.c.bf16 %v4988_v30, %v4987_v56  ;;  %7433 = vmatprep.subr.bf16.mxu1 %v8043_v1 }
 0x470   : > { %v7955_v61 = vpop.eup %7954  ;;  %7968 = vrcp.f32 %v4939_v16 }
 0x471   : > { %7418 = vmatmul.mubr.msk.bf16.vlgmr.msra.gmra.mxu0 %vm4738_vm2, %v5007_v44  ;;  %v4990_v23 = vmul.f32 %v7955_v61, %v9938_v43  ;;  %v7957_v58 = vpop.eup %7956 }
 0x472   : > { %v4945_v34 = vpop.xlane.xlu0 %4944  ;;  %v4942_v32 = vpop.xlane.xlu1 %4941  ;;  %7428 = vmatpush3.bf16.msra.mxu0 %v5021_v17  ;;  %7429 = vmatprep.mubr.msk.bf16.mxu0 %vm8044_vm0, %v8043_v1  ;;  %v4991_v43 = vmul.f32 %v7957_v58, %v9940_v7 }
 0x473   : > { %7970 = vrcp.f32 %v4942_v32  ;;  %v5008_v18 = vpack.c.bf16 %v4990_v23, %v4989_v22  ;;  %7439 = vmatprep.subr.bf16.mxu0 %v8043_v1  ;;  %v7878_v32 = vld [vmem:[%s10197_s6 + $0x28] sm:$0xff]  }
 0x474   : > { %v7959_v11 = vpop.eup %7958  ;;  %7972 = vrcp.f32 %v4945_v34 }
 0x475   : > { %7424 = vmatmul.mubr.msk.bf16.vlgmr.msra.gmra.mxu1 %vm4738_vm2, %v5008_v18  ;;  %v4992_v57 = vmul.f32 %v7959_v11, %v9950_v52  ;;  %v7961_v51 = vpop.eup %7960 }
 0x476   : > { %v4951_v4 = vpop.xlane.xlu0 %4950  ;;  %v4948_v55 = vpop.xlane.xlu1 %4947  ;;  %7434 = vmatpush3.bf16.msra.mxu1 %v10211_v9  ;;  %7435 = vmatprep.mubr.msk.bf16.mxu1 %vm8044_vm0, %v8043_v1  ;;  %v4993_v25 = vmul.f32 %v7961_v51, %v9948_v26 }
 0x477   : > { %7974 = vrcp.f32 %v4948_v55  ;;  %v5009_v6 = vpack.c.bf16 %v4992_v57, %v4991_v43  ;;  %7445 = vmatprep.subr.bf16.mxu1 %v8043_v1 }
 0x478   : > { %v7963_v17 = vpop.eup %7962  ;;  %7976 = vrcp.f32 %v4951_v4  ;;  %v7879_v4 = vld [vmem:[%s10197_s6 + $0x20] sm:$0xff]  }
 0x479   : > { %v4994_v7 = vmul.f32 %v7963_v17, %v9957_v54  ;;  %7430 = vmatmul.mubr.msk.bf16.vlgmr.msra.gmra.mxu0 %vm4738_vm2, %v5009_v6  ;;  %v7965_v10 = vpop.eup %7964  ;;  %v7880_v6 = vld [vmem:[%s10197_s6 + $0x18] sm:$0xff]  }
 0x47a   : > { %v4954_v52 = vpop.xlane.xlu1 %4953  ;;  %7440 = vmatpush3.bf16.msra.mxu0 %v10212_v12  ;;  %7441 = vmatprep.mubr.msk.bf16.mxu0 %vm8044_vm0, %v8043_v1  ;;  %v4995_v26 = vmul.f32 %v7965_v10, %v9959_v33  ;;  %v7881_v12 = vld [vmem:[%s10197_s6 + $0x10] sm:$0xff]  }
 0x47b   : > { %7978 = vrcp.f32 %v4954_v52  ;;  %v5010_v21 = vpack.c.bf16 %v4994_v7, %v4993_v25  ;;  %7451 = vmatprep.subr.bf16.mxu0 %v8043_v1 }
 0x47c   : > { %v7967_v35 = vpop.eup %7966 }
 0x47d   : > { %7436 = vmatmul.mubr.msk.bf16.vlgmr.msra.gmra.mxu1 %vm4738_vm2, %v5010_v21  ;;  %v4996_v54 = vmul.f32 %v7967_v35, %v9967_v41  ;;  %v7969_v47 = vpop.eup %7968  ;;  %v10214_v41 = vpack.c.bf16 %v9769_v14, %v9765_v45 }
 0x47e   : > { %7446 = vmatpush3.bf16.msra.mxu1 %v10213_v59  ;;  %7447 = vmatprep.mubr.msk.bf16.mxu1 %vm8044_vm0, %v8043_v1  ;;  %v4997_v36 = vmul.f32 %v7969_v47, %v9965_v5  ;;  %v7882_v59 = vld [vmem:[%s10197_s6 + $0x8] sm:$0xff]  }
 0x47f   : > { %v5011_v27 = vpack.c.bf16 %v4996_v54, %v4995_v26  ;;  %7457 = vmatprep.subr.bf16.mxu1 %v8043_v1 }
 0x480   : > { %v7971_v0 = vpop.eup %7970 }
 0x481   : > { %v4998_v37 = vmul.f32 %v7971_v0, %v9973_v31  ;;  %7442 = vmatmul.mubr.msk.bf16.vlgmr.msra.gmra.mxu0 %vm4738_vm2, %v5011_v27  ;;  %v7973_v33 = vpop.eup %7972  ;;  %v10215_v31 = vpack.c.bf16 %v9773_v29, %v9767_v50 }
 0x482   : > { %7452 = vmatpush3.bf16.msra.mxu0 %v10214_v41  ;;  %7453 = vmatprep.mubr.msk.bf16.mxu0 %vm8044_vm0, %v8043_v1  ;;  %v4999_v39 = vmul.f32 %v7973_v33, %v9975_v62  ;;  %v7883_v41 = vld [vmem:[%s10197_s6] sm:$0xff]  }
 0x483   : > { %v5012_v13 = vpack.c.bf16 %v4998_v37, %v4997_v36  ;;  %7463 = vmatprep.subr.bf16.mxu0 %v8043_v1 }
 0x484   : > { %v7975_v3 = vpop.eup %7974 }
 0x485   : > { %v7977_v24 = vpop.eup %7976  ;;  %v5000_v5 = vmul.f32 %v7975_v3, %v9983_v20  ;;  %7448 = vmatmul.mubr.msk.bf16.vlgmr.msra.gmra.mxu1 %vm4738_vm2, %v5012_v13 }
 0x486   : > { %7458 = vmatpush3.bf16.msra.mxu1 %v10215_v31  ;;  %7459 = vmatprep.mubr.msk.bf16.mxu1 %vm8044_vm0, %v8043_v1  ;;  %v5001_v49 = vmul.f32 %v7977_v24, %v9981_v48 }
 0x487   : > { %v5013_v14 = vpack.c.bf16 %v5000_v5, %v4999_v39 }
 0x488   : > { %v7979_v45 = vpop.eup %7978 }
 0x489   : > { %v5002_v63 = vmul.f32 %v7979_v45, %v9989_v8  ;;  %7454 = vmatmul.mubr.msk.bf16.vlgmr.msra.gmra.mxu0 %vm4738_vm2, %v5013_v14 }
 0x48a   : > { %7475 = vmatprep.mubr.msk.bf16.mxu0 %vm8044_vm0, %v8043_v1  ;;  %7464 = vmatpush3.bf16.msra.mxu0 %v7878_v32 }
 0x48b   : > { %v5014_v62 = vpack.c.bf16 %v5002_v63, %v5001_v49  ;;  %7465 = vmatprep.subr.bf16.mxu0 %v8043_v1 }
 0x48d   : > { %7460 = vmatmul.mubr.msk.bf16.vlgmr.msra.gmra.mxu1 %vm4738_vm2, %v5014_v62 }
 0x48e   : > { %7466 = vmatpush3.bf16.msra.mxu0 %v7879_v4 }
 0x48f   : > { %7467 = vmatprep.subr.bf16.mxu0 %v8043_v1 }
 0x492   : > { %7468 = vmatpush3.bf16.msra.mxu0 %v7880_v6 }
 0x493   : > { %7469 = vmatprep.subr.bf16.mxu0 %v8043_v1 }
 0x496   : > { %7470 = vmatpush3.bf16.msra.mxu0 %v7881_v12 }
 0x497   : > { %7471 = vmatprep.subr.bf16.mxu0 %v8043_v1 }
 0x49a   : > { %7472 = vmatpush3.bf16.msra.mxu0 %v7882_v59 }
 0x49b   : > { %7473 = vmatprep.subr.bf16.mxu0 %v8043_v1 }
 0x49e   : > { %7474 = vmatpush3.bf16.msra.mxu0 %v7883_v41 }
 0x51c   : > { %v10090_v20 = vpop.f32.mrf.mxu0 }
 0x51e   : > { %v7395_v50 = vpop.f32.mrf.mxu0 }
 0x520   : > { %v10092_v29 = vpop.f32.mrf.mxu0 }
 0x522   : > { %v7396_v28 = vpop.f32.mrf.mxu0 }
 0x524   : > { %v5108_v40 = vpop.f32.mrf.mxu1 }
 0x526   : > { %v7401_v53 = vpop.f32.mrf.mxu1 }
 0x528   : > { %v5111_v60 = vpop.f32.mrf.mxu1 }
 0x529   : > { %v5152_v48 = vpop.f32.mrf.mxu0  ;;  %v7532_v2 = vpack.i.bf16 %v5111_v60, %v5108_v40 }
 0x52a   : > { %v7402_v8 = vpop.f32.mrf.mxu1 }
 0x52b   : > { %v7407_v19 = vpop.f32.mrf.mxu0  ;;  %7533 = vrot.lane.b32.xlu0 %v7532_v2, %s8045_s21 }
 0x52d   : > { %v5155_v42 = vpop.f32.mrf.mxu0  ;;  %v5196_v16 = vpop.f32.mrf.mxu1 }
 0x52e   : > { %v7537_v38 = vpack.i.bf16 %v5155_v42, %v5152_v48 }
 0x52f   : > { %v7408_v46 = vpop.f32.mrf.mxu0  ;;  %v7413_v56 = vpop.f32.mrf.mxu1 }
 0x530   : > { %7538 = vrot.lane.b32.xlu1 %v7537_v38, %s8046_s22 }
 0x531   : > { %v5199_v30 = vpop.f32.mrf.mxu1  ;;  %v5240_v15 = vpop.f32.mrf.mxu0 }
 0x532   : > { %v7542_v44 = vpack.i.bf16 %v5199_v30, %v5196_v16 }
 0x533   : > { %v7414_v61 = vpop.f32.mrf.mxu1  ;;  %v7419_v34 = vpop.f32.mrf.mxu0 }
 0x534   : > { %7543 = vrot.lane.b32.xlu1 %v7542_v44, %s8047_s12  ;;  %s8051_s12 = smov 56  }
 0x535   : > { %v5243_v22 = vpop.f32.mrf.mxu0  ;;  %v5284_v23 = vpop.f32.mrf.mxu1 }
 0x536   : > { %v7547_v58 = vpack.i.bf16 %v5243_v22, %v5240_v15 }
 0x537   : > { %v7420_v18 = vpop.f32.mrf.mxu0  ;;  %v7425_v11 = vpop.f32.mrf.mxu1 }
 0x538   : > { %7548 = vrot.lane.b32.xlu1 %v7547_v58, %s8048_s24  ;;  %s8052_s24 = smov 64  }
 0x539   : > { %v5287_v55 = vpop.f32.mrf.mxu1  ;;  %v5328_v43 = vpop.f32.mrf.mxu0 }
 0x53a   : > { %v7552_v57 = vpack.i.bf16 %v5287_v55, %v5284_v23 }
 0x53b   : > { %v7426_v51 = vpop.f32.mrf.mxu1  ;;  %v7431_v9 = vpop.f32.mrf.mxu0 }
 0x53c   : > { %7553 = vrot.lane.b32.xlu0 %v7552_v57, %s8049_s13  ;;  %s8053_s13 = smov 72  }
 0x53d   : > { %v5331_v17 = vpop.f32.mrf.mxu0  ;;  %v5372_v25 = vpop.f32.mrf.mxu1 }
 0x53e   : > { %v7557_v7 = vpack.i.bf16 %v5331_v17, %v5328_v43 }
 0x53f   : > { %v7432_v52 = vpop.f32.mrf.mxu0  ;;  %v7437_v10 = vpop.f32.mrf.mxu1 }
 0x540   : > { %7558 = vrot.lane.b32.xlu1 %v7557_v7, %s8050_s18  ;;  %s326_s18 = sand.u32 1, %s8033_s28  }
 0x541   : > { %v5375_v21 = vpop.f32.mrf.mxu1  ;;  %v5416_v35 = vpop.f32.mrf.mxu0  ;;  %s5881_s19 = sshll.u32 %s326_s18, 4 }
 0x542   : > { %v7562_v26 = vpack.i.bf16 %v5375_v21, %v5372_v25  ;;  %s328_s20 = scalar_lea.vmem [#allocation2], %s5881_s19 }
 0x543   : > { %v7438_v54 = vpop.f32.mrf.mxu1  ;;  %v7443_v47 = vpop.f32.mrf.mxu0  ;;  %s5791_s23 = sshll.u32 %s328_s20, 4  ;;  %s10143_s23 = int_to_ptr.vmem [resolvable:$true] %s5791_s23 }
 0x544   : > { %7563 = vrot.lane.b32.xlu0 %v7562_v26, %s8051_s12 }
 0x545   : > { %v5419_v27 = vpop.f32.mrf.mxu0  ;;  %v5460_v0 = vpop.f32.mrf.mxu1 }
 0x546   : > { %v7567_v36 = vpack.i.bf16 %v5419_v27, %v5416_v35 }
 0x547   : > { %v7444_v37 = vpop.f32.mrf.mxu0  ;;  %v7449_v33 = vpop.f32.mrf.mxu1 }
 0x548   : > { %7568 = vrot.lane.b32.xlu1 %v7567_v36, %s8052_s24  ;;  %s6219_s24 = sshll.u32 %s8124_s9, 8  ;;  %s8056_s9 = smov [#allocation2]  }
 0x549   : > { %v5463_v13 = vpop.f32.mrf.mxu1  ;;  %v5504_v3 = vpop.f32.mrf.mxu0  ;;  %s7985_s19 = sshll.u32 %s8056_s9, 4  ;;  %s7986_s19 = int_to_ptr.vmem [resolvable:$false] %s7985_s19 }
 0x54a   : > { %v7572_v24 = vpack.i.bf16 %v5463_v13, %v5460_v0  ;;  %s7987_s22 = scalar_lea.vmem %s7986_s19, 512  ;;  %p7988_p0 = scmp.lt.s32.totalorder %s10143_s23, %s7986_s19 }
 0x54b   : > { %v7450_v39 = vpop.f32.mrf.mxu1  ;;  %v7455_v5 = vpop.f32.mrf.mxu0 }
 0x54c   : > { %7573 = vrot.lane.b32.xlu0 %v7572_v24, %s8053_s13  ;;  %s10148_s13 = scalar_lea.hbm %s10199_s8, %s6219_s24 }
 0x54d   : > { %v5507_v31 = vpop.f32.mrf.mxu0  ;;  %v5548_v45 = vpop.f32.mrf.mxu1 }
 0x54e   : > { %v7577_v14 = vpack.i.bf16 %v5507_v31, %v5504_v3  ;;  %v6203_v31 = vld [vmem:[%s10198_s7] ss:$0 sm:$0xff] }
 0x54f   : > { %v7456_v49 = vpop.f32.mrf.mxu0  ;;  %v7461_v63 = vpop.f32.mrf.mxu1 }
 0x550   : > { %7578 = vrot.lane.b32.xlu1 %v7577_v14, %s8054_s10  ;;  %s10150_s10 = scalar_lea.sflag [#allocation3], %s326_s18 }
 0x551   : > { %v5551_v1 = vpop.f32.mrf.mxu1 }
 0x552   : > { %v7582_v62 = vpack.i.bf16 %v5551_v1, %v5548_v45 }
 0x553   : > { %v7462_v50 = vpop.f32.mrf.mxu1 }
 0x554   : > { %7583 = vrot.lane.b32.xlu0 %v7582_v62, %s8055_s17  ;;  %s7981_s17 = scalar_lea.vmem %s10143_s23, 256 }
 0x555   : > { %p7982_p11 = scmp.ne.s32.totalorder %s10143_s23, %s7981_s17  ;;  %p7989_p1 = scmp.lt.s32.totalorder %s7987_s22, %s7981_s17 }
 0x557   : > { %p7983_p12 = pnand %p7982_p11, %p8141_p5  ;;  %p7990_p2 = por %p7989_p1, %p7988_p0 }
 0x559   : > { %p7984_p13 = pneg %p7983_p12 }
 0x55b   : > { %p7991_p3 = pnand %p7990_p2, %p7984_p13 }
 0x59d   : > { %v7534_v53 = vpop.permute.xlu0 %7533 }
 0x59e   : > { %v7536_v8 = vunpack.i.h.bf16 %v7534_v53  ;;  %v7535_v19 = vunpack.i.l.bf16 %v7534_v53 }
 0x5a0   : > { %v5643_v61 = vsel %vm4173_vm1, %v10090_v20, %v7535_v19  ;;  %v5644_v34 = vsel %vm4173_vm1, %v10092_v29, %v7536_v8 }
 0x5a2   : > { %v7539_v28 = vpop.permute.xlu1 %7538 }
 0x5a3   : > { %v7541_v42 = vunpack.i.h.bf16 %v7539_v28  ;;  %v7540_v38 = vunpack.i.l.bf16 %v7539_v28 }
 0x5a5   : > { %v5646_v23 = vsel %vm4738_vm2, %v5644_v34, %v7541_v42  ;;  %v5645_v58 = vsel %vm4738_vm2, %v5643_v61, %v7540_v38 }
 0x5a6   : > { %v7544_v40 = vpop.permute.xlu1 %7543 }
 0x5a7   : > { %v7546_v46 = vunpack.i.h.bf16 %v7544_v40  ;;  %v7545_v56 = vunpack.i.l.bf16 %v7544_v40 }
 0x5a9   : > { %v5648_v55 = vsel %vm5647_vm3, %v5645_v58, %v7545_v56  ;;  %v5649_v43 = vsel %vm5647_vm3, %v5646_v23, %v7546_v46 }
 0x5aa   : > { %v7549_v60 = vpop.permute.xlu1 %7548 }
 0x5ab   : > { %v7551_v30 = vunpack.i.h.bf16 %v7549_v60  ;;  %v7550_v15 = vunpack.i.l.bf16 %v7549_v60 }
 0x5ad   : > { %v5652_v20 = vsel %vm5650_vm4, %v5649_v43, %v7551_v30  ;;  %v5651_v9 = vsel %vm5650_vm4, %v5648_v55, %v7550_v15 }
 0x5ae   : > { %v7554_v48 = vpop.permute.xlu0 %7553 }
 0x5af   : > { %v7556_v32 = vunpack.i.h.bf16 %v7554_v48  ;;  %v7555_v22 = vunpack.i.l.bf16 %v7554_v48 }
 0x5b1   : > { %v5654_v25 = vsel %vm5653_vm5, %v5651_v9, %v7555_v22  ;;  %v5655_v7 = vsel %vm5653_vm5, %v5652_v20, %v7556_v32 }
 0x5b2   : > { %v7559_v2 = vpop.permute.xlu1 %7558 }
 0x5b3   : > { %v7561_v18 = vunpack.i.h.bf16 %v7559_v2  ;;  %v7560_v11 = vunpack.i.l.bf16 %v7559_v2 }
 0x5b5   : > { %v5658_v12 = vsel %vm5656_vm6, %v5655_v7, %v7561_v18  ;;  %v5657_v21 = vsel %vm5656_vm6, %v5654_v25, %v7560_v11 }
 0x5b6   : > { %v7564_v16 = vpop.permute.xlu0 %7563 }
 0x5b7   : > { %v7566_v57 = vunpack.i.h.bf16 %v7564_v16  ;;  %v7565_v51 = vunpack.i.l.bf16 %v7564_v16 }
 0x5b9   : > { %v5660_v54 = vsel %vm5659_vm7, %v5657_v21, %v7565_v51  ;;  %v5661_v47 = vsel %vm5659_vm7, %v5658_v12, %v7566_v57 }
 0x5ba   : > { %v7569_v44 = vpop.permute.xlu1 %7568 }
 0x5bb   : > { %v7571_v29 = vunpack.i.h.bf16 %v7569_v44  ;;  %v7570_v6 = vunpack.i.l.bf16 %v7569_v44 }
 0x5bd   : > { %v5664_v59 = vsel %vm5662_vm8, %v5661_v47, %v7571_v29  ;;  %v5663_v27 = vsel %vm5662_vm8, %v5660_v54, %v7570_v6 }
 0x5be   : > { %v7574_v4 = vpop.permute.xlu0 %7573 }
 0x5bf   : > { %v7576_v52 = vunpack.i.h.bf16 %v7574_v4  ;;  %v7575_v10 = vunpack.i.l.bf16 %v7574_v4 }
 0x5c1   : > { %v5666_v36 = vsel %vm5665_vm9, %v5663_v27, %v7575_v10  ;;  %v5667_v37 = vsel %vm5665_vm9, %v5664_v59, %v7576_v52 }
 0x5c2   : > { %v7579_v17 = vpop.permute.xlu1 %7578 }
 0x5c3   : > { %v7581_v35 = vunpack.i.h.bf16 %v7579_v17  ;;  %v7580_v26 = vunpack.i.l.bf16 %v7579_v17 }
 0x5c5   : > { %v5670_v13 = vsel %vm5668_vm10, %v5667_v37, %v7581_v35  ;;  %v5669_v3 = vsel %vm5668_vm10, %v5666_v36, %v7580_v26 }
 0x5c6   : > { %v7584_v0 = vpop.permute.xlu0 %7583 }
 0x5c7   : > { %v7586_v33 = vunpack.i.h.bf16 %v7584_v0  ;;  %v7585_v41 = vunpack.i.l.bf16 %v7584_v0 }
 0x5c9   : > { %v5672_v24 = vsel %vm5671_vm11, %v5669_v3, %v7585_v41  ;;  %v5673_v39 = vsel %vm5671_vm11, %v5670_v13, %v7586_v33 }
 0x5ca   : > { %v5674_v5 = vpack.c.bf16 %v5673_v39, %v5672_v24 }
 0x5cc   : > { %7476 = vmatmul.mubr.msk.bf16.vlgmr.msra.gmra.mxu0 %vm5730_vm12, %v5674_v5 }
 0x68c   : > { %v5768_v45 = vpop.f32.mrf.mxu0 }
 0x68d   : > { %v5769_v14 = vadd.f32 %v6203_v31, %v5768_v45 }
 0x68e   : > { %v7477_v49 = vpop.f32.mrf.mxu0 }
 0x68f   : > { %5775 = vst [vmem:[%s328_s20] sm:$0xff] %v5769_v14 }
 0x690   : > { %v5771_v63 = vpop.f32.mrf.mxu0 }
 0x691   : > { %v5772_v1 = vadd.f32 %v6203_v31, %v5771_v63 }
 0x692   : > { %v7478_v62 = vpop.f32.mrf.mxu0 }
 0x693   : > { %5776 = vst [vmem:[%s328_s20 + $0x8] sm:$0xff] %v5772_v1 }
 0x694   : > { %7994 = shalt.err (!%p7991_p3)
}
 0x695   : > { %s7995_s18 = scalar_lea.hbm %s10148_s13, 256  ;;  %s7999_s24 = scalar_lea.hbm %s10199_s8, 512 }
 0x696   : > { %p7996_p4 = scmp.ne.s32.totalorder %s10148_s13, %s7995_s18  ;;  %p8000_p9 = scmp.lt.s32.totalorder %s10148_s13, %s10199_s8 }
 0x697   : > { %p8001_p10 = scmp.lt.s32.totalorder %s7999_s24, %s7995_s18 }
 0x698   : > { %p7997_p7 = pnand %p7996_p4, %p8141_p5 }
 0x699   : > { %p8002_p11 = por %p8001_p10, %p8000_p9 }
 0x69a   : > { %p7998_p8 = pneg %p7997_p7 }
 0x69c   : > { %p8003_p12 = pnand %p8002_p11, %p7998_p8 }
 0x69e   : > { %8006 = shalt.err (!%p8003_p12)
}
 0x69f   : > { %s8057_s17 = smov 128  }
 0x6a0   : > { %7479 = dma.vmem_to_hbm [thread:$0]  (%p8141_p5), %s10143_s23, 256, %s10148_s13, %s10150_s10, %s8057_s17, %s8057_s17, %s8045_s21  }
 0x6a1 PF: > { %p7485_p13 = scmp.ge.s32.totalorder %s8041_s30, 2  ;;  %s5806_s9 = sand.u32 1, %s8029_s27  }
 0x6a2   : > { %s5807_s19 = scalar_lea.sflag [#allocation3], %s5806_s9 }
 0x6a3   : > { %p7482_p0 = pnand %p7485_p13, %p8145_p6 }
 0x6a5   : > { %p7483_p1 = pneg %p7482_p0 }
 0x6a7   : > { %8024 = dma.done.wait (%p7483_p1), %s5807_s19, 256  }
 0x6a8   : > { %8026 = vsyncadd (%p7483_p1), %s5807_s19, 4294967040  ;;  %p18_p2 = scmp.ge.s32.totalorder %s8128_s11, 4   ;;  %s10216_s27 = smov %s8033_s28 }
 0x6a9   : > { %s10217_s28 = smov %s8037_s29  ;;  %s10218_s29 = smov %s8139_s14 }
 0x6aa   : > { %s10219_s30 = smov %s8128_s11  ;;  %20 = sbr.rel (!%p18_p2) target bundleno = 3 (0x3), region = 93 }
 0x6af   :  { %5812 = vsyncpa [#allocation3], 1 }
 0x6b0   :  { %5814 = vsyncpa [#allocation3 + $0x1], 1 }

</bundles_post_ra>
